<compile_context>
chip_gen: v6e
topology: v6e:2x2x1
jax: 0.10.0
libtpu: 0.0.40
codegen_flags: <defaults>
</compile_context>

<pallas_src>
from functools import partial

import jax
import jax.numpy as jnp
from jax.experimental import pallas as pl
from jax.experimental.pallas import tpu as pltpu

# Synthetic (small) versions of the module constants.
NUM_RGBXYZ_FEATURE = 32    # num_rgbxyz_feature
NUM_FUSION_FEATURE = 64    # num_fusion_feature
POSE_HIDDEN = 128          # base3DPoseNet.num_fusion_feature (1024 in original; shrunk for test)
NUM_CLASSES = 2
CLASS_PAD = 128            # lane-dense output width (unmasked stores)


def _default_tile():
    """Rows per grid step, per generation (bigger tile = less per-step overhead)."""
    try:
        kind = jax.devices()[0].device_kind.lower()
    except Exception:
        return 512
    if any(t in kind for t in ("v5e", "v5 lite", "v5litepod", "v6e", "v6 lite")):
        return 1024    # 128 MiB VMEM: footprint at hidden=1024 still well under budget
    return 512         # v7x has only 64 MiB VMEM per TensorCore; older gens: stay safe


def _vmem_limit_bytes(tile, frgb, hidden, class_pad):
    """Computed VMEM footprint (fails loudly on overflow instead of silently degrading)."""
    bf16_b, f32_b = 2, 4
    weights = (frgb * hidden + 4 * hidden * hidden + hidden * class_pad) * bf16_b
    biases = (5 * hidden + class_pad) * f32_b * 8                      # (8,128) sublane padding slack
    io = 2 * tile * max(frgb, 128) * bf16_b + 2 * tile * class_pad * bf16_b   # double-buffered I/O
    acts = 6 * tile * hidden * f32_b                                   # xin, x1..x4, logits (f32)
    scratch = 8 << 20                                                  # Mosaic internal headroom
    total = weights + biases + io + acts + scratch
    return int(min(max(total, 24 << 20), 112 << 20))


def _semseg_kernel(
    rf_ref,                               # (tile, frgb) bf16  sampled right features
    wf_ref, bf_ref,                       # fused (mlp_r + input-layer) weight / bias (+left fold)
    w11_ref, b11_ref, w12_ref, b12_ref,   # block11, block12
    w21_ref, b21_ref, w22_ref, b22_ref,   # block21, block22
    wout_ref, bout_ref,                   # output layer, class dim padded to CLASS_PAD
    o_ref,                                # (tile, CLASS_PAD) bf16 softmax probs
):
    f32 = jnp.float32
    bf16 = jnp.bfloat16

    # mlp_r + base3DPoseNet.input fused into one matmul (both are activation-free Linears);
    # the constant left-branch contribution is folded into bf_ref.
    xin = jnp.dot(rf_ref[...], wf_ref[...], preferred_element_type=f32) + bf_ref[...]

    def block(x, w_ref, b_ref):
        # linear_block = Linear -> ReLU -> Dropout(identity at inference)
        return jnp.maximum(
            jnp.dot(x.astype(bf16), w_ref[...], preferred_element_type=f32) + b_ref[...],
            0.0)

    # base3DPoseNet forward with residual=True
    # TODO(synk): on v7x the four hidden x hidden block weights could be stored fp8 e4m3
    #             (per-tensor scale, f32 accumulation) for ~2x MXU throughput; not portable
    #             to v5e/v6e, so kept bf16 here.
    x1 = block(xin, w11_ref, b11_ref) + xin
    x2 = block(x1, w12_ref, b12_ref) + x1 + xin
    x3 = block(x2, w21_ref, b21_ref) + x2
    x4 = block(x3, w22_ref, b22_ref) + x3

    # output layer: padded class columns carry bias -1e30 so they vanish under softmax
    logits = jnp.dot(x4.astype(bf16), wout_ref[...], preferred_element_type=f32) + bout_ref[...]

    # softmax over the (padded) class dim; dead lanes' exp runs on the EUP slot (free)
    m = jnp.max(logits, axis=1, keepdims=True)
    e = jnp.exp(logits - m)
    inv = pl.reciprocal(jnp.sum(e, axis=1, keepdims=True), approx=True)
    o_ref[...] = (e * inv).astype(o_ref.dtype)   # lane-dense bf16 store


def prepare_kernel_weights(params):
    """One-time (model-load) weight preparation: algebraic folds, padding, bf16 casts."""
    f32, bf16 = jnp.float32, jnp.bfloat16
    hidden = params['w11'].shape[0]

    # Fold mlp_r into the input layer (exact algebra in f32, rounded once to bf16).
    w_fused = (params['wr'] @ params['win_r']).astype(bf16)        # (frgb, hidden)
    bin_base = params['br'] @ params['win_r'] + params['bin']      # (1, hidden) f32

    # Lane-dense output: pad class dim to CLASS_PAD, dead columns get bias -1e30.
    wout_pad = (jnp.zeros((hidden, CLASS_PAD), f32)
                .at[:, :NUM_CLASSES].set(params['wout'])).astype(bf16)
    bout_pad = jnp.full((1, CLASS_PAD), -1e30, f32).at[:, :NUM_CLASSES].set(params['bout'])

    return {
        'w_fused': w_fused, 'bin_base': bin_base,
        'w11': params['w11'].astype(bf16), 'b11': params['b11'],
        'w12': params['w12'].astype(bf16), 'b12': params['b12'],
        'w21': params['w21'].astype(bf16), 'b21': params['b21'],
        'w22': params['w22'].astype(bf16), 'b22': params['b22'],
        'wout': wout_pad, 'bout': bout_pad,
        # left-branch weights stay f32 for the tiny per-call bias fold
        'wl': params['wl'], 'bl': params['bl'], 'win_l': params['win_l'],
    }


@partial(jax.jit, static_argnames=('num_sample', 'tile'))
def semseg_pallas(obj_avg, feat_r, sample_idx, kw, *, num_sample, tile=None):
    """obj_avg: (frgb,) mean left feature; feat_r: (n_pts_r, frgb) right features;
    sample_idx: (num_sample,) int32 row indices into feat_r; kw: prepare_kernel_weights()."""
    if tile is None:
        tile = _default_tile()
    frgb = feat_r.shape[1]
    hidden = kw['w11'].shape[0]
    f32, bf16 = jnp.float32, jnp.bfloat16

    # ---- per-call left-branch fold (tiny: (1,frgb)@(frgb,F) + (1,F)@(F,hidden)) ----
    l_fused = obj_avg[None, :].astype(f32) @ kw['wl'] + kw['bl']
    b_fused = kw['bin_base'] + l_fused @ kw['win_l']               # (1, hidden) f32

    # ---- fused gather + bf16 cast + row padding: one pass over the sampled rows ----
    n_tiles = pl.cdiv(num_sample, tile)
    n_pad = n_tiles * tile
    idx_pad = jnp.zeros((n_pad,), jnp.int32).at[:num_sample].set(sample_idx)
    rf = feat_r.astype(bf16)[idx_pad]                              # (n_pad, frgb) bf16

    weights = [kw['w_fused'], b_fused,
               kw['w11'], kw['b11'], kw['w12'], kw['b12'],
               kw['w21'], kw['b21'], kw['w22'], kw['b22'],
               kw['wout'], kw['bout']]

    row_spec = pl.BlockSpec((tile, frgb), lambda i: (i, 0))
    out_spec = pl.BlockSpec((tile, CLASS_PAD), lambda i: (i, 0))

    def invariant_spec(x):
        # grid-invariant inputs: no point double-buffering a constant block
        return pl.BlockSpec(x.shape, lambda i: (0, 0), pipeline_mode=pl.Buffered(1))

    fn = pl.pallas_call(
        _semseg_kernel,
        out_shape=jax.ShapeDtypeStruct((n_pad, CLASS_PAD), jnp.bfloat16),
        grid_spec=pltpu.PrefetchScalarGridSpec(
            num_scalar_prefetch=0,
            grid=(n_tiles,),
            in_specs=[row_spec] + [invariant_spec(w) for w in weights],
            out_specs=out_spec,
        ),
        compiler_params=pltpu.CompilerParams(
            dimension_semantics=("parallel",),   # rows fully independent -> dual-TC on v7x
            vmem_limit_bytes=_vmem_limit_bytes(tile, frgb, hidden, CLASS_PAD),
        ),
    )
    probs_pad = fn(rf, *weights)
    # slice off row padding and dead class lanes; cast back to f32 for downstream consumers
    return probs_pad[:num_sample, :NUM_CLASSES].astype(f32)


def init_params(key):
    """Deterministic synthetic parameters (torch Linear-style uniform init)."""
    def linear(k, fin, fout):
        kw_, kb = jax.random.split(k)
        bound = 1.0 / float(fin) ** 0.5
        w = jax.random.uniform(kw_, (fin, fout), jnp.float32, -bound, bound)
        b = jax.random.uniform(kb, (1, fout), jnp.float32, -bound, bound)
        return w, b

    keys = jax.random.split(key, 8)
    p = {}
    p['wl'], p['bl'] = linear(keys[0], NUM_RGBXYZ_FEATURE, NUM_FUSION_FEATURE)
    p['wr'], p['br'] = linear(keys[1], NUM_RGBXYZ_FEATURE, NUM_FUSION_FEATURE)
    w_in, b_in = linear(keys[2], 2 * NUM_FUSION_FEATURE, POSE_HIDDEN)
    p['win_l'] = w_in[:NUM_FUSION_FEATURE]
    p['win_r'] = w_in[NUM_FUSION_FEATURE:]
    p['bin'] = b_in
    p['w11'], p['b11'] = linear(keys[3], POSE_HIDDEN, POSE_HIDDEN)
    p['w12'], p['b12'] = linear(keys[4], POSE_HIDDEN, POSE_HIDDEN)
    p['w21'], p['b21'] = linear(keys[5], POSE_HIDDEN, POSE_HIDDEN)
    p['w22'], p['b22'] = linear(keys[6], POSE_HIDDEN, POSE_HIDDEN)
    p['wout'], p['bout'] = linear(keys[7], POSE_HIDDEN, NUM_CLASSES)
    return p


def inference_unseen_semseg_forward(feature_dict, batch_data_dict, kernel_weights,
                                    sample_key, num_sample=256):
    """Mirrors InferenceUnseenSemSegNet.forward (batch_num == 1).

    start_idx / num_points are plain Python ints (static slice bounds), so the glue
    never forces a device->host sync. kernel_weights = prepare_kernel_weights(params),
    built once at model-load time (not per call).
    """
    # ---- left branch ----
    l = batch_data_dict['l']
    s_l, n_l = l['start_idx'], l['num_points']
    feat_l = feature_dict['l']['soutput_f'][s_l:s_l + n_l]
    # obj_avg_feature; the per-row .repeat((num_sample, 1)) is folded into the kernel's
    # fused input bias inside semseg_pallas instead of materializing identical rows.
    obj_avg = jnp.mean(feat_l, axis=0)

    # ---- right branch ----
    r = batch_data_dict['r']
    s_r, n_r = r['start_idx'], r['num_points']
    idx_r = r['idxs'][s_r:s_r + n_r]
    feat_r = feature_dict['r']['soutput_f'][s_r:s_r + n_r]
    # torch.randint(idx.size(0), (num_sample,)) -> deterministic JAX equivalent
    sample_i = jax.random.randint(sample_key, (num_sample,), 0, idx_r.shape[0],
                                  dtype=jnp.int32)
    batch_idx = sample_i

    probs = semseg_pallas(obj_avg, feat_r, sample_i, kernel_weights,
                          num_sample=num_sample)
    return {'idx': batch_idx, 'semantic segmentation result': probs}


def _reference_forward(obj_avg, feat_r_sampled, p, num_sample):
    """Pure-JAX f32 reference of the original module math."""
    obj_rep = jnp.broadcast_to(obj_avg[None, :], (num_sample, obj_avg.shape[0]))
    l_fused = obj_rep @ p['wl'] + p['bl']
    r_fused = feat_r_sampled @ p['wr'] + p['br']
    feat = jnp.concatenate([l_fused, r_fused], axis=1)
    w_in = jnp.concatenate([p['win_l'], p['win_r']], axis=0)
    xin = feat @ w_in + p['bin']
    blk = lambda x, w, b: jnp.maximum(x @ w + b, 0.0)
    x1 = blk(xin, p['w11'], p['b11']) + xin
    x2 = blk(x1, p['w12'], p['b12']) + x1 + xin
    x3 = blk(x2, p['w21'], p['b21']) + x2
    x4 = blk(x3, p['w22'], p['b22']) + x3
    logits = x4 @ p['wout'] + p['bout']
    return jax.nn.softmax(logits, axis=1)


if __name__ == "__main__":
    key = jax.random.PRNGKey(0)
    k_par, k_l, k_r, k_sample = jax.random.split(key, 4)

    params = init_params(k_par)
    kernel_weights = prepare_kernel_weights(params)   # once, at model-load time

    # Synthetic "sparse conv output" features for left / right point clouds.
    n_pts_l, n_pts_r = 40, 56
    feature_dict = {
        'l': {'soutput_f': jax.random.normal(k_l, (n_pts_l, NUM_RGBXYZ_FEATURE), jnp.float32)},
        'r': {'soutput_f': jax.random.normal(k_r, (n_pts_r, NUM_RGBXYZ_FEATURE), jnp.float32)},
    }
    batch_data_dict = {
        'l': {'idxs': jnp.arange(n_pts_l, dtype=jnp.int32),
              'start_idx': 0, 'num_points': n_pts_l},
        'r': {'idxs': jnp.arange(n_pts_r, dtype=jnp.int32),
              'start_idx': 0, 'num_points': n_pts_r},
    }

    # 100000 in the original; shrunk for the test, intentionally NOT a multiple of the tile
    num_sample = 1000
    out = inference_unseen_semseg_forward(feature_dict, batch_data_dict, kernel_weights,
                                          k_sample, num_sample=num_sample)
    probs = jax.block_until_ready(out['semantic segmentation result'])
    idx = jax.block_until_ready(out['idx'])

    # correctness check against a pure-JAX f32 reference (kernel runs bf16 matmuls + bf16 out)
    feat_r = feature_dict['r']['soutput_f'][:n_pts_r]
    obj_avg = jnp.mean(feature_dict['l']['soutput_f'][:n_pts_l], axis=0)
    ref = _reference_forward(obj_avg, feat_r[idx], params, num_sample)

    assert probs.shape == (num_sample, NUM_CLASSES)
    assert bool(jnp.allclose(probs, ref, rtol=5e-2, atol=5e-2))
    # NOTE: bf16 output + approx reciprocal -> rows sum to 1 only to ~1e-2 (flagged in review)
    assert bool(jnp.allclose(jnp.sum(probs, axis=1), 1.0, atol=2e-2))

    print("KERNEL_OK")
</pallas_src>

<mosaic_0001>
module attributes {stable_mosaic.version = 11 : i64} {
  func.func @_semseg_kernel(%arg0: i32, %arg1: memref<512x32xbf16, #tpu.memory_space<vmem>>, %arg2: memref<32x128xbf16, #tpu.memory_space<vmem>>, %arg3: memref<1x128xf32, #tpu.memory_space<vmem>>, %arg4: memref<128x128xbf16, #tpu.memory_space<vmem>>, %arg5: memref<1x128xf32, #tpu.memory_space<vmem>>, %arg6: memref<128x128xbf16, #tpu.memory_space<vmem>>, %arg7: memref<1x128xf32, #tpu.memory_space<vmem>>, %arg8: memref<128x128xbf16, #tpu.memory_space<vmem>>, %arg9: memref<1x128xf32, #tpu.memory_space<vmem>>, %arg10: memref<128x128xbf16, #tpu.memory_space<vmem>>, %arg11: memref<1x128xf32, #tpu.memory_space<vmem>>, %arg12: memref<128x128xbf16, #tpu.memory_space<vmem>>, %arg13: memref<1x128xf32, #tpu.memory_space<vmem>>, %arg14: memref<512x128xbf16, #tpu.memory_space<vmem>>) attributes {dimension_semantics = [#tpu.dimension_semantics<parallel>], iteration_bounds = array<i64: 2>, scalar_prefetch = 0 : i64, scratch_operands = 0 : i64, tpu.core_type = #tpu.core_type<tc>, window_params = [{transform_indices = @transform_0, window_bounds = array<i64: 512, 32>}, {pipeline_mode = #tpu.pipeline_mode<synchronous>, transform_indices = @transform_1, window_bounds = array<i64: 32, 128>}, {pipeline_mode = #tpu.pipeline_mode<synchronous>, transform_indices = @transform_2, window_bounds = array<i64: 1, 128>}, {pipeline_mode = #tpu.pipeline_mode<synchronous>, transform_indices = @transform_3, window_bounds = array<i64: 128, 128>}, {pipeline_mode = #tpu.pipeline_mode<synchronous>, transform_indices = @transform_4, window_bounds = array<i64: 1, 128>}, {pipeline_mode = #tpu.pipeline_mode<synchronous>, transform_indices = @transform_5, window_bounds = array<i64: 128, 128>}, {pipeline_mode = #tpu.pipeline_mode<synchronous>, transform_indices = @transform_6, window_bounds = array<i64: 1, 128>}, {pipeline_mode = #tpu.pipeline_mode<synchronous>, transform_indices = @transform_7, window_bounds = array<i64: 128, 128>}, {pipeline_mode = #tpu.pipeline_mode<synchronous>, transform_indices = @transform_8, window_bounds = array<i64: 1, 128>}, {pipeline_mode = #tpu.pipeline_mode<synchronous>, transform_indices = @transform_9, window_bounds = array<i64: 128, 128>}, {pipeline_mode = #tpu.pipeline_mode<synchronous>, transform_indices = @transform_10, window_bounds = array<i64: 1, 128>}, {pipeline_mode = #tpu.pipeline_mode<synchronous>, transform_indices = @transform_11, window_bounds = array<i64: 128, 128>}, {pipeline_mode = #tpu.pipeline_mode<synchronous>, transform_indices = @transform_12, window_bounds = array<i64: 1, 128>}, {transform_indices = @transform_13, window_bounds = array<i64: 512, 128>}]} {
    %c0 = arith.constant 0 : index
    %c0_0 = arith.constant 0 : index
    %0 = vector.load %arg1[%c0, %c0_0] : memref<512x32xbf16, #tpu.memory_space<vmem>>, vector<512x32xbf16>
    %c0_1 = arith.constant 0 : index
    %c0_2 = arith.constant 0 : index
    %1 = vector.load %arg2[%c0_1, %c0_2] : memref<32x128xbf16, #tpu.memory_space<vmem>>, vector<32x128xbf16>
    %cst = arith.constant dense<0.000000e+00> : vector<512x128xf32>
    %2 = tpu.matmul %0, %1, %cst {dimension_numbers = #tpu.dot_dimension_numbers<[1], [0], [0], [1], [0, 0, 1, 1], [], []>} : vector<512x32xbf16>, vector<32x128xbf16>, vector<512x128xf32> -> vector<512x128xf32>
    %c0_3 = arith.constant 0 : index
    %c0_4 = arith.constant 0 : index
    %3 = vector.load %arg3[%c0_3, %c0_4] : memref<1x128xf32, #tpu.memory_space<vmem>>, vector<1x128xf32>
    %4 = vector.broadcast %3 : vector<1x128xf32> to vector<512x128xf32>
    %5 = arith.addf %2, %4 : vector<512x128xf32>
    %6 = arith.truncf %5 : vector<512x128xf32> to vector<512x128xbf16>
    %c0_5 = arith.constant 0 : index
    %c0_6 = arith.constant 0 : index
    %7 = vector.load %arg4[%c0_5, %c0_6] : memref<128x128xbf16, #tpu.memory_space<vmem>>, vector<128x128xbf16>
    %cst_7 = arith.constant dense<0.000000e+00> : vector<512x128xf32>
    %8 = tpu.matmul %6, %7, %cst_7 {dimension_numbers = #tpu.dot_dimension_numbers<[1], [0], [0], [1], [0, 0, 1, 1], [], []>} : vector<512x128xbf16>, vector<128x128xbf16>, vector<512x128xf32> -> vector<512x128xf32>
    %c0_8 = arith.constant 0 : index
    %c0_9 = arith.constant 0 : index
    %9 = vector.load %arg5[%c0_8, %c0_9] : memref<1x128xf32, #tpu.memory_space<vmem>>, vector<1x128xf32>
    %10 = vector.broadcast %9 : vector<1x128xf32> to vector<512x128xf32>
    %11 = arith.addf %8, %10 : vector<512x128xf32>
    %cst_10 = arith.constant 0.000000e+00 : f32
    %12 = vector.broadcast %cst_10 : f32 to vector<512x128xf32>
    %13 = arith.maximumf %11, %12 : vector<512x128xf32>
    %14 = arith.addf %13, %5 : vector<512x128xf32>
    %15 = arith.truncf %14 : vector<512x128xf32> to vector<512x128xbf16>
    %c0_11 = arith.constant 0 : index
    %c0_12 = arith.constant 0 : index
    %16 = vector.load %arg6[%c0_11, %c0_12] : memref<128x128xbf16, #tpu.memory_space<vmem>>, vector<128x128xbf16>
    %cst_13 = arith.constant dense<0.000000e+00> : vector<512x128xf32>
    %17 = tpu.matmul %15, %16, %cst_13 {dimension_numbers = #tpu.dot_dimension_numbers<[1], [0], [0], [1], [0, 0, 1, 1], [], []>} : vector<512x128xbf16>, vector<128x128xbf16>, vector<512x128xf32> -> vector<512x128xf32>
    %c0_14 = arith.constant 0 : index
    %c0_15 = arith.constant 0 : index
    %18 = vector.load %arg7[%c0_14, %c0_15] : memref<1x128xf32, #tpu.memory_space<vmem>>, vector<1x128xf32>
    %19 = vector.broadcast %18 : vector<1x128xf32> to vector<512x128xf32>
    %20 = arith.addf %17, %19 : vector<512x128xf32>
    %cst_16 = arith.constant 0.000000e+00 : f32
    %21 = vector.broadcast %cst_16 : f32 to vector<512x128xf32>
    %22 = arith.maximumf %20, %21 : vector<512x128xf32>
    %23 = arith.addf %22, %14 : vector<512x128xf32>
    %24 = arith.addf %23, %5 : vector<512x128xf32>
    %25 = arith.truncf %24 : vector<512x128xf32> to vector<512x128xbf16>
    %c0_17 = arith.constant 0 : index
    %c0_18 = arith.constant 0 : index
    %26 = vector.load %arg8[%c0_17, %c0_18] : memref<128x128xbf16, #tpu.memory_space<vmem>>, vector<128x128xbf16>
    %cst_19 = arith.constant dense<0.000000e+00> : vector<512x128xf32>
    %27 = tpu.matmul %25, %26, %cst_19 {dimension_numbers = #tpu.dot_dimension_numbers<[1], [0], [0], [1], [0, 0, 1, 1], [], []>} : vector<512x128xbf16>, vector<128x128xbf16>, vector<512x128xf32> -> vector<512x128xf32>
    %c0_20 = arith.constant 0 : index
    %c0_21 = arith.constant 0 : index
    %28 = vector.load %arg9[%c0_20, %c0_21] : memref<1x128xf32, #tpu.memory_space<vmem>>, vector<1x128xf32>
    %29 = vector.broadcast %28 : vector<1x128xf32> to vector<512x128xf32>
    %30 = arith.addf %27, %29 : vector<512x128xf32>
    %cst_22 = arith.constant 0.000000e+00 : f32
    %31 = vector.broadcast %cst_22 : f32 to vector<512x128xf32>
    %32 = arith.maximumf %30, %31 : vector<512x128xf32>
    %33 = arith.addf %32, %24 : vector<512x128xf32>
    %34 = arith.truncf %33 : vector<512x128xf32> to vector<512x128xbf16>
    %c0_23 = arith.constant 0 : index
    %c0_24 = arith.constant 0 : index
    %35 = vector.load %arg10[%c0_23, %c0_24] : memref<128x128xbf16, #tpu.memory_space<vmem>>, vector<128x128xbf16>
    %cst_25 = arith.constant dense<0.000000e+00> : vector<512x128xf32>
    %36 = tpu.matmul %34, %35, %cst_25 {dimension_numbers = #tpu.dot_dimension_numbers<[1], [0], [0], [1], [0, 0, 1, 1], [], []>} : vector<512x128xbf16>, vector<128x128xbf16>, vector<512x128xf32> -> vector<512x128xf32>
    %c0_26 = arith.constant 0 : index
    %c0_27 = arith.constant 0 : index
    %37 = vector.load %arg11[%c0_26, %c0_27] : memref<1x128xf32, #tpu.memory_space<vmem>>, vector<1x128xf32>
    %38 = vector.broadcast %37 : vector<1x128xf32> to vector<512x128xf32>
    %39 = arith.addf %36, %38 : vector<512x128xf32>
    %cst_28 = arith.constant 0.000000e+00 : f32
    %40 = vector.broadcast %cst_28 : f32 to vector<512x128xf32>
    %41 = arith.maximumf %39, %40 : vector<512x128xf32>
    %42 = arith.addf %41, %33 : vector<512x128xf32>
    %43 = arith.truncf %42 : vector<512x128xf32> to vector<512x128xbf16>
    %c0_29 = arith.constant 0 : index
    %c0_30 = arith.constant 0 : index
    %44 = vector.load %arg12[%c0_29, %c0_30] : memref<128x128xbf16, #tpu.memory_space<vmem>>, vector<128x128xbf16>
    %cst_31 = arith.constant dense<0.000000e+00> : vector<512x128xf32>
    %45 = tpu.matmul %43, %44, %cst_31 {dimension_numbers = #tpu.dot_dimension_numbers<[1], [0], [0], [1], [0, 0, 1, 1], [], []>} : vector<512x128xbf16>, vector<128x128xbf16>, vector<512x128xf32> -> vector<512x128xf32>
    %c0_32 = arith.constant 0 : index
    %c0_33 = arith.constant 0 : index
    %46 = vector.load %arg13[%c0_32, %c0_33] : memref<1x128xf32, #tpu.memory_space<vmem>>, vector<1x128xf32>
    %47 = vector.broadcast %46 : vector<1x128xf32> to vector<512x128xf32>
    %48 = arith.addf %45, %47 : vector<512x128xf32>
    %cst_34 = arith.constant dense<0xFF800000> : vector<512xf32>
    %49 = vector.multi_reduction <maximumf>, %48, %cst_34 [1] : vector<512x128xf32> to vector<512xf32>
    %50 = vector.shape_cast %49 : vector<512xf32> to vector<512x1xf32>
    %51 = vector.broadcast %50 : vector<512x1xf32> to vector<512x128xf32>
    %52 = arith.subf %48, %51 : vector<512x128xf32>
    %53 = math.exp %52 : vector<512x128xf32>
    %cst_35 = arith.constant dense<0.000000e+00> : vector<512xf32>
    %54 = vector.multi_reduction <add>, %53, %cst_35 [1] : vector<512x128xf32> to vector<512xf32>
    %55 = vector.shape_cast %54 : vector<512xf32> to vector<512x1xf32>
    %56 = tpu.reciprocal %55 {approx = true} : vector<512x1xf32> -> vector<512x1xf32>
    %57 = vector.broadcast %56 : vector<512x1xf32> to vector<512x128xf32>
    %58 = arith.mulf %53, %57 : vector<512x128xf32>
    %59 = arith.truncf %58 : vector<512x128xf32> to vector<512x128xbf16>
    %c0_36 = arith.constant 0 : index
    %c0_37 = arith.constant 0 : index
    %60 = vector.load %arg14[%c0_36, %c0_37] : memref<512x128xbf16, #tpu.memory_space<vmem>>, vector<512x128xbf16>
    tpu.vector_store %arg14[%c0_36, %c0_37], %59 {strides = array<i32>} : memref<512x128xbf16, #tpu.memory_space<vmem>>, vector<512x128xbf16>,
    return
  }
  func.func @transform_0(%arg0: i32) -> (i32, i32) {
    %c0_i32 = arith.constant 0 : i32
    %c0_i32_0 = arith.constant 0 : i32
    return %arg0, %c0_i32 : i32, i32
  }
  func.func @transform_1(%arg0: i32) -> (i32, i32) {
    %c0_i32 = arith.constant 0 : i32
    %c0_i32_0 = arith.constant 0 : i32
    %c0_i32_1 = arith.constant 0 : i32
    return %c0_i32, %c0_i32_0 : i32, i32
  }
  func.func @transform_2(%arg0: i32) -> (i32, i32) {
    %c0_i32 = arith.constant 0 : i32
    %c0_i32_0 = arith.constant 0 : i32
    %c0_i32_1 = arith.constant 0 : i32
    return %c0_i32, %c0_i32_0 : i32, i32
  }
  func.func @transform_3(%arg0: i32) -> (i32, i32) {
    %c0_i32 = arith.constant 0 : i32
    %c0_i32_0 = arith.constant 0 : i32
    %c0_i32_1 = arith.constant 0 : i32
    return %c0_i32, %c0_i32_0 : i32, i32
  }
  func.func @transform_4(%arg0: i32) -> (i32, i32) {
    %c0_i32 = arith.constant 0 : i32
    %c0_i32_0 = arith.constant 0 : i32
    %c0_i32_1 = arith.constant 0 : i32
    return %c0_i32, %c0_i32_0 : i32, i32
  }
  func.func @transform_5(%arg0: i32) -> (i32, i32) {
    %c0_i32 = arith.constant 0 : i32
    %c0_i32_0 = arith.constant 0 : i32
    %c0_i32_1 = arith.constant 0 : i32
    return %c0_i32, %c0_i32_0 : i32, i32
  }
  func.func @transform_6(%arg0: i32) -> (i32, i32) {
    %c0_i32 = arith.constant 0 : i32
    %c0_i32_0 = arith.constant 0 : i32
    %c0_i32_1 = arith.constant 0 : i32
    return %c0_i32, %c0_i32_0 : i32, i32
  }
  func.func @transform_7(%arg0: i32) -> (i32, i32) {
    %c0_i32 = arith.constant 0 : i32
    %c0_i32_0 = arith.constant 0 : i32
    %c0_i32_1 = arith.constant 0 : i32
    return %c0_i32, %c0_i32_0 : i32, i32
  }
  func.func @transform_8(%arg0: i32) -> (i32, i32) {
    %c0_i32 = arith.constant 0 : i32
    %c0_i32_0 = arith.constant 0 : i32
    %c0_i32_1 = arith.constant 0 : i32
    return %c0_i32, %c0_i32_0 : i32, i32
  }
  func.func @transform_9(%arg0: i32) -> (i32, i32) {
    %c0_i32 = arith.constant 0 : i32
    %c0_i32_0 = arith.constant 0 : i32
    %c0_i32_1 = arith.constant 0 : i32
    return %c0_i32, %c0_i32_0 : i32, i32
  }
  func.func @transform_10(%arg0: i32) -> (i32, i32) {
    %c0_i32 = arith.constant 0 : i32
    %c0_i32_0 = arith.constant 0 : i32
    %c0_i32_1 = arith.constant 0 : i32
    return %c0_i32, %c0_i32_0 : i32, i32
  }
  func.func @transform_11(%arg0: i32) -> (i32, i32) {
    %c0_i32 = arith.constant 0 : i32
    %c0_i32_0 = arith.constant 0 : i32
    %c0_i32_1 = arith.constant 0 : i32
    return %c0_i32, %c0_i32_0 : i32, i32
  }
  func.func @transform_12(%arg0: i32) -> (i32, i32) {
    %c0_i32 = arith.constant 0 : i32
    %c0_i32_0 = arith.constant 0 : i32
    %c0_i32_1 = arith.constant 0 : i32
    return %c0_i32, %c0_i32_0 : i32, i32
  }
  func.func @transform_13(%arg0: i32) -> (i32, i32) {
    %c0_i32 = arith.constant 0 : i32
    %c0_i32_0 = arith.constant 0 : i32
    return %arg0, %c0_i32 : i32, i32
  }
}

</mosaic_0001>

<bundles_post_ra>
// kernel: semseg_pallas.1
= control target key start
LH: loop header
LB: loop body
LE: loop exit
PB: predicated region body
PF: predicated region fallthrough
CT: control target
= control target key end

     0   :  { %s6142_s25 = smov 0   ;;  %s8442_s0 = inlined_call_operand.vmem [shape: bf16[1024,32], index: 0, kind: input, shape index: {}]   ;;  %s8443_s1 = inlined_call_operand.vmem [shape: bf16[32,128], index: 1, kind: input, shape index: {}]   ;;  %s8444_s2 = inlined_call_operand.vmem [shape: f32[1,128], index: 2, kind: input, shape index: {}]   ;;  %s8445_s3 = inlined_call_operand.vmem [shape: bf16[128,128], index: 3, kind: input, shape index: {}]   ;;  %s8446_s4 = inlined_call_operand.vmem [shape: f32[1,128], index: 4, kind: input, shape index: {}]   ;;  %s8447_s5 = inlined_call_operand.vmem [shape: bf16[128,128], index: 5, kind: input, shape index: {}]   ;;  %s8448_s6 = inlined_call_operand.vmem [shape: f32[1,128], index: 6, kind: input, shape index: {}]   ;;  %s8449_s7 = inlined_call_operand.vmem [shape: bf16[128,128], index: 7, kind: input, shape index: {}]   ;;  %s8450_s8 = inlined_call_operand.vmem [shape: f32[1,128], index: 8, kind: input, shape index: {}]   ;;  %s8451_s9 = inlined_call_operand.vmem [shape: bf16[128,128], index: 9, kind: input, shape index: {}]   ;;  %s8452_s10 = inlined_call_operand.vmem [shape: f32[1,128], index: 10, kind: input, shape index: {}]   ;;  %s8453_s11 = inlined_call_operand.vmem [shape: bf16[128,128], index: 11, kind: input, shape index: {}]   ;;  %s8454_s12 = inlined_call_operand.vmem [shape: f32[1,128], index: 12, kind: input, shape index: {}]   ;;  %s8455_s13 = inlined_call_operand.vmem [shape: bf16[1024,128], index: 13, kind: output, shape index: {}]  }
   0x1 LB: > { %s4566_s26 = sadd.s32 4294967295, %s6070_s25   ;;  %p4570_p0 = scmp.ge.s32.totalorder %s6070_s25, 1  ;;  %s6070_s25 = sphi %s6142_s25, %s23_s25  }
   0x2   : > { %p388_p1 = scmp.lt.s32.totalorder %s6070_s25, 3 }
   0x4   : > { %p389_p2 = pnand %p4570_p0, %p388_p1 }
   0x6   : > { %392 = sbr.rel (%p389_p2) target bundleno = 1698 (0x6a2), region = 72 }
   0xb   : > { %v5734_v0 = vld [vmem:[%s8443_s1 + $0x8] sm:$0xff]   ;;  %s4571_s29 = sshll.u32 %s4566_s26, 6  ;;  %v5735_v1 = vld [vmem:[%s8443_s1] sm:$0xff]   ;;  %v5768_v2 = vld [vmem:[%s8445_s3 + $0x38] sm:$0xff]   ;;  %vm692_vm0 = vcmask 261120  }
   0xc   : > { %p433_p3 = scmp.lt.s32.totalorder %s4571_s29, 127  ;;  %5242 = vmatprep.subr.bf16.mxu0 %v5734_v0  ;;  %v5769_v3 = vld [vmem:[%s8445_s3 + $0x30] sm:$0xff]   ;;  %5310 = vmatprep.subr.bf16.mxu1 %v5768_v2  ;;  %v5770_v4 = vld [vmem:[%s8445_s3 + $0x28] sm:$0xff]   ;;  %v5771_v8 = vld [vmem:[%s8445_s3 + $0x20] sm:$0xff]  }
   0xd   : > { %5243 = vmatpush3.bf16.msra.mxu0 %v5734_v0  ;;  %5311 = vmatpush3.bf16.msra.mxu1 %v5768_v2  ;;  %v5772_v9 = vld [vmem:[%s8445_s3 + $0x18] sm:$0xff]   ;;  %v5773_v26 = vld [vmem:[%s8445_s3 + $0x10] sm:$0xff]   ;;  %v5774_v27 = vld [vmem:[%s8445_s3 + $0x8] sm:$0xff]  }
   0xe   : > { %s8951_s29 = smov (!%p433_p3, %s4571_s29), 127  ;;  %5244 = vmatprep.subr.bf16.mxu0 %v5735_v1  ;;  %5312 = vmatprep.subr.bf16.mxu1 %v5769_v3  ;;  %v5775_v30 = vld [vmem:[%s8445_s3] sm:$0xff]   ;;  %v5776_v42 = vld [vmem:[%s8447_s5 + $0x38] sm:$0xff]   ;;  %v5777_v43 = vld [vmem:[%s8447_s5 + $0x30] sm:$0xff]  }
   0xf   : > { %s4572_s19 = sshll.u32 %s8951_s29, 2  ;;  %v5778_v44 = vld [vmem:[%s8447_s5 + $0x28] sm:$0xff]   ;;  %v5779_v48 = vld [vmem:[%s8447_s5 + $0x20] sm:$0xff]   ;;  %v5780_v49 = vld [vmem:[%s8447_s5 + $0x18] sm:$0xff]  }
  0x10   : > { %s6170_s22 = scalar_lea.vmem %s8442_s0, %s4572_s19  ;;  %v6272_v50 = vld [vmem:[%s8444_s2] ss:$0 sm:$0xff]  ;;  %v5781_v57 = vld [vmem:[%s8447_s5 + $0x10] sm:$0xff]   ;;  %v5782_v62 = vld [vmem:[%s8447_s5 + $0x8] sm:$0xff]   ;;  %s8343_s14 = scalar_lea.vmem %s8455_s13, %s4572_s19 }
  0x11   : > { %5245 = vmatpush3.bf16.msra.mxu0 %v5735_v1  ;;  %v5736_v5 = vld [vmem:[%s6170_s22] sm:$0xff]   ;;  %v5737_v6 = vld [vmem:[%s6170_s22 + $0x8] sm:$0xff]   ;;  %v5738_v7 = vld [vmem:[%s6170_s22 + $0x10] sm:$0xff]   ;;  %5313 = vmatpush3.bf16.msra.mxu1 %v5769_v3 }
  0x12   : > { %5246 = vmatprep.mubr.msk.bf16.mxu0 %vm692_vm0, %v5736_v5  ;;  %5314 = vmatprep.subr.bf16.mxu1 %v5770_v4  ;;  %v5739_v10 = vld [vmem:[%s6170_s22 + $0x18] sm:$0xff]   ;;  %v5740_v11 = vld [vmem:[%s6170_s22 + $0x20] sm:$0xff]   ;;  %v5741_v12 = vld [vmem:[%s6170_s22 + $0x28] sm:$0xff]  }
  0x13   : > { %v5742_v13 = vld [vmem:[%s6170_s22 + $0x30] sm:$0xff]   ;;  %v5743_v14 = vld [vmem:[%s6170_s22 + $0x38] sm:$0xff]   ;;  %v5744_v15 = vld [vmem:[%s6170_s22 + $0x40] sm:$0xff]   ;;  %5390 = vmatprep.subr.bf16.mxu0 %v5776_v42 }
  0x14   : > { %5247 = vmatmul.mubr.msk.bf16.vlgmr.msra.gmra.mxu0 %vm692_vm0, %v5737_v6  ;;  %v5745_v16 = vld [vmem:[%s6170_s22 + $0x48] sm:$0xff]   ;;  %v5746_v17 = vld [vmem:[%s6170_s22 + $0x50] sm:$0xff]   ;;  %v5747_v18 = vld [vmem:[%s6170_s22 + $0x58] sm:$0xff]  }
  0x15   : > { %5250 = vmatprep.mubr.msk.bf16.mxu0 %vm692_vm0, %v5738_v7  ;;  %5315 = vmatpush3.bf16.msra.mxu1 %v5770_v4  ;;  %v5748_v19 = vld [vmem:[%s6170_s22 + $0x60] sm:$0xff]   ;;  %v5749_v20 = vld [vmem:[%s6170_s22 + $0x68] sm:$0xff]   ;;  %v5750_v21 = vld [vmem:[%s6170_s22 + $0x70] sm:$0xff]  }
  0x16   : > { %5316 = vmatprep.subr.bf16.mxu1 %v5771_v8  ;;  %v5751_v22 = vld [vmem:[%s6170_s22 + $0x78] sm:$0xff]   ;;  %v5752_v23 = vld [vmem:[%s6170_s22 + $0x80] sm:$0xff]   ;;  %v5753_v24 = vld [vmem:[%s6170_s22 + $0x88] sm:$0xff]   ;;  %5391 = vmatpush3.bf16.msra.mxu0 %v5776_v42 }
  0x17   : > { %v5754_v25 = vld [vmem:[%s6170_s22 + $0x90] sm:$0xff]   ;;  %v5755_v28 = vld [vmem:[%s6170_s22 + $0x98] sm:$0xff]   ;;  %v5756_v29 = vld [vmem:[%s6170_s22 + $0xa0] sm:$0xff]   ;;  %5392 = vmatprep.subr.bf16.mxu0 %v5777_v43 }
  0x18   : > { %v5757_v31 = vld [vmem:[%s6170_s22 + $0xa8] sm:$0xff]   ;;  %v5758_v32 = vld [vmem:[%s6170_s22 + $0xb0] sm:$0xff]   ;;  %v5759_v33 = vld [vmem:[%s6170_s22 + $0xb8] sm:$0xff]  }
  0x19   : > { %5317 = vmatpush3.bf16.msra.mxu1 %v5771_v8  ;;  %v5760_v34 = vld [vmem:[%s6170_s22 + $0xc0] sm:$0xff]   ;;  %v5761_v35 = vld [vmem:[%s6170_s22 + $0xc8] sm:$0xff]   ;;  %v5762_v36 = vld [vmem:[%s6170_s22 + $0xd0] sm:$0xff]  }
  0x1a   : > { %5318 = vmatprep.subr.bf16.mxu1 %v5772_v9  ;;  %v5763_v37 = vld [vmem:[%s6170_s22 + $0xd8] sm:$0xff]   ;;  %v5764_v38 = vld [vmem:[%s6170_s22 + $0xe0] sm:$0xff]   ;;  %v5765_v39 = vld [vmem:[%s6170_s22 + $0xe8] sm:$0xff]   ;;  %5393 = vmatpush3.bf16.msra.mxu0 %v5777_v43 }
  0x1b   : > { %v5766_v40 = vld [vmem:[%s6170_s22 + $0xf0] sm:$0xff]   ;;  %v5767_v41 = vld [vmem:[%s6170_s22 + $0xf8] sm:$0xff]   ;;  %5394 = vmatprep.subr.bf16.mxu0 %v5778_v44  ;;  %v5783_v5 = vld [vmem:[%s8447_s5] sm:$0xff]  }
  0x1c   : > { %5251 = vmatmul.mubr.msk.bf16.gmra.mxu0 %vm692_vm0, %v5739_v10 }
  0x1d   : > { %5254 = vmatprep.mubr.msk.bf16.mxu0 %vm692_vm0, %v5740_v11  ;;  %5319 = vmatpush3.bf16.msra.mxu1 %v5772_v9 }
  0x1e   : > { %5320 = vmatprep.subr.bf16.mxu1 %v5773_v26  ;;  %5395 = vmatpush3.bf16.msra.mxu0 %v5778_v44 }
  0x1f   : > { %5396 = vmatprep.subr.bf16.mxu0 %v5779_v48 }
  0x21   : > { %5321 = vmatpush3.bf16.msra.mxu1 %v5773_v26 }
  0x22   : > { %5322 = vmatprep.subr.bf16.mxu1 %v5774_v27  ;;  %5397 = vmatpush3.bf16.msra.mxu0 %v5779_v48 }
  0x23   : > { %5398 = vmatprep.subr.bf16.mxu0 %v5780_v49 }
  0x24   : > { %5255 = vmatmul.mubr.msk.bf16.gmra.mxu0 %vm692_vm0, %v5741_v12 }
  0x25   : > { %5258 = vmatprep.mubr.msk.bf16.mxu0 %vm692_vm0, %v5742_v13  ;;  %5323 = vmatpush3.bf16.msra.mxu1 %v5774_v27 }
  0x26   : > { %5324 = vmatprep.subr.bf16.mxu1 %v5775_v30  ;;  %5399 = vmatpush3.bf16.msra.mxu0 %v5780_v49 }
  0x27   : > { %5400 = vmatprep.subr.bf16.mxu0 %v5781_v57 }
  0x29   : > { %5325 = vmatpush3.bf16.msra.mxu1 %v5775_v30 }
  0x2a   : > { %5401 = vmatpush3.bf16.msra.mxu0 %v5781_v57 }
  0x2b   : > { %5402 = vmatprep.subr.bf16.mxu0 %v5782_v62 }
  0x2c   : > { %5259 = vmatmul.mubr.msk.bf16.gmra.mxu0 %vm692_vm0, %v5743_v14 }
  0x2d   : > { %5262 = vmatprep.mubr.msk.bf16.mxu0 %vm692_vm0, %v5744_v15 }
  0x2e   : > { %5403 = vmatpush3.bf16.msra.mxu0 %v5782_v62 }
  0x2f   : > { %5404 = vmatprep.subr.bf16.mxu0 %v5783_v5 }
  0x32   : > { %5405 = vmatpush3.bf16.msra.mxu0 %v5783_v5 }
  0x34   : > { %5263 = vmatmul.mubr.msk.bf16.gmra.mxu0 %vm692_vm0, %v5745_v16 }
  0x35   : > { %5266 = vmatprep.mubr.msk.bf16.mxu0 %vm692_vm0, %v5746_v17 }
  0x3c   : > { %5267 = vmatmul.mubr.msk.bf16.gmra.mxu0 %vm692_vm0, %v5747_v18 }
  0x3d   : > { %5270 = vmatprep.mubr.msk.bf16.mxu0 %vm692_vm0, %v5748_v19 }
  0x44   : > { %5271 = vmatmul.mubr.msk.bf16.gmra.mxu0 %vm692_vm0, %v5749_v20 }
  0x45   : > { %5274 = vmatprep.mubr.msk.bf16.mxu0 %vm692_vm0, %v5750_v21 }
  0x4c   : > { %5275 = vmatmul.mubr.msk.bf16.gmra.mxu0 %vm692_vm0, %v5751_v22 }
  0x4d   : > { %5278 = vmatprep.mubr.msk.bf16.mxu0 %vm692_vm0, %v5752_v23 }
  0x54   : > { %5279 = vmatmul.mubr.msk.bf16.gmra.mxu0 %vm692_vm0, %v5753_v24 }
  0x55   : > { %5282 = vmatprep.mubr.msk.bf16.mxu0 %vm692_vm0, %v5754_v25 }
  0x5c   : > { %5283 = vmatmul.mubr.msk.bf16.gmra.mxu0 %vm692_vm0, %v5755_v28 }
  0x5d   : > { %5286 = vmatprep.mubr.msk.bf16.mxu0 %vm692_vm0, %v5756_v29 }
  0x64   : > { %5287 = vmatmul.mubr.msk.bf16.gmra.mxu0 %vm692_vm0, %v5757_v31 }
  0x65   : > { %5290 = vmatprep.mubr.msk.bf16.mxu0 %vm692_vm0, %v5758_v32 }
  0x6c   : > { %5291 = vmatmul.mubr.msk.bf16.gmra.mxu0 %vm692_vm0, %v5759_v33 }
  0x6d   : > { %5294 = vmatprep.mubr.msk.bf16.mxu0 %vm692_vm0, %v5760_v34 }
  0x74   : > { %5295 = vmatmul.mubr.msk.bf16.gmra.mxu0 %vm692_vm0, %v5761_v35 }
  0x75   : > { %5298 = vmatprep.mubr.msk.bf16.mxu0 %vm692_vm0, %v5762_v36 }
  0x7c   : > { %5299 = vmatmul.mubr.msk.bf16.gmra.mxu0 %vm692_vm0, %v5763_v37 }
  0x7d   : > { %5302 = vmatprep.mubr.msk.bf16.mxu0 %vm692_vm0, %v5764_v38 }
  0x84   : > { %5303 = vmatmul.mubr.msk.bf16.gmra.mxu0 %vm692_vm0, %v5765_v39 }
  0x85   : > { %5306 = vmatprep.mubr.msk.bf16.mxu0 %vm692_vm0, %v5766_v40 }
  0x8c   : > { %5307 = vmatmul.mubr.msk.bf16.gmra.mxu0 %vm692_vm0, %v5767_v41 }
  0xd4   : > { %v5248_v45 = vpop.f32.mrf.mxu0 }
  0xd5   : > { %v6284_v55 = vadd.f32 %v5248_v45, %v6272_v50 }
  0xd6   : > { %v823_v46 = vpop.f32.mrf.mxu0 }
  0xd7   : > { %v6278_v53 = vadd.f32 %v6272_v50, %v823_v46  ;;  %8629 = vst [vmem:[#allocation5_spill] sm:$0xff] %v6284_v55 }
  0xd8   : > { %v5249_v47 = vpop.f32.mrf.mxu0 }
  0xd9   : > { %v6275_v51 = vadd.f32 %v5249_v47, %v6272_v50  ;;  %8627 = vst [vmem:[#allocation3_spill] sm:$0xff] %v6278_v53 }
  0xda   : > { %v826_v52 = vpop.f32.mrf.mxu0 }
  0xdb   : > { %8626 = vst [vmem:[#allocation2_spill] sm:$0xff] %v6275_v51  ;;  %v6281_v54 = vadd.f32 %v6272_v50, %v826_v52  ;;  %v1079_v60 = vpack.c.bf16 %v6275_v51, %v6284_v55 }
  0xdc   : > { %v5252_v56 = vpop.f32.mrf.mxu0 }
  0xdd   : > { %8628 = vst [vmem:[#allocation4_spill] sm:$0xff] %v6281_v54  ;;  %v1078_v58 = vpack.c.bf16 %v6281_v54, %v6278_v53  ;;  %v6306_v3 = vadd.f32 %v5252_v56, %v6272_v50 }
  0xde   : > { %v839_v59 = vpop.f32.mrf.mxu0 }
  0xdf   : > { %5326 = vmatprep.mubr.bf16.mxu1 %v1078_v58  ;;  %v6300_v1 = vadd.f32 %v6272_v50, %v839_v59  ;;  %8633 = vst [vmem:[#allocation9_spill] sm:$0xff] %v6306_v3 }
  0xe0   : > { %v5253_v61 = vpop.f32.mrf.mxu0  ;;  %5327 = vmatmul.mubr.bf16.vlgmr.msra.gmra.mxu1 %v1079_v60 }
  0xe1   : > { %v6297_v63 = vadd.f32 %v5253_v61, %v6272_v50  ;;  %8631 = vst [vmem:[#allocation7_spill] sm:$0xff] %v6300_v1 }
  0xe2   : > { %v842_v0 = vpop.f32.mrf.mxu0 }
  0xe3   : > { %8630 = vst [vmem:[#allocation6_spill] sm:$0xff] %v6297_v63  ;;  %v6303_v2 = vadd.f32 %v6272_v50, %v842_v0  ;;  %v1081_v8 = vpack.c.bf16 %v6297_v63, %v6306_v3 }
  0xe4   : > { %v5256_v4 = vpop.f32.mrf.mxu0 }
  0xe5   : > { %8632 = vst [vmem:[#allocation8_spill] sm:$0xff] %v6303_v2  ;;  %v1080_v6 = vpack.c.bf16 %v6303_v2, %v6300_v1  ;;  %v6325_v14 = vadd.f32 %v5256_v4, %v6272_v50 }
  0xe6   : > { %v855_v7 = vpop.f32.mrf.mxu0 }
  0xe7   : > { %5330 = vmatprep.mubr.bf16.mxu1 %v1080_v6  ;;  %v6319_v12 = vadd.f32 %v6272_v50, %v855_v7  ;;  %8636 = vst [vmem:[#allocation12_spill] sm:$0xff] %v6325_v14 }
  0xe8   : > { %v5257_v9 = vpop.f32.mrf.mxu0  ;;  %5331 = vmatmul.mubr.bf16.gmra.mxu1 %v1081_v8 }
  0xe9   : > { %v6316_v10 = vadd.f32 %v5257_v9, %v6272_v50  ;;  %8634 = vst [vmem:[#allocation10_spill] sm:$0xff] %v6319_v12 }
  0xea   : > { %v858_v11 = vpop.f32.mrf.mxu0 }
  0xeb   : > { %v6322_v13 = vadd.f32 %v6272_v50, %v858_v11  ;;  %v1083_v18 = vpack.c.bf16 %v6316_v10, %v6325_v14 }
  0xec   : > { %v5260_v15 = vpop.f32.mrf.mxu0 }
  0xed   : > { %8635 = vst [vmem:[#allocation11_spill] sm:$0xff] %v6322_v13  ;;  %v1082_v16 = vpack.c.bf16 %v6322_v13, %v6319_v12  ;;  %v6341_v24 = vadd.f32 %v5260_v15, %v6272_v50 }
  0xee   : > { %v871_v17 = vpop.f32.mrf.mxu0 }
  0xef   : > { %5334 = vmatprep.mubr.bf16.mxu1 %v1082_v16  ;;  %v6335_v22 = vadd.f32 %v6272_v50, %v871_v17  ;;  %8640 = vst [vmem:[#allocation16_spill] sm:$0xff] %v6341_v24 }
  0xf0   : > { %v5261_v19 = vpop.f32.mrf.mxu0  ;;  %5335 = vmatmul.mubr.bf16.gmra.mxu1 %v1083_v18 }
  0xf1   : > { %v6332_v20 = vadd.f32 %v5261_v19, %v6272_v50  ;;  %8638 = vst [vmem:[#allocation14_spill] sm:$0xff] %v6335_v22 }
  0xf2   : > { %v874_v21 = vpop.f32.mrf.mxu0 }
  0xf3   : > { %8637 = vst [vmem:[#allocation13_spill] sm:$0xff] %v6332_v20  ;;  %v6338_v23 = vadd.f32 %v6272_v50, %v874_v21  ;;  %v1085_v28 = vpack.c.bf16 %v6332_v20, %v6341_v24 }
  0xf4   : > { %v5264_v25 = vpop.f32.mrf.mxu0 }
  0xf5   : > { %8639 = vst [vmem:[#allocation15_spill] sm:$0xff] %v6338_v23  ;;  %v1084_v26 = vpack.c.bf16 %v6338_v23, %v6335_v22  ;;  %v6357_v34 = vadd.f32 %v5264_v25, %v6272_v50 }
  0xf6   : > { %v887_v27 = vpop.f32.mrf.mxu0 }
  0xf7   : > { %5338 = vmatprep.mubr.bf16.mxu1 %v1084_v26  ;;  %v6351_v32 = vadd.f32 %v6272_v50, %v887_v27  ;;  %8644 = vst [vmem:[#allocation20_spill] sm:$0xff] %v6357_v34 }
  0xf8   : > { %v5265_v29 = vpop.f32.mrf.mxu0  ;;  %5339 = vmatmul.mubr.bf16.gmra.mxu1 %v1085_v28 }
  0xf9   : > { %v6348_v30 = vadd.f32 %v5265_v29, %v6272_v50  ;;  %8642 = vst [vmem:[#allocation18_spill] sm:$0xff] %v6351_v32 }
  0xfa   : > { %v890_v31 = vpop.f32.mrf.mxu0 }
  0xfb   : > { %8641 = vst [vmem:[#allocation17_spill] sm:$0xff] %v6348_v30  ;;  %v6354_v33 = vadd.f32 %v6272_v50, %v890_v31  ;;  %v1087_v38 = vpack.c.bf16 %v6348_v30, %v6357_v34 }
  0xfc   : > { %v5268_v35 = vpop.f32.mrf.mxu0 }
  0xfd   : > { %8643 = vst [vmem:[#allocation19_spill] sm:$0xff] %v6354_v33  ;;  %v1086_v36 = vpack.c.bf16 %v6354_v33, %v6351_v32  ;;  %v6373_v44 = vadd.f32 %v5268_v35, %v6272_v50 }
  0xfe   : > { %v903_v37 = vpop.f32.mrf.mxu0 }
  0xff   : > { %5342 = vmatprep.mubr.bf16.mxu1 %v1086_v36  ;;  %v6367_v42 = vadd.f32 %v6272_v50, %v903_v37  ;;  %8648 = vst [vmem:[#allocation24_spill] sm:$0xff] %v6373_v44 }
 0x100   : > { %v5269_v39 = vpop.f32.mrf.mxu0  ;;  %5343 = vmatmul.mubr.bf16.gmra.mxu1 %v1087_v38 }
 0x101   : > { %v6364_v40 = vadd.f32 %v5269_v39, %v6272_v50  ;;  %8646 = vst [vmem:[#allocation22_spill] sm:$0xff] %v6367_v42 }
 0x102   : > { %v906_v41 = vpop.f32.mrf.mxu0 }
 0x103   : > { %8645 = vst [vmem:[#allocation21_spill] sm:$0xff] %v6364_v40  ;;  %v6370_v43 = vadd.f32 %v6272_v50, %v906_v41  ;;  %v1089_v48 = vpack.c.bf16 %v6364_v40, %v6373_v44 }
 0x104   : > { %v5272_v45 = vpop.f32.mrf.mxu0 }
 0x105   : > { %8647 = vst [vmem:[#allocation23_spill] sm:$0xff] %v6370_v43  ;;  %v1088_v46 = vpack.c.bf16 %v6370_v43, %v6367_v42  ;;  %v6389_v59 = vadd.f32 %v5272_v45, %v6272_v50 }
 0x106   : > { %v919_v47 = vpop.f32.mrf.mxu0 }
 0x107   : > { %5346 = vmatprep.mubr.bf16.mxu1 %v1088_v46  ;;  %v6383_v57 = vadd.f32 %v6272_v50, %v919_v47  ;;  %8652 = vst [vmem:[#allocation28_spill] sm:$0xff] %v6389_v59 }
 0x108   : > { %v5273_v49 = vpop.f32.mrf.mxu0  ;;  %5347 = vmatmul.mubr.bf16.gmra.mxu1 %v1089_v48 }
 0x109   : > { %v6380_v52 = vadd.f32 %v5273_v49, %v6272_v50  ;;  %8650 = vst [vmem:[#allocation26_spill] sm:$0xff] %v6383_v57 }
 0x10a   : > { %v922_v56 = vpop.f32.mrf.mxu0 }
 0x10b   : > { %8649 = vst [vmem:[#allocation25_spill] sm:$0xff] %v6380_v52  ;;  %v6386_v58 = vadd.f32 %v6272_v50, %v922_v56  ;;  %v1091_v0 = vpack.c.bf16 %v6380_v52, %v6389_v59 }
 0x10c   : > { %v5276_v60 = vpop.f32.mrf.mxu0 }
 0x10d   : > { %8651 = vst [vmem:[#allocation27_spill] sm:$0xff] %v6386_v58  ;;  %v1090_v61 = vpack.c.bf16 %v6386_v58, %v6383_v57  ;;  %v6405_v9 = vadd.f32 %v5276_v60, %v6272_v50 }
 0x10e   : > { %v935_v62 = vpop.f32.mrf.mxu0 }
 0x10f   : > { %5350 = vmatprep.mubr.bf16.mxu1 %v1090_v61  ;;  %v6399_v7 = vadd.f32 %v6272_v50, %v935_v62  ;;  %8656 = vst [vmem:[#allocation32_spill] sm:$0xff] %v6405_v9 }
 0x110   : > { %v5277_v4 = vpop.f32.mrf.mxu0  ;;  %5351 = vmatmul.mubr.bf16.gmra.mxu1 %v1091_v0 }
 0x111   : > { %v6396_v5 = vadd.f32 %v5277_v4, %v6272_v50  ;;  %8654 = vst [vmem:[#allocation30_spill] sm:$0xff] %v6399_v7 }
 0x112   : > { %v938_v6 = vpop.f32.mrf.mxu0 }
 0x113   : > { %8653 = vst [vmem:[#allocation29_spill] sm:$0xff] %v6396_v5  ;;  %v6402_v8 = vadd.f32 %v6272_v50, %v938_v6  ;;  %v1093_v17 = vpack.c.bf16 %v6396_v5, %v6405_v9 }
 0x114   : > { %v5280_v11 = vpop.f32.mrf.mxu0 }
 0x115   : > { %8655 = vst [vmem:[#allocation31_spill] sm:$0xff] %v6402_v8  ;;  %v1092_v15 = vpack.c.bf16 %v6402_v8, %v6399_v7  ;;  %v6421_v27 = vadd.f32 %v5280_v11, %v6272_v50 }
 0x116   : > { %v951_v16 = vpop.f32.mrf.mxu0 }
 0x117   : > { %5354 = vmatprep.mubr.bf16.mxu1 %v1092_v15  ;;  %v6415_v25 = vadd.f32 %v6272_v50, %v951_v16  ;;  %8660 = vst [vmem:[#allocation36_spill] sm:$0xff] %v6421_v27 }
 0x118   : > { %v5281_v18 = vpop.f32.mrf.mxu0  ;;  %5355 = vmatmul.mubr.bf16.gmra.mxu1 %v1093_v17 }
 0x119   : > { %v6412_v19 = vadd.f32 %v5281_v18, %v6272_v50  ;;  %8658 = vst [vmem:[#allocation34_spill] sm:$0xff] %v6415_v25 }
 0x11a   : > { %v954_v21 = vpop.f32.mrf.mxu0 }
 0x11b   : > { %8657 = vst [vmem:[#allocation33_spill] sm:$0xff] %v6412_v19  ;;  %v6418_v26 = vadd.f32 %v6272_v50, %v954_v21  ;;  %v1095_v35 = vpack.c.bf16 %v6412_v19, %v6421_v27 }
 0x11c   : > { %v5284_v28 = vpop.f32.mrf.mxu0 }
 0x11d   : > { %8659 = vst [vmem:[#allocation35_spill] sm:$0xff] %v6418_v26  ;;  %v1094_v29 = vpack.c.bf16 %v6418_v26, %v6415_v25  ;;  %v6437_v45 = vadd.f32 %v5284_v28, %v6272_v50 }
 0x11e   : > { %v967_v31 = vpop.f32.mrf.mxu0 }
 0x11f   : > { %5358 = vmatprep.mubr.bf16.mxu1 %v1094_v29  ;;  %v6431_v39 = vadd.f32 %v6272_v50, %v967_v31  ;;  %8663 = vst [vmem:[#allocation39_spill] sm:$0xff] %v6437_v45 }
 0x120   : > { %v5285_v36 = vpop.f32.mrf.mxu0  ;;  %5359 = vmatmul.mubr.bf16.gmra.mxu1 %v1095_v35 }
 0x121   : > { %v6428_v37 = vadd.f32 %v5285_v36, %v6272_v50  ;;  %8661 = vst [vmem:[#allocation37_spill] sm:$0xff] %v6431_v39 }
 0x122   : > { %v970_v38 = vpop.f32.mrf.mxu0 }
 0x123   : > { %v6434_v41 = vadd.f32 %v6272_v50, %v970_v38  ;;  %v1097_v49 = vpack.c.bf16 %v6428_v37, %v6437_v45 }
 0x124   : > { %v5288_v46 = vpop.f32.mrf.mxu0 }
 0x125   : > { %8662 = vst [vmem:[#allocation38_spill] sm:$0xff] %v6434_v41  ;;  %v1096_v47 = vpack.c.bf16 %v6434_v41, %v6431_v39  ;;  %v6453_v4 = vadd.f32 %v5288_v46, %v6272_v50 }
 0x126   : > { %v983_v48 = vpop.f32.mrf.mxu0 }
 0x127   : > { %5362 = vmatprep.mubr.bf16.mxu1 %v1096_v47  ;;  %v6447_v62 = vadd.f32 %v6272_v50, %v983_v48  ;;  %8667 = vst [vmem:[#allocation43_spill] sm:$0xff] %v6453_v4 }
 0x128   : > { %v5289_v56 = vpop.f32.mrf.mxu0  ;;  %5363 = vmatmul.mubr.bf16.gmra.mxu1 %v1097_v49 }
 0x129   : > { %v6444_v60 = vadd.f32 %v5289_v56, %v6272_v50  ;;  %8665 = vst [vmem:[#allocation41_spill] sm:$0xff] %v6447_v62 }
 0x12a   : > { %v986_v61 = vpop.f32.mrf.mxu0 }
 0x12b   : > { %8664 = vst [vmem:[#allocation40_spill] sm:$0xff] %v6444_v60  ;;  %v6450_v0 = vadd.f32 %v6272_v50, %v986_v61  ;;  %v1099_v16 = vpack.c.bf16 %v6444_v60, %v6453_v4 }
 0x12c   : > { %v5292_v6 = vpop.f32.mrf.mxu0 }
 0x12d   : > { %8666 = vst [vmem:[#allocation42_spill] sm:$0xff] %v6450_v0  ;;  %v1098_v11 = vpack.c.bf16 %v6450_v0, %v6447_v62  ;;  %v6469_v31 = vadd.f32 %v5292_v6, %v6272_v50 }
 0x12e   : > { %v999_v15 = vpop.f32.mrf.mxu0 }
 0x12f   : > { %5366 = vmatprep.mubr.bf16.mxu1 %v1098_v11  ;;  %v6463_v28 = vadd.f32 %v6272_v50, %v999_v15  ;;  %8671 = vst [vmem:[#allocation47_spill] sm:$0xff] %v6469_v31 }
 0x130   : > { %v5293_v17 = vpop.f32.mrf.mxu0  ;;  %5367 = vmatmul.mubr.bf16.gmra.mxu1 %v1099_v16 }
 0x131   : > { %v6460_v18 = vadd.f32 %v5293_v17, %v6272_v50  ;;  %8669 = vst [vmem:[#allocation45_spill] sm:$0xff] %v6463_v28 }
 0x132   : > { %v1002_v21 = vpop.f32.mrf.mxu0 }
 0x133   : > { %8668 = vst [vmem:[#allocation44_spill] sm:$0xff] %v6460_v18  ;;  %v6466_v29 = vadd.f32 %v6272_v50, %v1002_v21  ;;  %v1101_v46 = vpack.c.bf16 %v6460_v18, %v6469_v31 }
 0x134   : > { %v5296_v35 = vpop.f32.mrf.mxu0 }
 0x135   : > { %8670 = vst [vmem:[#allocation46_spill] sm:$0xff] %v6466_v29  ;;  %v1100_v36 = vpack.c.bf16 %v6466_v29, %v6463_v28  ;;  %v6485_v6 = vadd.f32 %v5296_v35, %v6272_v50 }
 0x136   : > { %v1015_v38 = vpop.f32.mrf.mxu0 }
 0x137   : > { %5370 = vmatprep.mubr.bf16.mxu1 %v1100_v36  ;;  %v6479_v56 = vadd.f32 %v6272_v50, %v1015_v38  ;;  %8675 = vst [vmem:[#allocation51_spill] sm:$0xff] %v6485_v6 }
 0x138   : > { %v5297_v47 = vpop.f32.mrf.mxu0  ;;  %5371 = vmatmul.mubr.bf16.gmra.mxu1 %v1101_v46 }
 0x139   : > { %v6476_v48 = vadd.f32 %v5297_v47, %v6272_v50  ;;  %8673 = vst [vmem:[#allocation49_spill] sm:$0xff] %v6479_v56 }
 0x13a   : > { %v1018_v49 = vpop.f32.mrf.mxu0 }
 0x13b   : > { %8672 = vst [vmem:[#allocation48_spill] sm:$0xff] %v6476_v48  ;;  %v6482_v61 = vadd.f32 %v6272_v50, %v1018_v49  ;;  %v1103_v17 = vpack.c.bf16 %v6476_v48, %v6485_v6 }
 0x13c   : > { %v5300_v11 = vpop.f32.mrf.mxu0 }
 0x13d   : > { %8674 = vst [vmem:[#allocation50_spill] sm:$0xff] %v6482_v61  ;;  %v1102_v15 = vpack.c.bf16 %v6482_v61, %v6479_v56  ;;  %v6501_v47 = vadd.f32 %v5300_v11, %v6272_v50 }
 0x13e   : > { %v1031_v16 = vpop.f32.mrf.mxu0 }
 0x13f   : > { %5374 = vmatprep.mubr.bf16.mxu1 %v1102_v15  ;;  %v6495_v46 = vadd.f32 %v6272_v50, %v1031_v16  ;;  %8679 = vst [vmem:[#allocation55_spill] sm:$0xff] %v6501_v47 }
 0x140   : > { %v5301_v21 = vpop.f32.mrf.mxu0  ;;  %5375 = vmatmul.mubr.bf16.gmra.mxu1 %v1103_v17 }
 0x141   : > { %v6492_v36 = vadd.f32 %v5301_v21, %v6272_v50  ;;  %8677 = vst [vmem:[#allocation53_spill] sm:$0xff] %v6495_v46 }
 0x142   : > { %v1034_v38 = vpop.f32.mrf.mxu0 }
 0x143   : > { %8676 = vst [vmem:[#allocation52_spill] sm:$0xff] %v6492_v36  ;;  %v6498_v35 = vadd.f32 %v6272_v50, %v1034_v38  ;;  %v1105_v17 = vpack.c.bf16 %v6492_v36, %v6501_v47 }
 0x144   : > { %v5304_v49 = vpop.f32.mrf.mxu0 }
 0x145   : > { %8678 = vst [vmem:[#allocation54_spill] sm:$0xff] %v6498_v35  ;;  %v1104_v6 = vpack.c.bf16 %v6498_v35, %v6495_v46  ;;  %v6517_v56 = vadd.f32 %v5304_v49, %v6272_v50 }
 0x146   : > { %v1047_v15 = vpop.f32.mrf.mxu0 }
 0x147   : > { %5378 = vmatprep.mubr.bf16.mxu1 %v1104_v6  ;;  %v6511_v38 = vadd.f32 %v6272_v50, %v1047_v15  ;;  %8683 = vst [vmem:[#allocation59_spill] sm:$0xff] %v6517_v56 }
 0x148   : > { %v5305_v21 = vpop.f32.mrf.mxu0  ;;  %5379 = vmatmul.mubr.bf16.gmra.mxu1 %v1105_v17 }
 0x149   : > { %v6508_v16 = vadd.f32 %v5305_v21, %v6272_v50  ;;  %8681 = vst [vmem:[#allocation57_spill] sm:$0xff] %v6511_v38 }
 0x14a   : > { %v1050_v61 = vpop.f32.mrf.mxu0 }
 0x14b   : > { %8680 = vst [vmem:[#allocation56_spill] sm:$0xff] %v6508_v16  ;;  %v6514_v11 = vadd.f32 %v6272_v50, %v1050_v61  ;;  %v1107_v17 = vpack.c.bf16 %v6508_v16, %v6517_v56 }
 0x14c   : > { %v5308_v35 = vpop.f32.mrf.mxu0 }
 0x14d   : > { %8682 = vst [vmem:[#allocation58_spill] sm:$0xff] %v6514_v11  ;;  %v1106_v47 = vpack.c.bf16 %v6514_v11, %v6511_v38  ;;  %v6533_v36 = vadd.f32 %v5308_v35, %v6272_v50  ;;  %v6548_v35 = vld [vmem:[%s8446_s4] ss:$0 sm:$0xff] }
 0x14e   : > { %v1063_v6 = vpop.f32.mrf.mxu0 }
 0x14f   : > { %5382 = vmatprep.mubr.bf16.mxu1 %v1106_v47  ;;  %v6527_v61 = vadd.f32 %v6272_v50, %v1063_v6  ;;  %8687 = vst [vmem:[#allocation63_spill] sm:$0xff] %v6533_v36 }
 0x150   : > { %v5309_v21 = vpop.f32.mrf.mxu0  ;;  %5383 = vmatmul.mubr.bf16.gmra.mxu1 %v1107_v17  ;;  %v5784_v17 = vld [vmem:[%s8449_s7 + $0x38] sm:$0xff]  }
 0x151   : > { %v6524_v15 = vadd.f32 %v5309_v21, %v6272_v50  ;;  %8685 = vst [vmem:[#allocation61_spill] sm:$0xff] %v6527_v61  ;;  %5470 = vmatprep.subr.bf16.mxu1 %v5784_v17  ;;  %v5786_v21 = vld [vmem:[%s8449_s7 + $0x28] sm:$0xff]  }
 0x152   : > { %v1066_v46 = vpop.f32.mrf.mxu0  ;;  %5471 = vmatpush3.bf16.msra.mxu1 %v5784_v17 }
 0x153   : > { %8684 = vst [vmem:[#allocation60_spill] sm:$0xff] %v6524_v15  ;;  %v6530_v49 = vadd.f32 %v6272_v50, %v1066_v46  ;;  %v1109_v47 = vpack.c.bf16 %v6524_v15, %v6533_v36  ;;  %v5785_v46 = vld [vmem:[%s8449_s7 + $0x30] sm:$0xff]  }
 0x154   : > { %5472 = vmatprep.subr.bf16.mxu1 %v5785_v46 }
 0x155   : > { %8686 = vst [vmem:[#allocation62_spill] sm:$0xff] %v6530_v49  ;;  %v1108_v11 = vpack.c.bf16 %v6530_v49, %v6527_v61 }
 0x156   : > { %5473 = vmatpush3.bf16.msra.mxu1 %v5785_v46 }
 0x157   : > { %5386 = vmatprep.mubr.bf16.mxu1 %v1108_v11  ;;  %5474 = vmatprep.subr.bf16.mxu1 %v5786_v21 }
 0x158   : > { %5387 = vmatmul.mubr.bf16.gmra.mxu1 %v1109_v47 }
 0x15a   : > { %5475 = vmatpush3.bf16.msra.mxu1 %v5786_v21 }
 0x1a0   : > { %v5328_v50 = vpop.f32.mrf.mxu1 }
 0x1a1   : > { %v1224_v47 = vadd.f32 %v5328_v50, %v6548_v35  ;;  %v5788_v50 = vld [vmem:[%s8449_s7 + $0x18] sm:$0xff]  }
 0x1a2   : > { %v1215_v11 = vpop.f32.mrf.mxu1 }
 0x1a3   : > { %v1216_v6 = vadd.f32 %v6548_v35, %v1215_v11  ;;  %v1472_v56 = vmax.f32 %v1224_v47, 0.0  ;;  %v5787_v11 = vld [vmem:[%s8449_s7 + $0x20] sm:$0xff]  }
 0x1a4   : > { %v5329_v17 = vpop.f32.mrf.mxu1  ;;  %5476 = vmatprep.subr.bf16.mxu1 %v5787_v11 }
 0x1a5   : > { %v1227_v36 = vadd.f32 %v5329_v17, %v6548_v35  ;;  %v1470_v49 = vmax.f32 %v1216_v6, 0.0  ;;  %5477 = vmatpush3.bf16.msra.mxu1 %v5787_v11  ;;  %v6574_v47 = vadd.f32 %v1472_v56, %v6284_v55 }
 0x1a6   : > { %v1218_v46 = vpop.f32.mrf.mxu1  ;;  %5478 = vmatprep.subr.bf16.mxu1 %v5788_v50 }
 0x1a7   : > { %v1473_v61 = vmax.f32 %v1227_v36, 0.0  ;;  %v1219_v15 = vadd.f32 %v6548_v35, %v1218_v46  ;;  %v6567_v36 = vadd.f32 %v1470_v49, %v6278_v53  ;;  %8689 = vst [vmem:[#allocation65_spill] sm:$0xff] %v6574_v47 }
 0x1a8   : > { %v5332_v38 = vpop.f32.mrf.mxu1 }
 0x1a9   : > { %v1471_v16 = vmax.f32 %v1219_v15, 0.0  ;;  %v6564_v17 = vadd.f32 %v1473_v61, %v6275_v51  ;;  %v1240_v46 = vadd.f32 %v5332_v38, %v6548_v35  ;;  %v5789_v61 = vld [vmem:[%s8449_s7 + $0x10] sm:$0xff]   ;;  %5479 = vmatpush3.bf16.msra.mxu1 %v5788_v50 }
 0x1aa   : > { %v1231_v48 = vpop.f32.mrf.mxu1  ;;  %5480 = vmatprep.subr.bf16.mxu1 %v5789_v61 }
 0x1ab   : > { %v6570_v6 = vadd.f32 %v1471_v16, %v6281_v54  ;;  %v1232_v21 = vadd.f32 %v6548_v35, %v1231_v48  ;;  %v1599_v48 = vpack.c.bf16 %v6564_v17, %v6574_v47  ;;  %v1476_v38 = vmax.f32 %v1240_v46, 0.0 }
 0x1ac   : > { %v5333_v15 = vpop.f32.mrf.mxu1 }
 0x1ad   : > { %8688 = vst [vmem:[#allocation64_spill] sm:$0xff] %v6570_v6  ;;  %v1243_v49 = vadd.f32 %v5333_v15, %v6548_v35  ;;  %v1598_v16 = vpack.c.bf16 %v6570_v6, %v6567_v36  ;;  %v1474_v54 = vmax.f32 %v1232_v21, 0.0  ;;  %v5790_v15 = vld [vmem:[%s8449_s7 + $0x8] sm:$0xff]   ;;  %5481 = vmatpush3.bf16.msra.mxu1 %v5789_v61  ;;  %v6600_v46 = vadd.f32 %v1476_v38, %v6306_v3 }
 0x1ae   : > { %v1234_v11 = vpop.f32.mrf.mxu1  ;;  %5482 = vmatprep.subr.bf16.mxu1 %v5790_v15 }
 0x1af   : > { %v1477_v56 = vmax.f32 %v1243_v49, 0.0  ;;  %v1235_v55 = vadd.f32 %v6548_v35, %v1234_v11  ;;  %5406 = vmatprep.mubr.bf16.mxu0 %v1598_v16  ;;  %v6593_v21 = vadd.f32 %v1474_v54, %v6300_v1 }
 0x1b0   : > { %v5336_v53 = vpop.f32.mrf.mxu1  ;;  %5407 = vmatmul.mubr.bf16.vlgmr.msra.gmra.mxu0 %v1599_v48 }
 0x1b1   : > { %v1475_v51 = vmax.f32 %v1235_v55, 0.0  ;;  %v6590_v6 = vadd.f32 %v1477_v56, %v6297_v63  ;;  %v1256_v16 = vadd.f32 %v5336_v53, %v6548_v35  ;;  %5483 = vmatpush3.bf16.msra.mxu1 %v5790_v15 }
 0x1b2   : > { %v1247_v47 = vpop.f32.mrf.mxu1 }
 0x1b3   : > { %v6596_v49 = vadd.f32 %v1475_v51, %v6303_v2  ;;  %v1248_v50 = vadd.f32 %v6548_v35, %v1247_v47  ;;  %v1601_v51 = vpack.c.bf16 %v6590_v6, %v6600_v46  ;;  %v1480_v61 = vmax.f32 %v1256_v16, 0.0 }
 0x1b4   : > { %v5337_v48 = vpop.f32.mrf.mxu1 }
 0x1b5   : > { %v1259_v55 = vadd.f32 %v5337_v48, %v6548_v35  ;;  %v1600_v11 = vpack.c.bf16 %v6596_v49, %v6593_v21  ;;  %v1478_v56 = vmax.f32 %v1248_v50, 0.0 }
 0x1b6   : > { %v1250_v54 = vpop.f32.mrf.mxu1 }
 0x1b7   : > { %v1481_v1 = vmax.f32 %v1259_v55, 0.0  ;;  %v1251_v47 = vadd.f32 %v6548_v35, %v1250_v54  ;;  %5410 = vmatprep.mubr.bf16.mxu0 %v1600_v11  ;;  %v6613_v2 = vadd.f32 %v1478_v56, %v6319_v12  ;;  %v6620_v55 = vadd.f32 %v1480_v61, %v6325_v14 }
 0x1b8   : > { %v5340_v38 = vpop.f32.mrf.mxu1  ;;  %5411 = vmatmul.mubr.bf16.gmra.mxu0 %v1601_v51 }
 0x1b9   : > { %v1479_v53 = vmax.f32 %v1251_v47, 0.0  ;;  %v6610_v3 = vadd.f32 %v1481_v1, %v6316_v10  ;;  %v1272_v15 = vadd.f32 %v5340_v38, %v6548_v35 }
 0x1ba   : > { %v1263_v48 = vpop.f32.mrf.mxu1 }
 0x1bb   : > { %v6616_v63 = vadd.f32 %v1479_v53, %v6322_v13  ;;  %v1264_v50 = vadd.f32 %v6548_v35, %v1263_v48  ;;  %v1603_v51 = vpack.c.bf16 %v6610_v3, %v6620_v55  ;;  %v1484_v48 = vmax.f32 %v1272_v15, 0.0 }
 0x1bc   : > { %v5341_v16 = vpop.f32.mrf.mxu1 }
 0x1bd   : > { %v1275_v11 = vadd.f32 %v5341_v16, %v6548_v35  ;;  %v1602_v1 = vpack.c.bf16 %v6616_v63, %v6613_v2  ;;  %v1482_v56 = vmax.f32 %v1264_v50, 0.0 }
 0x1be   : > { %v1266_v54 = vpop.f32.mrf.mxu1 }
 0x1bf   : > { %v1485_v47 = vmax.f32 %v1275_v11, 0.0  ;;  %v1267_v53 = vadd.f32 %v6548_v35, %v1266_v54  ;;  %5414 = vmatprep.mubr.bf16.mxu0 %v1602_v1  ;;  %v6633_v12 = vadd.f32 %v1482_v56, %v6335_v22  ;;  %v6640_v11 = vadd.f32 %v1484_v48, %v6341_v24 }
 0x1c0   : > { %v5344_v61 = vpop.f32.mrf.mxu1  ;;  %5415 = vmatmul.mubr.bf16.gmra.mxu0 %v1603_v51 }
 0x1c1   : > { %v1483_v14 = vmax.f32 %v1267_v53, 0.0  ;;  %v6630_v38 = vadd.f32 %v1485_v47, %v6332_v20  ;;  %v1288_v15 = vadd.f32 %v5344_v61, %v6548_v35 }
 0x1c2   : > { %v1279_v16 = vpop.f32.mrf.mxu1 }
 0x1c3   : > { %v6636_v13 = vadd.f32 %v1483_v14, %v6338_v23  ;;  %v1280_v50 = vadd.f32 %v6548_v35, %v1279_v16  ;;  %v1605_v56 = vpack.c.bf16 %v6630_v38, %v6640_v11  ;;  %v1488_v16 = vmax.f32 %v1288_v15, 0.0 }
 0x1c4   : > { %v5345_v1 = vpop.f32.mrf.mxu1 }
 0x1c5   : > { %v1291_v54 = vadd.f32 %v5345_v1, %v6548_v35  ;;  %v1604_v51 = vpack.c.bf16 %v6636_v13, %v6633_v12  ;;  %v1486_v53 = vmax.f32 %v1280_v50, 0.0 }
 0x1c6   : > { %v1282_v47 = vpop.f32.mrf.mxu1 }
 0x1c7   : > { %v1489_v14 = vmax.f32 %v1291_v54, 0.0  ;;  %v1283_v22 = vadd.f32 %v6548_v35, %v1282_v47  ;;  %5418 = vmatprep.mubr.bf16.mxu0 %v1604_v51  ;;  %v6653_v23 = vadd.f32 %v1486_v53, %v6351_v32  ;;  %v6660_v54 = vadd.f32 %v1488_v16, %v6357_v34 }
 0x1c8   : > { %v5348_v48 = vpop.f32.mrf.mxu1  ;;  %5419 = vmatmul.mubr.bf16.gmra.mxu0 %v1605_v56 }
 0x1c9   : > { %v1487_v24 = vmax.f32 %v1283_v22, 0.0  ;;  %v6650_v61 = vadd.f32 %v1489_v14, %v6348_v30  ;;  %v1304_v15 = vadd.f32 %v5348_v48, %v6548_v35 }
 0x1ca   : > { %v1295_v1 = vpop.f32.mrf.mxu1 }
 0x1cb   : > { %v6656_v20 = vadd.f32 %v1487_v24, %v6354_v33  ;;  %v1296_v50 = vadd.f32 %v6548_v35, %v1295_v1  ;;  %v1607_v53 = vpack.c.bf16 %v6650_v61, %v6660_v54  ;;  %v1492_v1 = vmax.f32 %v1304_v15, 0.0 }
 0x1cc   : > { %v5349_v51 = vpop.f32.mrf.mxu1 }
 0x1cd   : > { %v1307_v22 = vadd.f32 %v5349_v51, %v6548_v35  ;;  %v1606_v47 = vpack.c.bf16 %v6656_v20, %v6653_v23  ;;  %v1490_v14 = vmax.f32 %v1296_v50, 0.0 }
 0x1ce   : > { %v1298_v56 = vpop.f32.mrf.mxu1 }
 0x1cf   : > { %v1493_v24 = vmax.f32 %v1307_v22, 0.0  ;;  %v1299_v32 = vadd.f32 %v6548_v35, %v1298_v56  ;;  %5422 = vmatprep.mubr.bf16.mxu0 %v1606_v47  ;;  %v6673_v33 = vadd.f32 %v1490_v14, %v6367_v42  ;;  %v6680_v22 = vadd.f32 %v1492_v1, %v6373_v44 }
 0x1d0   : > { %v5352_v16 = vpop.f32.mrf.mxu1  ;;  %5423 = vmatmul.mubr.bf16.gmra.mxu0 %v1607_v53 }
 0x1d1   : > { %v1491_v34 = vmax.f32 %v1299_v32, 0.0  ;;  %v6670_v48 = vadd.f32 %v1493_v24, %v6364_v40  ;;  %v1320_v15 = vadd.f32 %v5352_v16, %v6548_v35 }
 0x1d2   : > { %v1311_v51 = vpop.f32.mrf.mxu1 }
 0x1d3   : > { %v6676_v30 = vadd.f32 %v1491_v34, %v6370_v43  ;;  %v1312_v50 = vadd.f32 %v6548_v35, %v1311_v51  ;;  %v1609_v14 = vpack.c.bf16 %v6670_v48, %v6680_v22  ;;  %v1496_v51 = vmax.f32 %v1320_v15, 0.0 }
 0x1d4   : > { %v5353_v47 = vpop.f32.mrf.mxu1 }
 0x1d5   : > { %v1323_v32 = vadd.f32 %v5353_v47, %v6548_v35  ;;  %v1608_v56 = vpack.c.bf16 %v6676_v30, %v6673_v33  ;;  %v1494_v24 = vmax.f32 %v1312_v50, 0.0 }
 0x1d6   : > { %v1314_v53 = vpop.f32.mrf.mxu1 }
 0x1d7   : > { %v1497_v34 = vmax.f32 %v1323_v32, 0.0  ;;  %v1315_v42 = vadd.f32 %v6548_v35, %v1314_v53  ;;  %5426 = vmatprep.mubr.bf16.mxu0 %v1608_v56  ;;  %v6693_v43 = vadd.f32 %v1494_v24, %v6383_v57  ;;  %v6700_v32 = vadd.f32 %v1496_v51, %v6389_v59 }
 0x1d8   : > { %v5356_v1 = vpop.f32.mrf.mxu1  ;;  %5427 = vmatmul.mubr.bf16.gmra.mxu0 %v1609_v14 }
 0x1d9   : > { %v1495_v44 = vmax.f32 %v1315_v42, 0.0  ;;  %v6690_v16 = vadd.f32 %v1497_v34, %v6380_v52  ;;  %v1336_v15 = vadd.f32 %v5356_v1, %v6548_v35 }
 0x1da   : > { %v1327_v47 = vpop.f32.mrf.mxu1 }
 0x1db   : > { %v6696_v40 = vadd.f32 %v1495_v44, %v6386_v58  ;;  %v1328_v50 = vadd.f32 %v6548_v35, %v1327_v47  ;;  %v1611_v24 = vpack.c.bf16 %v6690_v16, %v6700_v32  ;;  %v1500_v47 = vmax.f32 %v1336_v15, 0.0 }
 0x1dc   : > { %v5357_v56 = vpop.f32.mrf.mxu1 }
 0x1dd   : > { %v1339_v42 = vadd.f32 %v5357_v56, %v6548_v35  ;;  %v1610_v53 = vpack.c.bf16 %v6696_v40, %v6693_v43  ;;  %v1498_v34 = vmax.f32 %v1328_v50, 0.0 }
 0x1de   : > { %v1330_v14 = vpop.f32.mrf.mxu1 }
 0x1df   : > { %v1501_v44 = vmax.f32 %v1339_v42, 0.0  ;;  %v1331_v57 = vadd.f32 %v6548_v35, %v1330_v14  ;;  %5430 = vmatprep.mubr.bf16.mxu0 %v1610_v53  ;;  %v6713_v58 = vadd.f32 %v1498_v34, %v6399_v7  ;;  %v6720_v42 = vadd.f32 %v1500_v47, %v6405_v9 }
 0x1e0   : > { %v5360_v51 = vpop.f32.mrf.mxu1  ;;  %5431 = vmatmul.mubr.bf16.gmra.mxu0 %v1611_v24 }
 0x1e1   : > { %v1499_v59 = vmax.f32 %v1331_v57, 0.0  ;;  %v6710_v1 = vadd.f32 %v1501_v44, %v6396_v5  ;;  %v1352_v15 = vadd.f32 %v5360_v51, %v6548_v35 }
 0x1e2   : > { %v1343_v56 = vpop.f32.mrf.mxu1 }
 0x1e3   : > { %v6716_v52 = vadd.f32 %v1499_v59, %v6402_v8  ;;  %v1344_v50 = vadd.f32 %v6548_v35, %v1343_v56  ;;  %v1613_v34 = vpack.c.bf16 %v6710_v1, %v6720_v42  ;;  %v1504_v56 = vmax.f32 %v1352_v15, 0.0 }
 0x1e4   : > { %v5361_v53 = vpop.f32.mrf.mxu1 }
 0x1e5   : > { %v1355_v57 = vadd.f32 %v5361_v53, %v6548_v35  ;;  %v1612_v14 = vpack.c.bf16 %v6716_v52, %v6713_v58  ;;  %v1502_v44 = vmax.f32 %v1344_v50, 0.0 }
 0x1e6   : > { %v1346_v24 = vpop.f32.mrf.mxu1 }
 0x1e7   : > { %v1505_v59 = vmax.f32 %v1355_v57, 0.0  ;;  %v1347_v7 = vadd.f32 %v6548_v35, %v1346_v24  ;;  %5434 = vmatprep.mubr.bf16.mxu0 %v1612_v14  ;;  %v6733_v8 = vadd.f32 %v1502_v44, %v6415_v25  ;;  %v6740_v57 = vadd.f32 %v1504_v56, %v6421_v27 }
 0x1e8   : > { %v5364_v47 = vpop.f32.mrf.mxu1  ;;  %5435 = vmatmul.mubr.bf16.gmra.mxu0 %v1613_v34 }
 0x1e9   : > { %v1503_v9 = vmax.f32 %v1347_v7, 0.0  ;;  %v6730_v51 = vadd.f32 %v1505_v59, %v6412_v19  ;;  %v1368_v15 = vadd.f32 %v5364_v47, %v6548_v35 }
 0x1ea   : > { %v1359_v53 = vpop.f32.mrf.mxu1 }
 0x1eb   : > { %v6736_v5 = vadd.f32 %v1503_v9, %v6418_v26  ;;  %v1360_v50 = vadd.f32 %v6548_v35, %v1359_v53  ;;  %v1615_v44 = vpack.c.bf16 %v6730_v51, %v6740_v57  ;;  %v1508_v53 = vmax.f32 %v1368_v15, 0.0 }
 0x1ec   : > { %v5365_v14 = vpop.f32.mrf.mxu1 }
 0x1ed   : > { %v1371_v7 = vadd.f32 %v5365_v14, %v6548_v35  ;;  %v1614_v24 = vpack.c.bf16 %v6736_v5, %v6733_v8  ;;  %v1506_v59 = vmax.f32 %v1360_v50, 0.0 }
 0x1ee   : > { %v1362_v34 = vpop.f32.mrf.mxu1 }
 0x1ef   : > { %v1509_v9 = vmax.f32 %v1371_v7, 0.0  ;;  %v1363_v25 = vadd.f32 %v6548_v35, %v1362_v34  ;;  %5438 = vmatprep.mubr.bf16.mxu0 %v1614_v24  ;;  %v6753_v26 = vadd.f32 %v1506_v59, %v6431_v39  ;;  %v6760_v7 = vadd.f32 %v1508_v53, %v6437_v45  ;;  %v5791_v53 = vld [vmem:[%s8449_s7] sm:$0xff]  }
 0x1f0   : > { %v5368_v56 = vpop.f32.mrf.mxu1  ;;  %5439 = vmatmul.mubr.bf16.gmra.mxu0 %v1615_v44  ;;  %5484 = vmatprep.subr.bf16.mxu1 %v5791_v53 }
 0x1f1   : > { %v1507_v27 = vmax.f32 %v1363_v25, 0.0  ;;  %v6750_v47 = vadd.f32 %v1509_v9, %v6428_v37  ;;  %v1384_v15 = vadd.f32 %v5368_v56, %v6548_v35  ;;  %5485 = vmatpush3.bf16.msra.mxu1 %v5791_v53 }
 0x1f2   : > { %v1375_v14 = vpop.f32.mrf.mxu1 }
 0x1f3   : > { %v6756_v19 = vadd.f32 %v1507_v27, %v6434_v41  ;;  %v1376_v50 = vadd.f32 %v6548_v35, %v1375_v14  ;;  %v1617_v59 = vpack.c.bf16 %v6750_v47, %v6760_v7  ;;  %v1512_v56 = vmax.f32 %v1384_v15, 0.0 }
 0x1f4   : > { %v5369_v24 = vpop.f32.mrf.mxu1 }
 0x1f5   : > { %v1387_v25 = vadd.f32 %v5369_v24, %v6548_v35  ;;  %v1616_v34 = vpack.c.bf16 %v6756_v19, %v6753_v26  ;;  %v1510_v9 = vmax.f32 %v1376_v50, 0.0 }
 0x1f6   : > { %v1378_v44 = vpop.f32.mrf.mxu1 }
 0x1f7   : > { %v1513_v27 = vmax.f32 %v1387_v25, 0.0  ;;  %v1379_v39 = vadd.f32 %v6548_v35, %v1378_v44  ;;  %5442 = vmatprep.mubr.bf16.mxu0 %v1616_v34  ;;  %v6776_v50 = vadd.f32 %v1510_v9, %v6447_v62  ;;  %v6783_v44 = vadd.f32 %v1512_v56, %v6453_v4 }
 0x1f8   : > { %v5372_v14 = vpop.f32.mrf.mxu1  ;;  %5443 = vmatmul.mubr.bf16.gmra.mxu0 %v1617_v59 }
 0x1f9   : > { %v1511_v24 = vmax.f32 %v1379_v39, 0.0  ;;  %v6773_v45 = vadd.f32 %v1513_v27, %v6444_v60  ;;  %8691 = vst [vmem:[#allocation67_spill] sm:$0xff] %v6783_v44  ;;  %v1400_v15 = vadd.f32 %v5372_v14, %v6548_v35 }
 0x1fa   : > { %v1391_v41 = vpop.f32.mrf.mxu1 }
 0x1fb   : > { %v6779_v25 = vadd.f32 %v1511_v24, %v6450_v0  ;;  %v1392_v34 = vadd.f32 %v6548_v35, %v1391_v41  ;;  %v1619_v9 = vpack.c.bf16 %v6773_v45, %v6783_v44  ;;  %v1516_v41 = vmax.f32 %v1400_v15, 0.0 }
 0x1fc   : > { %v5373_v39 = vpop.f32.mrf.mxu1 }
 0x1fd   : > { %8690 = vst [vmem:[#allocation66_spill] sm:$0xff] %v6779_v25  ;;  %v1403_v59 = vadd.f32 %v5373_v39, %v6548_v35  ;;  %v1618_v27 = vpack.c.bf16 %v6779_v25, %v6776_v50  ;;  %v1514_v62 = vmax.f32 %v1392_v34, 0.0 }
 0x1fe   : > { %v1394_v53 = vpop.f32.mrf.mxu1 }
 0x1ff   : > { %v1517_v24 = vmax.f32 %v1403_v59, 0.0  ;;  %v1395_v0 = vadd.f32 %v6548_v35, %v1394_v53  ;;  %5446 = vmatprep.mubr.bf16.mxu0 %v1618_v27  ;;  %v6796_v60 = vadd.f32 %v1514_v62, %v6463_v28  ;;  %v6803_v59 = vadd.f32 %v1516_v41, %v6469_v31 }
 0x200   : > { %v5376_v56 = vpop.f32.mrf.mxu1  ;;  %5447 = vmatmul.mubr.bf16.gmra.mxu0 %v1619_v9 }
 0x201   : > { %v1515_v4 = vmax.f32 %v1395_v0, 0.0  ;;  %v6793_v14 = vadd.f32 %v1517_v24, %v6460_v18  ;;  %8693 = vst [vmem:[#allocation69_spill] sm:$0xff] %v6796_v60  ;;  %8695 = vst [vmem:[#allocation71_spill] sm:$0xff] %v6803_v59  ;;  %v1416_v15 = vadd.f32 %v5376_v56, %v6548_v35  ;;  %v8696_v56 = vld [vmem:[#allocation48_spill] sm:$0xff]  ;;  %v8698_v18 = vld [vmem:[#allocation49_spill] sm:$0xff] }
 0x202   : > { %v1407_v39 = vpop.f32.mrf.mxu1 }
 0x203   : > { %8692 = vst [vmem:[#allocation68_spill] sm:$0xff] %v6793_v14  ;;  %v6799_v25 = vadd.f32 %v1515_v4, %v6466_v29  ;;  %v1408_v34 = vadd.f32 %v6548_v35, %v1407_v39  ;;  %v1621_v62 = vpack.c.bf16 %v6793_v14, %v6803_v59  ;;  %v1520_v39 = vmax.f32 %v1416_v15, 0.0 }
 0x204   : > { %v5377_v27 = vpop.f32.mrf.mxu1 }
 0x205   : > { %8694 = vst [vmem:[#allocation70_spill] sm:$0xff] %v6799_v25  ;;  %v1419_v0 = vadd.f32 %v5377_v27, %v6548_v35  ;;  %v1620_v53 = vpack.c.bf16 %v6799_v25, %v6796_v60  ;;  %v1518_v24 = vmax.f32 %v1408_v34, 0.0  ;;  %v8700_v25 = vld [vmem:[#allocation50_spill] sm:$0xff] }
 0x206   : > { %v1410_v9 = vpop.f32.mrf.mxu1 }
 0x207   : > { %v1521_v4 = vmax.f32 %v1419_v0, 0.0  ;;  %v1411_v28 = vadd.f32 %v6548_v35, %v1410_v9  ;;  %5450 = vmatprep.mubr.bf16.mxu0 %v1620_v53  ;;  %v6816_v44 = vadd.f32 %v1518_v24, %v8698_v18  ;;  %v8702_v0 = vld [vmem:[#allocation51_spill] sm:$0xff]  ;;  %v8705_v18 = vld [vmem:[#allocation53_spill] sm:$0xff] }
 0x208   : > { %v5380_v41 = vpop.f32.mrf.mxu1  ;;  %5451 = vmatmul.mubr.bf16.gmra.mxu0 %v1621_v62  ;;  %v6823_v59 = vadd.f32 %v1520_v39, %v8702_v0 }
 0x209   : > { %v1519_v31 = vmax.f32 %v1411_v28, 0.0  ;;  %v6813_v29 = vadd.f32 %v1521_v4, %v8696_v56  ;;  %8699 = vst [vmem:[#allocation73_spill] sm:$0xff] %v6816_v44  ;;  %v1432_v15 = vadd.f32 %v5380_v41, %v6548_v35  ;;  %v8704_v41 = vld [vmem:[#allocation52_spill] sm:$0xff] }
 0x20a   : > { %v1423_v27 = vpop.f32.mrf.mxu1  ;;  %8703 = vst [vmem:[#allocation75_spill] sm:$0xff] %v6823_v59 }
 0x20b   : > { %8697 = vst [vmem:[#allocation72_spill] sm:$0xff] %v6813_v29  ;;  %v6819_v60 = vadd.f32 %v1519_v31, %v8700_v25  ;;  %v1424_v34 = vadd.f32 %v6548_v35, %v1423_v27  ;;  %v1623_v62 = vpack.c.bf16 %v6813_v29, %v6823_v59  ;;  %v1524_v27 = vmax.f32 %v1432_v15, 0.0 }
 0x20c   : > { %v5381_v53 = vpop.f32.mrf.mxu1 }
 0x20d   : > { %8701 = vst [vmem:[#allocation74_spill] sm:$0xff] %v6819_v60  ;;  %v1435_v28 = vadd.f32 %v5381_v53, %v6548_v35  ;;  %v1622_v9 = vpack.c.bf16 %v6819_v60, %v6816_v44  ;;  %v1522_v4 = vmax.f32 %v1424_v34, 0.0  ;;  %v8707_v60 = vld [vmem:[#allocation54_spill] sm:$0xff] }
 0x20e   : > { %v1426_v24 = vpop.f32.mrf.mxu1 }
 0x20f   : > { %v1525_v31 = vmax.f32 %v1435_v28, 0.0  ;;  %v1427_v25 = vadd.f32 %v6548_v35, %v1426_v24  ;;  %5454 = vmatprep.mubr.bf16.mxu0 %v1622_v9  ;;  %v6836_v14 = vadd.f32 %v1522_v4, %v8705_v18  ;;  %v8709_v28 = vld [vmem:[#allocation55_spill] sm:$0xff] }
 0x210   : > { %v5384_v39 = vpop.f32.mrf.mxu1  ;;  %5455 = vmatmul.mubr.bf16.gmra.mxu0 %v1623_v62  ;;  %v6843_v59 = vadd.f32 %v1524_v27, %v8709_v28 }
 0x211   : > { %v1523_v0 = vmax.f32 %v1427_v25, 0.0  ;;  %v6833_v56 = vadd.f32 %v1525_v31, %v8704_v41  ;;  %8706 = vst [vmem:[#allocation76_spill] sm:$0xff] %v6836_v14  ;;  %v1448_v15 = vadd.f32 %v5384_v39, %v6548_v35  ;;  %v8711_v39 = vld [vmem:[#allocation56_spill] sm:$0xff]  ;;  %v8713_v41 = vld [vmem:[#allocation57_spill] sm:$0xff] }
 0x212   : > { %v1439_v53 = vpop.f32.mrf.mxu1  ;;  %8710 = vst [vmem:[#allocation78_spill] sm:$0xff] %v6843_v59 }
 0x213   : > { %v6839_v44 = vadd.f32 %v1523_v0, %v8707_v60  ;;  %v1440_v34 = vadd.f32 %v6548_v35, %v1439_v53  ;;  %v1625_v24 = vpack.c.bf16 %v6833_v56, %v6843_v59  ;;  %v1528_v53 = vmax.f32 %v1448_v15, 0.0 }
 0x214   : > { %v5385_v9 = vpop.f32.mrf.mxu1 }
 0x215   : > { %8708 = vst [vmem:[#allocation77_spill] sm:$0xff] %v6839_v44  ;;  %v1451_v25 = vadd.f32 %v5385_v9, %v6548_v35  ;;  %v1624_v62 = vpack.c.bf16 %v6839_v44, %v6836_v14  ;;  %v1526_v31 = vmax.f32 %v1440_v34, 0.0  ;;  %v8715_v44 = vld [vmem:[#allocation58_spill] sm:$0xff] }
 0x216   : > { %v1442_v4 = vpop.f32.mrf.mxu1 }
 0x217   : > { %v1529_v0 = vmax.f32 %v1451_v25, 0.0  ;;  %v1443_v18 = vadd.f32 %v6548_v35, %v1442_v4  ;;  %5458 = vmatprep.mubr.bf16.mxu0 %v1624_v62  ;;  %v6856_v29 = vadd.f32 %v1526_v31, %v8713_v41  ;;  %v8717_v25 = vld [vmem:[#allocation59_spill] sm:$0xff]  ;;  %v8723_v41 = vld [vmem:[#allocation62_spill] sm:$0xff] }
 0x218   : > { %v5388_v27 = vpop.f32.mrf.mxu1  ;;  %5459 = vmatmul.mubr.bf16.gmra.mxu0 %v1625_v24  ;;  %v6863_v59 = vadd.f32 %v1528_v53, %v8717_v25  ;;  %v8719_v25 = vld [vmem:[#allocation60_spill] sm:$0xff] }
 0x219   : > { %v1527_v28 = vmax.f32 %v1443_v18, 0.0  ;;  %v6853_v60 = vadd.f32 %v1529_v0, %v8711_v39  ;;  %8714 = vst [vmem:[#allocation80_spill] sm:$0xff] %v6856_v29  ;;  %v1464_v15 = vadd.f32 %v5388_v27, %v6548_v35  ;;  %v8721_v39 = vld [vmem:[#allocation61_spill] sm:$0xff] }
 0x21a   : > { %v1455_v9 = vpop.f32.mrf.mxu1  ;;  %8718 = vst [vmem:[#allocation82_spill] sm:$0xff] %v6863_v59 }
 0x21b   : > { %8712 = vst [vmem:[#allocation79_spill] sm:$0xff] %v6853_v60  ;;  %v6859_v14 = vadd.f32 %v1527_v28, %v8715_v44  ;;  %v1456_v34 = vadd.f32 %v6548_v35, %v1455_v9  ;;  %v1627_v4 = vpack.c.bf16 %v6853_v60, %v6863_v59  ;;  %v1532_v9 = vmax.f32 %v1464_v15, 0.0  ;;  %v5793_v15 = vld [vmem:[%s8451_s9 + $0x30] sm:$0xff]  }
 0x21c   : > { %v5389_v62 = vpop.f32.mrf.mxu1 }
 0x21d   : > { %8716 = vst [vmem:[#allocation81_spill] sm:$0xff] %v6859_v14  ;;  %v1467_v18 = vadd.f32 %v5389_v62, %v6548_v35  ;;  %v1626_v24 = vpack.c.bf16 %v6859_v14, %v6856_v29  ;;  %v1530_v0 = vmax.f32 %v1456_v34, 0.0  ;;  %v8725_v29 = vld [vmem:[#allocation63_spill] sm:$0xff] }
 0x21e   : > { %v1458_v31 = vpop.f32.mrf.mxu1  ;;  %v6882_v59 = vadd.f32 %v1532_v9, %v8725_v29 }
 0x21f   : > { %v1533_v28 = vmax.f32 %v1467_v18, 0.0  ;;  %v1459_v44 = vadd.f32 %v6548_v35, %v1458_v31  ;;  %5462 = vmatprep.mubr.bf16.mxu0 %v1626_v24  ;;  %v6876_v62 = vadd.f32 %v1530_v0, %v8721_v39  ;;  %v6897_v24 = vld [vmem:[%s8448_s6] ss:$0 sm:$0xff] }
 0x220   : > { %5463 = vmatmul.mubr.bf16.gmra.mxu0 %v1627_v4  ;;  %8726 = vst [vmem:[#allocation86_spill] sm:$0xff] %v6882_v59 }
 0x221   : > { %v1531_v53 = vmax.f32 %v1459_v44, 0.0  ;;  %v6873_v27 = vadd.f32 %v1533_v28, %v8719_v25  ;;  %8722 = vst [vmem:[#allocation84_spill] sm:$0xff] %v6876_v62  ;;  %v5792_v44 = vld [vmem:[%s8451_s9 + $0x38] sm:$0xff]  }
 0x222   : > { %5550 = vmatprep.subr.bf16.mxu0 %v5792_v44 }
 0x223   : > { %8720 = vst [vmem:[#allocation83_spill] sm:$0xff] %v6873_v27  ;;  %v6879_v14 = vadd.f32 %v1531_v53, %v8723_v41  ;;  %v1629_v35 = vpack.c.bf16 %v6873_v27, %v6882_v59  ;;  %5551 = vmatpush3.bf16.msra.mxu0 %v5792_v44 }
 0x224   : > { %5552 = vmatprep.subr.bf16.mxu0 %v5793_v15 }
 0x225   : > { %8724 = vst [vmem:[#allocation85_spill] sm:$0xff] %v6879_v14  ;;  %v1628_v34 = vpack.c.bf16 %v6879_v14, %v6876_v62  ;;  %v8728_v14 = vld [vmem:[#allocation64_spill] sm:$0xff] }
 0x227   : > { %5466 = vmatprep.mubr.bf16.mxu0 %v1628_v34  ;;  %5553 = vmatpush3.bf16.msra.mxu0 %v5793_v15 }
 0x228   : > { %5467 = vmatmul.mubr.bf16.gmra.mxu0 %v1629_v35  ;;  %v5794_v35 = vld [vmem:[%s8451_s9 + $0x28] sm:$0xff]  }
 0x229   : > { %5554 = vmatprep.subr.bf16.mxu0 %v5794_v35 }
 0x22b   : > { %5555 = vmatpush3.bf16.msra.mxu0 %v5794_v35 }
 0x270   : > { %v5408_v18 = vpop.f32.mrf.mxu0 }
 0x271   : > { %v1744_v31 = vadd.f32 %v5408_v18, %v6897_v24 }
 0x272   : > { %v1735_v4 = vpop.f32.mrf.mxu0 }
 0x273   : > { %v1736_v0 = vadd.f32 %v6897_v24, %v1735_v4  ;;  %v1992_v44 = vmax.f32 %v1744_v31, 0.0 }
 0x274   : > { %v5409_v28 = vpop.f32.mrf.mxu0 }
 0x275   : > { %v1747_v9 = vadd.f32 %v5409_v28, %v6897_v24  ;;  %v1990_v53 = vmax.f32 %v1736_v0, 0.0  ;;  %v8727_v28 = vld [vmem:[#allocation65_spill] sm:$0xff] }
 0x276   : > { %v1738_v34 = vpop.f32.mrf.mxu0  ;;  %v2056_v0 = vadd.f32 %v1992_v44, %v8727_v28  ;;  %v8731_v44 = vld [vmem:[#allocation4_spill] sm:$0xff] }
 0x277   : > { %v1993_v15 = vmax.f32 %v1747_v9, 0.0  ;;  %v1739_v29 = vadd.f32 %v6897_v24, %v1738_v34  ;;  %v2054_v4 = vadd.f32 %v1990_v53, %v6567_v36  ;;  %v5795_v9 = vld [vmem:[%s8451_s9 + $0x20] sm:$0xff]  }
 0x278   : > { %v5412_v41 = vpop.f32.mrf.mxu0  ;;  %v8729_v34 = vld [vmem:[#allocation2_spill] sm:$0xff]  ;;  %5556 = vmatprep.subr.bf16.mxu0 %v5795_v9 }
 0x279   : > { %v2057_v25 = vadd.f32 %v1993_v15, %v6564_v17  ;;  %v1991_v18 = vmax.f32 %v1739_v29, 0.0  ;;  %v1760_v27 = vadd.f32 %v5412_v41, %v6897_v24  ;;  %v5796_v29 = vld [vmem:[%s8451_s9 + $0x18] sm:$0xff]   ;;  %5557 = vmatpush3.bf16.msra.mxu0 %v5795_v9 }
 0x27a   : > { %v1751_v39 = vpop.f32.mrf.mxu0  ;;  %5558 = vmatprep.subr.bf16.mxu0 %v5796_v29 }
 0x27b   : > { %v2055_v59 = vadd.f32 %v1991_v18, %v8728_v14  ;;  %v1752_v31 = vadd.f32 %v6897_v24, %v1751_v39  ;;  %v6919_v36 = vadd.f32 %v2057_v25, %v8729_v34  ;;  %v8730_v14 = vld [vmem:[#allocation3_spill] sm:$0xff]  ;;  %v8732_v18 = vld [vmem:[#allocation5_spill] sm:$0xff]  ;;  %v1996_v62 = vmax.f32 %v1760_v27, 0.0 }
 0x27c   : > { %v5413_v17 = vpop.f32.mrf.mxu0  ;;  %v6923_v35 = vadd.f32 %v2054_v4, %v8730_v14  ;;  %v6929_v28 = vadd.f32 %v2056_v0, %v8732_v18  ;;  %v8734_v18 = vld [vmem:[#allocation6_spill] sm:$0xff] }
 0x27d   : > { %v1763_v53 = vadd.f32 %v5413_v17, %v6897_v24  ;;  %v1994_v41 = vmax.f32 %v1752_v31, 0.0  ;;  %v6926_v15 = vadd.f32 %v2055_v59, %v8731_v44  ;;  %v5797_v17 = vld [vmem:[%s8451_s9 + $0x10] sm:$0xff]   ;;  %5559 = vmatpush3.bf16.msra.mxu0 %v5796_v29  ;;  %v2060_v14 = vadd.f32 %v1996_v62, %v6600_v46  ;;  %v8736_v46 = vld [vmem:[#allocation7_spill] sm:$0xff] }
 0x27e   : > { %v1754_v39 = vpop.f32.mrf.mxu0  ;;  %8733 = vst [vmem:[#allocation65_spill] sm:$0xff] %v6929_v28  ;;  %v2183_v59 = vpack.c.bf16 %v6919_v36, %v6929_v28  ;;  %5560 = vmatprep.subr.bf16.mxu0 %v5797_v17 }
 0x27f   : > { %v1997_v60 = vmax.f32 %v1763_v53, 0.0  ;;  %v1755_v25 = vadd.f32 %v6897_v24, %v1754_v39  ;;  %v2182_v31 = vpack.c.bf16 %v6926_v15, %v6923_v35  ;;  %v2058_v27 = vadd.f32 %v1994_v41, %v6593_v21 }
 0x280   : > { %v5416_v4 = vpop.f32.mrf.mxu0 }
 0x281   : > { %v2061_v9 = vadd.f32 %v1997_v60, %v6590_v6  ;;  %v1995_v0 = vmax.f32 %v1755_v25, 0.0  ;;  %v1776_v34 = vadd.f32 %v5416_v4, %v6897_v24  ;;  %5486 = vmatprep.mubr.bf16.mxu1 %v2182_v31  ;;  %v5798_v60 = vld [vmem:[%s8451_s9 + $0x8] sm:$0xff]   ;;  %v8735_v25 = vld [vmem:[#allocation8_spill] sm:$0xff]  ;;  %v6956_v62 = vadd.f32 %v2058_v27, %v8736_v46  ;;  %5561 = vmatpush3.bf16.msra.mxu0 %v5797_v17 }
 0x282   : > { %v1767_v53 = vpop.f32.mrf.mxu0  ;;  %5487 = vmatmul.mubr.bf16.vlgmr.msra.gmra.mxu1 %v2183_v59  ;;  %v8737_v59 = vld [vmem:[#allocation9_spill] sm:$0xff]  ;;  %5562 = vmatprep.subr.bf16.mxu0 %v5798_v60 }
 0x283   : > { %v2059_v39 = vadd.f32 %v1995_v0, %v6596_v49  ;;  %v1768_v44 = vadd.f32 %v6897_v24, %v1767_v53  ;;  %v6949_v21 = vadd.f32 %v2061_v9, %v8734_v18  ;;  %v2000_v49 = vmax.f32 %v1776_v34, 0.0  ;;  %v5799_v9 = vld [vmem:[%s8451_s9] sm:$0xff]  }
 0x284   : > { %v5417_v6 = vpop.f32.mrf.mxu0  ;;  %v6959_v0 = vadd.f32 %v2060_v14, %v8737_v59  ;;  %v8740_v59 = vld [vmem:[#allocation12_spill] sm:$0xff] }
 0x285   : > { %v1779_v41 = vadd.f32 %v5417_v6, %v6897_v24  ;;  %v6953_v29 = vadd.f32 %v2059_v39, %v8735_v25  ;;  %v1998_v4 = vmax.f32 %v1768_v44, 0.0  ;;  %v2064_v14 = vadd.f32 %v2000_v49, %v6620_v55  ;;  %5563 = vmatpush3.bf16.msra.mxu0 %v5798_v60  ;;  %v8738_v55 = vld [vmem:[#allocation11_spill] sm:$0xff] }
 0x286   : > { %v1770_v31 = vpop.f32.mrf.mxu0  ;;  %v2185_v17 = vpack.c.bf16 %v6949_v21, %v6959_v0  ;;  %5564 = vmatprep.subr.bf16.mxu0 %v5799_v9 }
 0x287   : > { %v2001_v53 = vmax.f32 %v1779_v41, 0.0  ;;  %v1771_v28 = vadd.f32 %v6897_v24, %v1770_v31  ;;  %v2184_v27 = vpack.c.bf16 %v6953_v29, %v6956_v62  ;;  %v2062_v6 = vadd.f32 %v1998_v4, %v6613_v2  ;;  %v8739_v2 = vld [vmem:[#allocation10_spill] sm:$0xff] }
 0x288   : > { %v5420_v39 = vpop.f32.mrf.mxu0 }
 0x289   : > { %v2065_v34 = vadd.f32 %v2001_v53, %v6610_v3  ;;  %v1999_v44 = vmax.f32 %v1771_v28, 0.0  ;;  %5490 = vmatprep.mubr.bf16.mxu1 %v2184_v27  ;;  %v1792_v25 = vadd.f32 %v5420_v39, %v6897_v24  ;;  %v6983_v4 = vadd.f32 %v2062_v6, %v8739_v2  ;;  %5565 = vmatpush3.bf16.msra.mxu0 %v5799_v9 }
 0x28a   : > { %v1783_v18 = vpop.f32.mrf.mxu0  ;;  %5491 = vmatmul.mubr.bf16.gmra.mxu1 %v2185_v17  ;;  %v6986_v53 = vadd.f32 %v2064_v14, %v8740_v59 }
 0x28b   : > { %v2063_v41 = vadd.f32 %v1999_v44, %v6616_v63  ;;  %v1784_v46 = vadd.f32 %v6897_v24, %v1783_v18  ;;  %v6976_v28 = vadd.f32 %v2065_v34, %v6316_v10  ;;  %v2004_v39 = vmax.f32 %v1792_v25, 0.0 }
 0x28c   : > { %v5421_v3 = vpop.f32.mrf.mxu0 }
 0x28d   : > { %v1795_v31 = vadd.f32 %v5421_v3, %v6897_v24  ;;  %v6980_v49 = vadd.f32 %v2063_v41, %v8738_v55  ;;  %v2002_v60 = vmax.f32 %v1784_v46, 0.0  ;;  %v2187_v6 = vpack.c.bf16 %v6976_v28, %v6986_v53  ;;  %v8741_v55 = vld [vmem:[#allocation13_spill] sm:$0xff] }
 0x28e   : > { %v1786_v63 = vpop.f32.mrf.mxu0  ;;  %v2068_v14 = vadd.f32 %v2004_v39, %v6640_v11 }
 0x28f   : > { %v2005_v27 = vmax.f32 %v1795_v31, 0.0  ;;  %v1787_v44 = vadd.f32 %v6897_v24, %v1786_v63  ;;  %v2186_v34 = vpack.c.bf16 %v6980_v49, %v6983_v4  ;;  %v2066_v41 = vadd.f32 %v2002_v60, %v6633_v12  ;;  %v8742_v63 = vld [vmem:[#allocation15_spill] sm:$0xff]  ;;  %v8743_v12 = vld [vmem:[#allocation14_spill] sm:$0xff] }
 0x290   : > { %v5424_v10 = vpop.f32.mrf.mxu0 }
 0x291   : > { %v2069_v17 = vadd.f32 %v2005_v27, %v6630_v38  ;;  %v2003_v18 = vmax.f32 %v1787_v44, 0.0  ;;  %5494 = vmatprep.mubr.bf16.mxu1 %v2186_v34  ;;  %v1808_v46 = vadd.f32 %v5424_v10, %v6897_v24  ;;  %v7007_v60 = vadd.f32 %v2066_v41, %v8743_v12 }
 0x292   : > { %v1799_v9 = vpop.f32.mrf.mxu0  ;;  %5495 = vmatmul.mubr.bf16.gmra.mxu1 %v2187_v6 }
 0x293   : > { %v2067_v25 = vadd.f32 %v2003_v18, %v6636_v13  ;;  %v1800_v3 = vadd.f32 %v6897_v24, %v1799_v9  ;;  %v7000_v38 = vadd.f32 %v2069_v17, %v8741_v55  ;;  %v8744_v13 = vld [vmem:[#allocation16_spill] sm:$0xff]  ;;  %v2008_v44 = vmax.f32 %v1808_v46, 0.0 }
 0x294   : > { %v5425_v31 = vpop.f32.mrf.mxu0  ;;  %v7010_v27 = vadd.f32 %v2068_v14, %v8744_v13 }
 0x295   : > { %v1811_v2 = vadd.f32 %v5425_v31, %v6897_v24  ;;  %v7004_v59 = vadd.f32 %v2067_v25, %v8742_v63  ;;  %v2006_v11 = vmax.f32 %v1800_v3, 0.0  ;;  %v2072_v14 = vadd.f32 %v2008_v44, %v6660_v54  ;;  %v8745_v63 = vld [vmem:[#allocation17_spill] sm:$0xff] }
 0x296   : > { %v1802_v39 = vpop.f32.mrf.mxu0  ;;  %v2189_v41 = vpack.c.bf16 %v7000_v38, %v7010_v27 }
 0x297   : > { %v2009_v10 = vmax.f32 %v1811_v2, 0.0  ;;  %v1803_v34 = vadd.f32 %v6897_v24, %v1802_v39  ;;  %v2188_v17 = vpack.c.bf16 %v7004_v59, %v7007_v60  ;;  %v2070_v25 = vadd.f32 %v2006_v11, %v6653_v23  ;;  %v8746_v39 = vld [vmem:[#allocation19_spill] sm:$0xff]  ;;  %v8747_v23 = vld [vmem:[#allocation18_spill] sm:$0xff] }
 0x298   : > { %v5428_v18 = vpop.f32.mrf.mxu0 }
 0x299   : > { %v2073_v6 = vadd.f32 %v2009_v10, %v6650_v61  ;;  %v2007_v9 = vmax.f32 %v1803_v34, 0.0  ;;  %5498 = vmatprep.mubr.bf16.mxu1 %v2188_v17  ;;  %v1824_v31 = vadd.f32 %v5428_v18, %v6897_v24  ;;  %v7031_v11 = vadd.f32 %v2070_v25, %v8747_v23  ;;  %v8750_v23 = vld [vmem:[#allocation23_spill] sm:$0xff] }
 0x29a   : > { %v1815_v3 = vpop.f32.mrf.mxu0  ;;  %5499 = vmatmul.mubr.bf16.gmra.mxu1 %v2189_v41 }
 0x29b   : > { %v2071_v46 = vadd.f32 %v2007_v9, %v6656_v20  ;;  %v1816_v55 = vadd.f32 %v6897_v24, %v1815_v3  ;;  %v7024_v61 = vadd.f32 %v2073_v6, %v8745_v63  ;;  %v8748_v20 = vld [vmem:[#allocation20_spill] sm:$0xff]  ;;  %v2012_v34 = vmax.f32 %v1824_v31, 0.0 }
 0x29c   : > { %v5429_v2 = vpop.f32.mrf.mxu0  ;;  %v7034_v10 = vadd.f32 %v2072_v14, %v8748_v20 }
 0x29d   : > { %v1827_v12 = vadd.f32 %v5429_v2, %v6897_v24  ;;  %v7028_v13 = vadd.f32 %v2071_v46, %v8746_v39  ;;  %v2010_v54 = vmax.f32 %v1816_v55, 0.0  ;;  %v2076_v14 = vadd.f32 %v2012_v34, %v6680_v22  ;;  %v8749_v39 = vld [vmem:[#allocation21_spill] sm:$0xff] }
 0x29e   : > { %v1818_v44 = vpop.f32.mrf.mxu0  ;;  %v2191_v25 = vpack.c.bf16 %v7024_v61, %v7034_v10 }
 0x29f   : > { %v2013_v18 = vmax.f32 %v1827_v12, 0.0  ;;  %v1819_v17 = vadd.f32 %v6897_v24, %v1818_v44  ;;  %v2190_v6 = vpack.c.bf16 %v7028_v13, %v7031_v11  ;;  %v2074_v46 = vadd.f32 %v2010_v54, %v6673_v33  ;;  %v8751_v54 = vld [vmem:[#allocation22_spill] sm:$0xff] }
 0x2a0   : > { %v5432_v9 = vpop.f32.mrf.mxu0 }
 0x2a1   : > { %v2077_v41 = vadd.f32 %v2013_v18, %v6670_v48  ;;  %v2011_v3 = vmax.f32 %v1819_v17, 0.0  ;;  %5502 = vmatprep.mubr.bf16.mxu1 %v2190_v6  ;;  %v1840_v2 = vadd.f32 %v5432_v9, %v6897_v24  ;;  %v7055_v20 = vadd.f32 %v2074_v46, %v8751_v54  ;;  %v8754_v54 = vld [vmem:[#allocation27_spill] sm:$0xff] }
 0x2a2   : > { %v1831_v55 = vpop.f32.mrf.mxu0  ;;  %5503 = vmatmul.mubr.bf16.gmra.mxu1 %v2191_v25 }
 0x2a3   : > { %v2075_v31 = vadd.f32 %v2011_v3, %v6676_v30  ;;  %v1832_v63 = vadd.f32 %v6897_v24, %v1831_v55  ;;  %v7048_v48 = vadd.f32 %v2077_v41, %v8749_v39  ;;  %v8752_v30 = vld [vmem:[#allocation24_spill] sm:$0xff]  ;;  %v2016_v17 = vmax.f32 %v1840_v2, 0.0 }
 0x2a4   : > { %v5433_v12 = vpop.f32.mrf.mxu0  ;;  %v7058_v18 = vadd.f32 %v2076_v14, %v8752_v30 }
 0x2a5   : > { %v7051_v44 = vadd.f32 %v2075_v31, %v8750_v23  ;;  %v1843_v33 = vadd.f32 %v5433_v12, %v6897_v24  ;;  %v2014_v22 = vmax.f32 %v1832_v63, 0.0  ;;  %v2080_v14 = vadd.f32 %v2016_v17, %v6700_v32 }
 0x2a6   : > { %v1834_v34 = vpop.f32.mrf.mxu0  ;;  %v2193_v46 = vpack.c.bf16 %v7048_v48, %v7058_v18 }
 0x2a7   : > { %v2017_v9 = vmax.f32 %v1843_v33, 0.0  ;;  %v1835_v6 = vadd.f32 %v6897_v24, %v1834_v34  ;;  %v2192_v41 = vpack.c.bf16 %v7051_v44, %v7055_v20  ;;  %v2078_v31 = vadd.f32 %v2014_v22, %v6693_v43  ;;  %v8753_v33 = vld [vmem:[#allocation25_spill] sm:$0xff]  ;;  %v8755_v22 = vld [vmem:[#allocation26_spill] sm:$0xff] }
 0x2a8   : > { %v5436_v3 = vpop.f32.mrf.mxu0 }
 0x2a9   : > { %v2081_v25 = vadd.f32 %v2017_v9, %v6690_v16  ;;  %v2015_v55 = vmax.f32 %v1835_v6, 0.0  ;;  %5506 = vmatprep.mubr.bf16.mxu1 %v2192_v41  ;;  %v1856_v12 = vadd.f32 %v5436_v3, %v6897_v24  ;;  %v7079_v30 = vadd.f32 %v2078_v31, %v8755_v22  ;;  %v8758_v22 = vld [vmem:[#allocation31_spill] sm:$0xff] }
 0x2aa   : > { %v1847_v63 = vpop.f32.mrf.mxu0  ;;  %5507 = vmatmul.mubr.bf16.gmra.mxu1 %v2193_v46 }
 0x2ab   : > { %v2079_v2 = vadd.f32 %v2015_v55, %v6696_v40  ;;  %v1848_v39 = vadd.f32 %v6897_v24, %v1847_v63  ;;  %v7072_v16 = vadd.f32 %v2081_v25, %v8753_v33  ;;  %v8756_v40 = vld [vmem:[#allocation28_spill] sm:$0xff]  ;;  %v2020_v6 = vmax.f32 %v1856_v12, 0.0 }
 0x2ac   : > { %v5437_v23 = vpop.f32.mrf.mxu0  ;;  %v7082_v9 = vadd.f32 %v2080_v14, %v8756_v40 }
 0x2ad   : > { %v7075_v34 = vadd.f32 %v2079_v2, %v8754_v54  ;;  %v1859_v43 = vadd.f32 %v5437_v23, %v6897_v24  ;;  %v2018_v32 = vmax.f32 %v1848_v39, 0.0  ;;  %v2084_v14 = vadd.f32 %v2020_v6, %v6720_v42 }
 0x2ae   : > { %v1850_v17 = vpop.f32.mrf.mxu0  ;;  %v2195_v31 = vpack.c.bf16 %v7072_v16, %v7082_v9 }
 0x2af   : > { %v2021_v3 = vmax.f32 %v1859_v43, 0.0  ;;  %v1851_v41 = vadd.f32 %v6897_v24, %v1850_v17  ;;  %v2194_v25 = vpack.c.bf16 %v7075_v34, %v7079_v30  ;;  %v2082_v2 = vadd.f32 %v2018_v32, %v6713_v58  ;;  %v8757_v43 = vld [vmem:[#allocation29_spill] sm:$0xff]  ;;  %v8759_v32 = vld [vmem:[#allocation30_spill] sm:$0xff] }
 0x2b0   : > { %v5440_v55 = vpop.f32.mrf.mxu0 }
 0x2b1   : > { %v2085_v46 = vadd.f32 %v2021_v3, %v6710_v1  ;;  %v2019_v63 = vmax.f32 %v1851_v41, 0.0  ;;  %5510 = vmatprep.mubr.bf16.mxu1 %v2194_v25  ;;  %v1872_v23 = vadd.f32 %v5440_v55, %v6897_v24  ;;  %v7103_v40 = vadd.f32 %v2082_v2, %v8759_v32  ;;  %v8762_v32 = vld [vmem:[#allocation35_spill] sm:$0xff] }
 0x2b2   : > { %v1863_v39 = vpop.f32.mrf.mxu0  ;;  %5511 = vmatmul.mubr.bf16.gmra.mxu1 %v2195_v31 }
 0x2b3   : > { %v2083_v12 = vadd.f32 %v2019_v63, %v6716_v52  ;;  %v1864_v33 = vadd.f32 %v6897_v24, %v1863_v39  ;;  %v7096_v1 = vadd.f32 %v2085_v46, %v8757_v43  ;;  %v8760_v52 = vld [vmem:[#allocation32_spill] sm:$0xff]  ;;  %v2024_v41 = vmax.f32 %v1872_v23, 0.0 }
 0x2b4   : > { %v5441_v54 = vpop.f32.mrf.mxu0  ;;  %v7106_v3 = vadd.f32 %v2084_v14, %v8760_v52 }
 0x2b5   : > { %v7099_v17 = vadd.f32 %v2083_v12, %v8758_v22  ;;  %v1875_v58 = vadd.f32 %v5441_v54, %v6897_v24  ;;  %v2022_v42 = vmax.f32 %v1864_v33, 0.0  ;;  %v2088_v14 = vadd.f32 %v2024_v41, %v6740_v57 }
 0x2b6   : > { %v1866_v6 = vpop.f32.mrf.mxu0  ;;  %v2197_v2 = vpack.c.bf16 %v7096_v1, %v7106_v3 }
 0x2b7   : > { %v2025_v55 = vmax.f32 %v1875_v58, 0.0  ;;  %v1867_v25 = vadd.f32 %v6897_v24, %v1866_v6  ;;  %v2196_v46 = vpack.c.bf16 %v7099_v17, %v7103_v40  ;;  %v2086_v12 = vadd.f32 %v2022_v42, %v6733_v8  ;;  %v8761_v58 = vld [vmem:[#allocation33_spill] sm:$0xff]  ;;  %v8763_v42 = vld [vmem:[#allocation34_spill] sm:$0xff] }
 0x2b8   : > { %v5444_v63 = vpop.f32.mrf.mxu0 }
 0x2b9   : > { %v2089_v31 = vadd.f32 %v2025_v55, %v6730_v51  ;;  %v2023_v39 = vmax.f32 %v1867_v25, 0.0  ;;  %5514 = vmatprep.mubr.bf16.mxu1 %v2196_v46  ;;  %v1888_v54 = vadd.f32 %v5444_v63, %v6897_v24  ;;  %v7127_v52 = vadd.f32 %v2086_v12, %v8763_v42 }
 0x2ba   : > { %v1879_v33 = vpop.f32.mrf.mxu0  ;;  %5515 = vmatmul.mubr.bf16.gmra.mxu1 %v2197_v2 }
 0x2bb   : > { %v2087_v23 = vadd.f32 %v2023_v39, %v6736_v5  ;;  %v1880_v43 = vadd.f32 %v6897_v24, %v1879_v33  ;;  %v7120_v51 = vadd.f32 %v2089_v31, %v8761_v58  ;;  %v8764_v5 = vld [vmem:[#allocation36_spill] sm:$0xff]  ;;  %v2028_v25 = vmax.f32 %v1888_v54, 0.0 }
 0x2bc   : > { %v5445_v22 = vpop.f32.mrf.mxu0  ;;  %v7130_v55 = vadd.f32 %v2088_v14, %v8764_v5 }
 0x2bd   : > { %v7123_v6 = vadd.f32 %v2087_v23, %v8762_v32  ;;  %v1891_v8 = vadd.f32 %v5445_v22, %v6897_v24  ;;  %v2026_v57 = vmax.f32 %v1880_v43, 0.0  ;;  %v2092_v14 = vadd.f32 %v2028_v25, %v6760_v7 }
 0x2be   : > { %v1882_v41 = vpop.f32.mrf.mxu0  ;;  %v2199_v12 = vpack.c.bf16 %v7120_v51, %v7130_v55 }
 0x2bf   : > { %v2029_v63 = vmax.f32 %v1891_v8, 0.0  ;;  %v1883_v46 = vadd.f32 %v6897_v24, %v1882_v41  ;;  %v2198_v31 = vpack.c.bf16 %v7123_v6, %v7127_v52  ;;  %v2090_v23 = vadd.f32 %v2026_v57, %v6753_v26  ;;  %v8765_v8 = vld [vmem:[#allocation38_spill] sm:$0xff]  ;;  %v8766_v57 = vld [vmem:[#allocation37_spill] sm:$0xff] }
 0x2c0   : > { %v5448_v39 = vpop.f32.mrf.mxu0 }
 0x2c1   : > { %v2093_v2 = vadd.f32 %v2029_v63, %v6750_v47  ;;  %v2027_v33 = vmax.f32 %v1883_v46, 0.0  ;;  %5518 = vmatprep.mubr.bf16.mxu1 %v2198_v31  ;;  %v1904_v22 = vadd.f32 %v5448_v39, %v6897_v24  ;;  %v7151_v41 = vadd.f32 %v2090_v23, %v8766_v57  ;;  %v8770_v57 = vld [vmem:[#allocation40_spill] sm:$0xff] }
 0x2c2   : > { %v1895_v43 = vpop.f32.mrf.mxu0  ;;  %5519 = vmatmul.mubr.bf16.gmra.mxu1 %v2199_v12 }
 0x2c3   : > { %v2091_v54 = vadd.f32 %v2027_v33, %v6756_v19  ;;  %v1896_v58 = vadd.f32 %v6897_v24, %v1895_v43  ;;  %v7144_v47 = vadd.f32 %v2093_v2, %v6428_v37  ;;  %v8767_v19 = vld [vmem:[#allocation39_spill] sm:$0xff]  ;;  %v2032_v63 = vmax.f32 %v1904_v22, 0.0  ;;  %v8769_v22 = vld [vmem:[#allocation66_spill] sm:$0xff] }
 0x2c4   : > { %v5449_v32 = vpop.f32.mrf.mxu0  ;;  %v7154_v25 = vadd.f32 %v2092_v14, %v8767_v19  ;;  %v8768_v14 = vld [vmem:[#allocation67_spill] sm:$0xff] }
 0x2c5   : > { %v7147_v42 = vadd.f32 %v2091_v54, %v8765_v8  ;;  %v1907_v26 = vadd.f32 %v5449_v32, %v6897_v24  ;;  %v2030_v7 = vmax.f32 %v1896_v58, 0.0  ;;  %v2096_v54 = vadd.f32 %v2032_v63, %v8768_v14 }
 0x2c6   : > { %v1898_v5 = vpop.f32.mrf.mxu0  ;;  %v2201_v12 = vpack.c.bf16 %v7144_v47, %v7154_v25 }
 0x2c7   : > { %v2033_v46 = vmax.f32 %v1907_v26, 0.0  ;;  %v1899_v39 = vadd.f32 %v6897_v24, %v1898_v5  ;;  %v2200_v37 = vpack.c.bf16 %v7147_v42, %v7151_v41  ;;  %v2094_v23 = vadd.f32 %v2030_v7, %v6776_v50  ;;  %v8772_v5 = vld [vmem:[#allocation42_spill] sm:$0xff]  ;;  %v8774_v7 = vld [vmem:[#allocation41_spill] sm:$0xff] }
 0x2c8   : > { %v5452_v31 = vpop.f32.mrf.mxu0 }
 0x2c9   : > { %v2097_v2 = vadd.f32 %v2033_v46, %v6773_v45  ;;  %v2031_v33 = vmax.f32 %v1899_v39, 0.0  ;;  %5522 = vmatprep.mubr.bf16.mxu1 %v2200_v37  ;;  %v1920_v32 = vadd.f32 %v5452_v31, %v6897_v24  ;;  %v7175_v46 = vadd.f32 %v2094_v23, %v8774_v7  ;;  %v8776_v37 = vld [vmem:[#allocation43_spill] sm:$0xff] }
 0x2ca   : > { %v1911_v43 = vpop.f32.mrf.mxu0  ;;  %5523 = vmatmul.mubr.bf16.gmra.mxu1 %v2201_v12 }
 0x2cb   : > { %v2095_v58 = vadd.f32 %v2031_v33, %v8769_v22  ;;  %v1912_v8 = vadd.f32 %v6897_v24, %v1911_v43  ;;  %v7168_v45 = vadd.f32 %v2097_v2, %v8770_v57  ;;  %8775 = vst [vmem:[#allocation3_spill] sm:$0xff] %v7175_v46  ;;  %v7178_v33 = vadd.f32 %v2096_v54, %v8776_v37  ;;  %v8778_v22 = vld [vmem:[#allocation68_spill] sm:$0xff]  ;;  %v8780_v54 = vld [vmem:[#allocation71_spill] sm:$0xff] }
 0x2cc   : > { %v5453_v26 = vpop.f32.mrf.mxu0  ;;  %v2036_v31 = vmax.f32 %v1920_v32, 0.0  ;;  %v8781_v32 = vld [vmem:[#allocation70_spill] sm:$0xff] }
 0x2cd   : > { %8771 = vst [vmem:[#allocation64_spill] sm:$0xff] %v7168_v45  ;;  %v7171_v19 = vadd.f32 %v2095_v58, %v8772_v5  ;;  %v1923_v50 = vadd.f32 %v5453_v26, %v6897_v24  ;;  %v2034_v63 = vmax.f32 %v1912_v8, 0.0  ;;  %8777 = vst [vmem:[#allocation4_spill] sm:$0xff] %v7178_v33  ;;  %v2203_v23 = vpack.c.bf16 %v7168_v45, %v7178_v33  ;;  %v8779_v26 = vld [vmem:[#allocation69_spill] sm:$0xff] }
 0x2ce   : > { %v1914_v39 = vpop.f32.mrf.mxu0  ;;  %v2100_v7 = vadd.f32 %v2036_v31, %v8780_v54 }
 0x2cf   : > { %8773 = vst [vmem:[#allocation2_spill] sm:$0xff] %v7171_v19  ;;  %v2037_v43 = vmax.f32 %v1923_v50, 0.0  ;;  %v1915_v12 = vadd.f32 %v6897_v24, %v1914_v39  ;;  %v2202_v2 = vpack.c.bf16 %v7171_v19, %v7175_v46  ;;  %v2098_v8 = vadd.f32 %v2034_v63, %v8779_v26  ;;  %v8782_v46 = vld [vmem:[#allocation44_spill] sm:$0xff] }
 0x2d0   : > { %v5456_v14 = vpop.f32.mrf.mxu0 }
 0x2d1   : > { %v2101_v58 = vadd.f32 %v2037_v43, %v8778_v22  ;;  %v2035_v57 = vmax.f32 %v1915_v12, 0.0  ;;  %5526 = vmatprep.mubr.bf16.mxu1 %v2202_v2  ;;  %v1936_v39 = vadd.f32 %v5456_v14, %v6897_v24  ;;  %v8784_v12 = vld [vmem:[#allocation46_spill] sm:$0xff]  ;;  %v8786_v2 = vld [vmem:[#allocation45_spill] sm:$0xff] }
 0x2d2   : > { %v1927_v5 = vpop.f32.mrf.mxu0  ;;  %5527 = vmatmul.mubr.bf16.gmra.mxu1 %v2203_v23  ;;  %v7199_v26 = vadd.f32 %v2098_v8, %v8786_v2 }
 0x2d3   : > { %v2099_v50 = vadd.f32 %v2035_v57, %v8781_v32  ;;  %v1928_v37 = vadd.f32 %v6897_v24, %v1927_v5  ;;  %v7192_v43 = vadd.f32 %v2101_v58, %v8782_v46  ;;  %v8788_v57 = vld [vmem:[#allocation47_spill] sm:$0xff]  ;;  %v2040_v14 = vmax.f32 %v1936_v39, 0.0  ;;  %v8790_v58 = vld [vmem:[#allocation73_spill] sm:$0xff]  ;;  %v8793_v39 = vld [vmem:[#allocation74_spill] sm:$0xff] }
 0x2d4   : > { %v5457_v19 = vpop.f32.mrf.mxu0  ;;  %8787 = vst [vmem:[#allocation8_spill] sm:$0xff] %v7199_v26  ;;  %v7202_v54 = vadd.f32 %v2100_v7, %v8788_v57  ;;  %v8792_v7 = vld [vmem:[#allocation75_spill] sm:$0xff] }
 0x2d5   : > { %8783 = vst [vmem:[#allocation5_spill] sm:$0xff] %v7192_v43  ;;  %v7195_v22 = vadd.f32 %v2099_v50, %v8784_v12  ;;  %v2038_v33 = vmax.f32 %v1928_v37, 0.0  ;;  %v1939_v63 = vadd.f32 %v5457_v19, %v6897_v24  ;;  %v8791_v37 = vld [vmem:[#allocation72_spill] sm:$0xff]  ;;  %v2104_v57 = vadd.f32 %v2040_v14, %v8792_v7 }
 0x2d6   : > { %v1930_v31 = vpop.f32.mrf.mxu0  ;;  %8789 = vst [vmem:[#allocation7_spill] sm:$0xff] %v7202_v54  ;;  %v2205_v8 = vpack.c.bf16 %v7192_v43, %v7202_v54 }
 0x2d7   : > { %8785 = vst [vmem:[#allocation6_spill] sm:$0xff] %v7195_v22  ;;  %v2041_v5 = vmax.f32 %v1939_v63, 0.0  ;;  %v1931_v23 = vadd.f32 %v6897_v24, %v1930_v31  ;;  %v2204_v46 = vpack.c.bf16 %v7195_v22, %v7199_v26  ;;  %v2102_v50 = vadd.f32 %v2038_v33, %v8790_v58  ;;  %v8794_v26 = vld [vmem:[#allocation49_spill] sm:$0xff]  ;;  %v8798_v58 = vld [vmem:[#allocation50_spill] sm:$0xff] }
 0x2d8   : > { %v5460_v32 = vpop.f32.mrf.mxu0 }
 0x2d9   : > { %v2105_v12 = vadd.f32 %v2041_v5, %v8791_v37  ;;  %v2039_v19 = vmax.f32 %v1931_v23, 0.0  ;;  %5530 = vmatprep.mubr.bf16.mxu1 %v2204_v46  ;;  %v1952_v31 = vadd.f32 %v5460_v32, %v6897_v24  ;;  %v7216_v33 = vadd.f32 %v2102_v50, %v8794_v26  ;;  %v8796_v5 = vld [vmem:[#allocation48_spill] sm:$0xff] }
 0x2da   : > { %v1943_v2 = vpop.f32.mrf.mxu0  ;;  %5531 = vmatmul.mubr.bf16.gmra.mxu1 %v2205_v8 }
 0x2db   : > { %v2103_v63 = vadd.f32 %v2039_v19, %v8793_v39  ;;  %v1944_v45 = vadd.f32 %v6897_v24, %v1943_v2  ;;  %8795 = vst [vmem:[#allocation9_spill] sm:$0xff] %v7216_v33  ;;  %v7219_v23 = vadd.f32 %v2105_v12, %v8796_v5  ;;  %v8800_v19 = vld [vmem:[#allocation51_spill] sm:$0xff]  ;;  %v2044_v32 = vmax.f32 %v1952_v31, 0.0  ;;  %v8804_v31 = vld [vmem:[#allocation77_spill] sm:$0xff] }
 0x2dc   : > { %v5461_v22 = vpop.f32.mrf.mxu0  ;;  %v7226_v39 = vadd.f32 %v2104_v57, %v8800_v19  ;;  %v8803_v57 = vld [vmem:[#allocation78_spill] sm:$0xff] }
 0x2dd   : > { %8797 = vst [vmem:[#allocation11_spill] sm:$0xff] %v7219_v23  ;;  %v7222_v37 = vadd.f32 %v2103_v63, %v8798_v58  ;;  %v2042_v46 = vmax.f32 %v1944_v45, 0.0  ;;  %v1955_v14 = vadd.f32 %v5461_v22, %v6897_v24  ;;  %v8802_v45 = vld [vmem:[#allocation76_spill] sm:$0xff]  ;;  %v2108_v19 = vadd.f32 %v2044_v32, %v8803_v57 }
 0x2de   : > { %v1946_v7 = vpop.f32.mrf.mxu0  ;;  %8801 = vst [vmem:[#allocation12_spill] sm:$0xff] %v7226_v39  ;;  %v2207_v12 = vpack.c.bf16 %v7219_v23, %v7226_v39 }
 0x2df   : > { %8799 = vst [vmem:[#allocation10_spill] sm:$0xff] %v7222_v37  ;;  %v1947_v8 = vadd.f32 %v6897_v24, %v1946_v7  ;;  %v2206_v26 = vpack.c.bf16 %v7222_v37, %v7216_v33  ;;  %v2045_v50 = vmax.f32 %v1955_v14, 0.0  ;;  %v2106_v5 = vadd.f32 %v2042_v46, %v8802_v45  ;;  %v8805_v33 = vld [vmem:[#allocation52_spill] sm:$0xff] }
 0x2e0   : > { %v5464_v2 = vpop.f32.mrf.mxu0 }
 0x2e1   : > { %v2043_v63 = vmax.f32 %v1947_v8, 0.0  ;;  %5534 = vmatprep.mubr.bf16.mxu1 %v2206_v26  ;;  %v2109_v22 = vadd.f32 %v2045_v50, %v6833_v56  ;;  %v1968_v7 = vadd.f32 %v5464_v2, %v6897_v24  ;;  %v8806_v8 = vld [vmem:[#allocation54_spill] sm:$0xff]  ;;  %v8808_v50 = vld [vmem:[#allocation53_spill] sm:$0xff] }
 0x2e2   : > { %v1959_v58 = vpop.f32.mrf.mxu0  ;;  %5535 = vmatmul.mubr.bf16.gmra.mxu1 %v2207_v12  ;;  %v7247_v45 = vadd.f32 %v2106_v5, %v8808_v50 }
 0x2e3   : > { %v2107_v54 = vadd.f32 %v2043_v63, %v8804_v31  ;;  %v1960_v37 = vadd.f32 %v6897_v24, %v1959_v58  ;;  %v7240_v43 = vadd.f32 %v2109_v22, %v8805_v33  ;;  %v8810_v63 = vld [vmem:[#allocation55_spill] sm:$0xff]  ;;  %v2048_v2 = vmax.f32 %v1968_v7, 0.0  ;;  %v8815_v7 = vld [vmem:[#allocation81_spill] sm:$0xff] }
 0x2e4   : > { %v5465_v14 = vpop.f32.mrf.mxu0  ;;  %8809 = vst [vmem:[#allocation15_spill] sm:$0xff] %v7247_v45  ;;  %v7250_v57 = vadd.f32 %v2108_v19, %v8810_v63  ;;  %v8814_v19 = vld [vmem:[#allocation82_spill] sm:$0xff] }
 0x2e5   : > { %v7243_v26 = vadd.f32 %v2107_v54, %v8806_v8  ;;  %v2046_v46 = vmax.f32 %v1960_v37, 0.0  ;;  %v1971_v56 = vadd.f32 %v5465_v14, %v6897_v24  ;;  %v8812_v37 = vld [vmem:[#allocation80_spill] sm:$0xff]  ;;  %v8813_v14 = vld [vmem:[#allocation79_spill] sm:$0xff]  ;;  %v2112_v63 = vadd.f32 %v2048_v2, %v8814_v19 }
 0x2e6   : > { %v1962_v32 = vpop.f32.mrf.mxu0  ;;  %8811 = vst [vmem:[#allocation14_spill] sm:$0xff] %v7250_v57  ;;  %v2209_v54 = vpack.c.bf16 %v7240_v43, %v7250_v57  ;;  %v8817_v57 = vld [vmem:[#allocation56_spill] sm:$0xff] }
 0x2e7   : > { %8807 = vst [vmem:[#allocation13_spill] sm:$0xff] %v7243_v26  ;;  %v2049_v58 = vmax.f32 %v1971_v56, 0.0  ;;  %v1963_v12 = vadd.f32 %v6897_v24, %v1962_v32  ;;  %v2208_v33 = vpack.c.bf16 %v7243_v26, %v7247_v45  ;;  %v2110_v22 = vadd.f32 %v2046_v46, %v8812_v37  ;;  %v8816_v45 = vld [vmem:[#allocation57_spill] sm:$0xff] }
 0x2e8   : > { %v5468_v31 = vpop.f32.mrf.mxu0 }
 0x2e9   : > { %v2113_v5 = vadd.f32 %v2049_v58, %v8813_v14  ;;  %v2047_v8 = vmax.f32 %v1963_v12, 0.0  ;;  %5538 = vmatprep.mubr.bf16.mxu1 %v2208_v33  ;;  %v1984_v32 = vadd.f32 %v5468_v31, %v6897_v24  ;;  %v7264_v23 = vadd.f32 %v2110_v22, %v8816_v45  ;;  %v8818_v58 = vld [vmem:[#allocation58_spill] sm:$0xff]  ;;  %v8820_v14 = vld [vmem:[#allocation59_spill] sm:$0xff] }
 0x2ea   : > { %v1975_v50 = vpop.f32.mrf.mxu0  ;;  %5539 = vmatmul.mubr.bf16.gmra.mxu1 %v2209_v54 }
 0x2eb   : > { %v2111_v56 = vadd.f32 %v2047_v8, %v8815_v7  ;;  %v1976_v39 = vadd.f32 %v6897_v24, %v1975_v50  ;;  %v7267_v46 = vadd.f32 %v2113_v5, %v8817_v57  ;;  %v7274_v8 = vadd.f32 %v2112_v63, %v8820_v14  ;;  %v8822_v5 = vld [vmem:[#allocation84_spill] sm:$0xff]  ;;  %v8824_v7 = vld [vmem:[#allocation86_spill] sm:$0xff]  ;;  %v8825_v63 = vld [vmem:[#allocation85_spill] sm:$0xff] }
 0x2ec   : > { %v5469_v26 = vpop.f32.mrf.mxu0  ;;  %v2052_v31 = vmax.f32 %v1984_v32, 0.0  ;;  %v8826_v32 = vld [vmem:[#allocation61_spill] sm:$0xff] }
 0x2ed   : > { %v7270_v12 = vadd.f32 %v2111_v56, %v8818_v58  ;;  %v2050_v33 = vmax.f32 %v1976_v39, 0.0  ;;  %v1987_v2 = vadd.f32 %v5469_v26, %v6897_v24  ;;  %8821 = vst [vmem:[#allocation17_spill] sm:$0xff] %v7274_v8  ;;  %v2211_v57 = vpack.c.bf16 %v7267_v46, %v7274_v8  ;;  %v8823_v39 = vld [vmem:[#allocation83_spill] sm:$0xff] }
 0x2ee   : > { %v1978_v37 = vpop.f32.mrf.mxu0  ;;  %v2116_v56 = vadd.f32 %v2052_v31, %v8824_v7  ;;  %v8829_v8 = vld [vmem:[#allocation63_spill] sm:$0xff] }
 0x2ef   : > { %8819 = vst [vmem:[#allocation16_spill] sm:$0xff] %v7270_v12  ;;  %v1979_v54 = vadd.f32 %v6897_v24, %v1978_v37  ;;  %v2210_v45 = vpack.c.bf16 %v7270_v12, %v7264_v23  ;;  %v2053_v22 = vmax.f32 %v1987_v2, 0.0  ;;  %v2114_v50 = vadd.f32 %v2050_v33, %v8822_v5  ;;  %v8827_v37 = vld [vmem:[#allocation60_spill] sm:$0xff]  ;;  %v8828_v2 = vld [vmem:[#allocation62_spill] sm:$0xff] }
 0x2f0   : > { %v7295_v33 = vadd.f32 %v2116_v56, %v8829_v8  ;;  %v7307_v8 = vld [vmem:[%s8453_s11 + $0x30] sm:$0xff]  }
 0x2f1   : > { %v2051_v19 = vmax.f32 %v1979_v54, 0.0  ;;  %5542 = vmatprep.mubr.bf16.mxu1 %v2210_v45  ;;  %v2117_v26 = vadd.f32 %v2053_v22, %v8823_v39  ;;  %v7286_v24 = vadd.f32 %v2114_v50, %v8826_v32  ;;  %v5800_v45 = vld [vmem:[%s8453_s11 + $0x38] sm:$0xff]  }
 0x2f2   : > { %5543 = vmatmul.mubr.bf16.gmra.mxu1 %v2211_v57  ;;  %8830 = vst [vmem:[#allocation19_spill] sm:$0xff] %v7295_v33  ;;  %5630 = vmatprep.subr.bf16.mxu0 %v5800_v45  ;;  %v7314_v57 = vld [vmem:[%s8450_s8] ss:$0 sm:$0xff] }
 0x2f3   : > { %v2115_v58 = vadd.f32 %v2051_v19, %v8825_v63  ;;  %v7289_v14 = vadd.f32 %v2117_v26, %v8827_v37  ;;  %5710 = vmatprep.subr.bf16.mxu1 %v5800_v45  ;;  %v7320_v19 = vld [vmem:[%s8453_s11 + $0x28] sm:$0xff]  }
 0x2f4   : > { %5718 = vmatpush3.bf16.msra.mxu1 %v5800_v45 }
 0x2f5   : > { %v7292_v12 = vadd.f32 %v2115_v58, %v8828_v2  ;;  %v2213_v31 = vpack.c.bf16 %v7289_v14, %v7295_v33  ;;  %5711 = vmatprep.subr.bf16.mxu1 %v7307_v8 }
 0x2f7   : > { %v2212_v54 = vpack.c.bf16 %v7292_v12, %v7286_v24 }
 0x2f8   : > { %5719 = vmatpush3.bf16.msra.mxu1 %v7307_v8 }
 0x2f9   : > { %5546 = vmatprep.mubr.bf16.mxu1 %v2212_v54  ;;  %5712 = vmatprep.subr.bf16.mxu1 %v7320_v19  ;;  %v7330_v54 = vld [vmem:[%s8453_s11 + $0x20] sm:$0xff]  }
 0x2fa   : > { %5547 = vmatmul.mubr.bf16.gmra.mxu1 %v2213_v31 }
 0x2fc   : > { %5720 = vmatpush3.bf16.msra.mxu1 %v7320_v19 }
 0x2fd   : > { %5713 = vmatprep.subr.bf16.mxu1 %v7330_v54 }
 0x300   : > { %5721 = vmatpush3.bf16.msra.mxu1 %v7330_v54 }
 0x342   : > { %v5488_v22 = vpop.f32.mrf.mxu1 }
 0x343   : > { %v2328_v39 = vadd.f32 %v5488_v22, %v7314_v57 }
 0x344   : > { %v2319_v5 = vpop.f32.mrf.mxu1 }
 0x345   : > { %v2320_v50 = vadd.f32 %v7314_v57, %v2319_v5  ;;  %v2576_v37 = vmax.f32 %v2328_v39, 0.0 }
 0x346   : > { %v5489_v26 = vpop.f32.mrf.mxu1 }
 0x347   : > { %v2331_v7 = vadd.f32 %v5489_v26, %v7314_v57  ;;  %v2574_v63 = vmax.f32 %v2320_v50, 0.0  ;;  %v7339_v50 = vld [vmem:[%s8453_s11 + $0x18] sm:$0xff]  }
 0x348   : > { %v2322_v56 = vpop.f32.mrf.mxu1  ;;  %5714 = vmatprep.subr.bf16.mxu1 %v7339_v50 }
 0x349   : > { %v2577_v58 = vmax.f32 %v2331_v7, 0.0  ;;  %v2323_v32 = vadd.f32 %v7314_v57, %v2322_v56  ;;  %v7342_v39 = vadd.f32 %v2574_v63, %v6923_v35  ;;  %5722 = vmatpush3.bf16.msra.mxu1 %v7339_v50 }
 0x34a   : > { %v5492_v2 = vpop.f32.mrf.mxu1 }
 0x34b   : > { %v2575_v31 = vmax.f32 %v2323_v32, 0.0  ;;  %v7333_v22 = vadd.f32 %v2577_v58, %v6919_v36  ;;  %8831 = vst [vmem:[#allocation18_spill] sm:$0xff] %v7342_v39  ;;  %v8833_v36 = vld [vmem:[#allocation65_spill] sm:$0xff]  ;;  %v2344_v58 = vadd.f32 %v5492_v2, %v7314_v57 }
 0x34c   : > { %v2335_v5 = vpop.f32.mrf.mxu1  ;;  %v7350_v56 = vadd.f32 %v2576_v37, %v8833_v36 }
 0x34d   : > { %v7345_v26 = vadd.f32 %v2575_v31, %v6926_v15  ;;  %v2336_v7 = vadd.f32 %v7314_v57, %v2335_v5  ;;  %v7362_v31 = vld [vmem:[%s8453_s11 + $0x10] sm:$0xff]   ;;  %v2580_v36 = vmax.f32 %v2344_v58, 0.0 }
 0x34e   : > { %8834 = vst [vmem:[#allocation21_spill] sm:$0xff] %v7350_v56  ;;  %v5493_v32 = vpop.f32.mrf.mxu1  ;;  %v2703_v15 = vpack.c.bf16 %v7333_v22, %v7350_v56  ;;  %5715 = vmatprep.subr.bf16.mxu1 %v7362_v31 }
 0x34f   : > { %8832 = vst [vmem:[#allocation20_spill] sm:$0xff] %v7345_v26  ;;  %v2347_v33 = vadd.f32 %v5493_v32, %v7314_v57  ;;  %v2702_v35 = vpack.c.bf16 %v7345_v26, %v7342_v39  ;;  %v2578_v37 = vmax.f32 %v2336_v7, 0.0  ;;  %5723 = vmatpush3.bf16.msra.mxu1 %v7362_v31 }
 0x350   : > { %v2338_v63 = vpop.f32.mrf.mxu1 }
 0x351   : > { %v2581_v5 = vmax.f32 %v2347_v33, 0.0  ;;  %v2339_v2 = vadd.f32 %v7314_v57, %v2338_v63  ;;  %5566 = vmatprep.mubr.bf16.mxu0 %v2702_v35  ;;  %v7374_v33 = vld [vmem:[%s8453_s11 + $0x8] sm:$0xff]   ;;  %v7377_v7 = vadd.f32 %v2578_v37, %v6956_v62 }
 0x352   : > { %v5496_v32 = vpop.f32.mrf.mxu1  ;;  %5567 = vmatmul.mubr.bf16.vlgmr.msra.gmra.mxu0 %v2703_v15  ;;  %5716 = vmatprep.subr.bf16.mxu1 %v7374_v33 }
 0x353   : > { %v2579_v26 = vmax.f32 %v2339_v2, 0.0  ;;  %5631 = vmatpush3.bf16.msra.mxu0 %v5800_v45  ;;  %v7368_v56 = vadd.f32 %v2581_v5, %v6949_v21  ;;  %v7385_v21 = vadd.f32 %v2580_v36, %v6959_v0  ;;  %v2360_v45 = vadd.f32 %v5496_v32, %v7314_v57  ;;  %5724 = vmatpush3.bf16.msra.mxu1 %v7374_v33 }
 0x354   : > { %v2351_v39 = vpop.f32.mrf.mxu1  ;;  %5632 = vmatprep.subr.bf16.mxu0 %v7307_v8 }
 0x355   : > { %v7380_v58 = vadd.f32 %v2579_v26, %v6953_v29  ;;  %v2352_v35 = vadd.f32 %v7314_v57, %v2351_v39  ;;  %v2705_v29 = vpack.c.bf16 %v7368_v56, %v7385_v21  ;;  %v2584_v5 = vmax.f32 %v2360_v45, 0.0 }
 0x356   : > { %v5497_v15 = vpop.f32.mrf.mxu1 }
 0x357   : > { %v2363_v63 = vadd.f32 %v5497_v15, %v7314_v57  ;;  %v2704_v62 = vpack.c.bf16 %v7380_v58, %v7377_v7  ;;  %5633 = vmatpush3.bf16.msra.mxu0 %v7307_v8  ;;  %v2582_v0 = vmax.f32 %v2352_v35, 0.0  ;;  %v7411_v45 = vadd.f32 %v2584_v5, %v6986_v53 }
 0x358   : > { %v2354_v39 = vpop.f32.mrf.mxu1  ;;  %5634 = vmatprep.subr.bf16.mxu0 %v7320_v19 }
 0x359   : > { %v2585_v26 = vmax.f32 %v2363_v63, 0.0  ;;  %v2355_v37 = vadd.f32 %v7314_v57, %v2354_v39  ;;  %5570 = vmatprep.mubr.bf16.mxu0 %v2704_v62  ;;  %v7404_v35 = vadd.f32 %v2582_v0, %v6983_v4 }
 0x35a   : > { %v5500_v2 = vpop.f32.mrf.mxu1  ;;  %5571 = vmatmul.mubr.bf16.gmra.mxu0 %v2705_v29 }
 0x35b   : > { %v2583_v36 = vmax.f32 %v2355_v37, 0.0  ;;  %5635 = vmatpush3.bf16.msra.mxu0 %v7320_v19  ;;  %v7400_v8 = vadd.f32 %v2585_v26, %v6976_v28  ;;  %v2376_v62 = vadd.f32 %v5500_v2, %v7314_v57 }
 0x35c   : > { %v2367_v32 = vpop.f32.mrf.mxu1  ;;  %5636 = vmatprep.subr.bf16.mxu0 %v7330_v54 }
 0x35d   : > { %v7407_v15 = vadd.f32 %v2583_v36, %v6980_v49  ;;  %v2368_v63 = vadd.f32 %v7314_v57, %v2367_v32  ;;  %v2707_v4 = vpack.c.bf16 %v7400_v8, %v7411_v45  ;;  %v2588_v26 = vmax.f32 %v2376_v62, 0.0 }
 0x35e   : > { %v5501_v19 = vpop.f32.mrf.mxu1 }
 0x35f   : > { %v2379_v28 = vadd.f32 %v5501_v19, %v7314_v57  ;;  %v2706_v29 = vpack.c.bf16 %v7407_v15, %v7404_v35  ;;  %5637 = vmatpush3.bf16.msra.mxu0 %v7330_v54  ;;  %v2586_v39 = vmax.f32 %v2368_v63, 0.0  ;;  %v7435_v62 = vadd.f32 %v2588_v26, %v7010_v27 }
 0x360   : > { %v2370_v49 = vpop.f32.mrf.mxu1  ;;  %5638 = vmatprep.subr.bf16.mxu0 %v7339_v50 }
 0x361   : > { %v2589_v0 = vmax.f32 %v2379_v28, 0.0  ;;  %v2371_v53 = vadd.f32 %v7314_v57, %v2370_v49  ;;  %5574 = vmatprep.mubr.bf16.mxu0 %v2706_v29  ;;  %v7428_v36 = vadd.f32 %v2586_v39, %v7007_v60 }
 0x362   : > { %v5504_v37 = vpop.f32.mrf.mxu1  ;;  %5575 = vmatmul.mubr.bf16.gmra.mxu0 %v2707_v4 }
 0x363   : > { %v2587_v5 = vmax.f32 %v2371_v53, 0.0  ;;  %5639 = vmatpush3.bf16.msra.mxu0 %v7339_v50  ;;  %v7424_v2 = vadd.f32 %v2589_v0, %v7000_v38  ;;  %v2392_v19 = vadd.f32 %v5504_v37, %v7314_v57 }
 0x364   : > { %v2383_v54 = vpop.f32.mrf.mxu1  ;;  %5640 = vmatprep.subr.bf16.mxu0 %v7362_v31 }
 0x365   : > { %v7431_v32 = vadd.f32 %v2587_v5, %v7004_v59  ;;  %v2384_v63 = vadd.f32 %v7314_v57, %v2383_v54  ;;  %v2709_v60 = vpack.c.bf16 %v7424_v2, %v7435_v62  ;;  %v2592_v49 = vmax.f32 %v2392_v19, 0.0 }
 0x366   : > { %v5505_v50 = vpop.f32.mrf.mxu1 }
 0x367   : > { %v2395_v38 = vadd.f32 %v5505_v50, %v7314_v57  ;;  %v2708_v28 = vpack.c.bf16 %v7431_v32, %v7428_v36  ;;  %5641 = vmatpush3.bf16.msra.mxu0 %v7362_v31  ;;  %v2590_v29 = vmax.f32 %v2384_v63, 0.0  ;;  %v7458_v54 = vadd.f32 %v2592_v49, %v7034_v10 }
 0x368   : > { %v2386_v59 = vpop.f32.mrf.mxu1  ;;  %5642 = vmatprep.subr.bf16.mxu0 %v7374_v33 }
 0x369   : > { %v2593_v4 = vmax.f32 %v2395_v38, 0.0  ;;  %v2387_v27 = vadd.f32 %v7314_v57, %v2386_v59  ;;  %5578 = vmatprep.mubr.bf16.mxu0 %v2708_v28  ;;  %v7451_v26 = vadd.f32 %v2590_v29, %v7031_v11 }
 0x36a   : > { %v5508_v39 = vpop.f32.mrf.mxu1  ;;  %5579 = vmatmul.mubr.bf16.gmra.mxu0 %v2709_v60 }
 0x36b   : > { %v2591_v0 = vmax.f32 %v2387_v27, 0.0  ;;  %5643 = vmatpush3.bf16.msra.mxu0 %v7374_v33  ;;  %v7448_v53 = vadd.f32 %v2593_v4, %v7024_v61  ;;  %v2408_v63 = vadd.f32 %v5508_v39, %v7314_v57 }
 0x36c   : > { %v2399_v31 = vpop.f32.mrf.mxu1 }
 0x36d   : > { %v7454_v37 = vadd.f32 %v2591_v0, %v7028_v13  ;;  %v2400_v5 = vadd.f32 %v7314_v57, %v2399_v31  ;;  %v2711_v11 = vpack.c.bf16 %v7448_v53, %v7458_v54  ;;  %v2596_v60 = vmax.f32 %v2408_v63, 0.0 }
 0x36e   : > { %v5509_v19 = vpop.f32.mrf.mxu1 }
 0x36f   : > { %v2411_v33 = vadd.f32 %v5509_v19, %v7314_v57  ;;  %v2710_v61 = vpack.c.bf16 %v7454_v37, %v7451_v26  ;;  %v2594_v38 = vmax.f32 %v2400_v5, 0.0  ;;  %v7478_v0 = vadd.f32 %v2596_v60, %v7058_v18 }
 0x370   : > { %v2402_v50 = vpop.f32.mrf.mxu1 }
 0x371   : > { %v2597_v13 = vmax.f32 %v2411_v33, 0.0  ;;  %v2403_v28 = vadd.f32 %v7314_v57, %v2402_v50  ;;  %5582 = vmatprep.mubr.bf16.mxu0 %v2710_v61  ;;  %v7471_v27 = vadd.f32 %v2594_v38, %v7055_v20 }
 0x372   : > { %v5512_v10 = vpop.f32.mrf.mxu1  ;;  %5583 = vmatmul.mubr.bf16.gmra.mxu0 %v2711_v11 }
 0x373   : > { %v2595_v59 = vmax.f32 %v2403_v28, 0.0  ;;  %v7468_v29 = vadd.f32 %v2597_v13, %v7048_v48  ;;  %v2424_v31 = vadd.f32 %v5512_v10, %v7314_v57 }
 0x374   : > { %v2415_v4 = vpop.f32.mrf.mxu1 }
 0x375   : > { %v7474_v49 = vadd.f32 %v2595_v59, %v7051_v44  ;;  %v2416_v39 = vadd.f32 %v7314_v57, %v2415_v4  ;;  %v2713_v20 = vpack.c.bf16 %v7468_v29, %v7478_v0  ;;  %v2600_v11 = vmax.f32 %v2424_v31, 0.0 }
 0x376   : > { %v5513_v5 = vpop.f32.mrf.mxu1 }
 0x377   : > { %v2427_v63 = vadd.f32 %v5513_v5, %v7314_v57  ;;  %v2712_v48 = vpack.c.bf16 %v7474_v49, %v7471_v27  ;;  %v2598_v33 = vmax.f32 %v2416_v39, 0.0  ;;  %v7498_v59 = vadd.f32 %v2600_v11, %v7082_v9 }
 0x378   : > { %v2418_v19 = vpop.f32.mrf.mxu1 }
 0x379   : > { %v2601_v44 = vmax.f32 %v2427_v63, 0.0  ;;  %v2419_v61 = vadd.f32 %v7314_v57, %v2418_v19  ;;  %5586 = vmatprep.mubr.bf16.mxu0 %v2712_v48  ;;  %v7491_v28 = vadd.f32 %v2598_v33, %v7079_v30 }
 0x37a   : > { %v5516_v18 = vpop.f32.mrf.mxu1  ;;  %5587 = vmatmul.mubr.bf16.gmra.mxu0 %v2713_v20 }
 0x37b   : > { %v2599_v50 = vmax.f32 %v2419_v61, 0.0  ;;  %v7488_v38 = vadd.f32 %v2601_v44, %v7072_v16  ;;  %v2440_v4 = vadd.f32 %v5516_v18, %v7314_v57 }
 0x37c   : > { %v2431_v13 = vpop.f32.mrf.mxu1 }
 0x37d   : > { %v7494_v60 = vadd.f32 %v2599_v50, %v7075_v34  ;;  %v2432_v10 = vadd.f32 %v7314_v57, %v2431_v13  ;;  %v2715_v30 = vpack.c.bf16 %v7488_v38, %v7498_v59  ;;  %v2604_v20 = vmax.f32 %v2440_v4, 0.0 }
 0x37e   : > { %v5517_v39 = vpop.f32.mrf.mxu1 }
 0x37f   : > { %v2443_v31 = vadd.f32 %v5517_v39, %v7314_v57  ;;  %v2714_v16 = vpack.c.bf16 %v7494_v60, %v7491_v28  ;;  %v2602_v63 = vmax.f32 %v2432_v10, 0.0  ;;  %v7518_v50 = vadd.f32 %v2604_v20, %v7106_v3 }
 0x380   : > { %v2434_v5 = vpop.f32.mrf.mxu1 }
 0x381   : > { %v2605_v34 = vmax.f32 %v2443_v31, 0.0  ;;  %v2435_v48 = vadd.f32 %v7314_v57, %v2434_v5  ;;  %5590 = vmatprep.mubr.bf16.mxu0 %v2714_v16  ;;  %v7511_v61 = vadd.f32 %v2602_v63, %v7103_v40 }
 0x382   : > { %v5520_v9 = vpop.f32.mrf.mxu1  ;;  %5591 = vmatmul.mubr.bf16.gmra.mxu0 %v2715_v30 }
 0x383   : > { %v2603_v19 = vmax.f32 %v2435_v48, 0.0  ;;  %v7508_v33 = vadd.f32 %v2605_v34, %v7096_v1  ;;  %v2456_v13 = vadd.f32 %v5520_v9, %v7314_v57 }
 0x384   : > { %v2447_v44 = vpop.f32.mrf.mxu1 }
 0x385   : > { %v7514_v11 = vadd.f32 %v2603_v19, %v7099_v17  ;;  %v2448_v18 = vadd.f32 %v7314_v57, %v2447_v44  ;;  %v2717_v40 = vpack.c.bf16 %v7508_v33, %v7518_v50  ;;  %v2608_v30 = vmax.f32 %v2456_v13, 0.0 }
 0x386   : > { %v5521_v10 = vpop.f32.mrf.mxu1 }
 0x387   : > { %v2459_v4 = vadd.f32 %v5521_v10, %v7314_v57  ;;  %v2716_v1 = vpack.c.bf16 %v7514_v11, %v7511_v61  ;;  %v2606_v31 = vmax.f32 %v2448_v18, 0.0  ;;  %v7538_v19 = vadd.f32 %v2608_v30, %v7130_v55 }
 0x388   : > { %v2450_v39 = vpop.f32.mrf.mxu1 }
 0x389   : > { %v2609_v17 = vmax.f32 %v2459_v4, 0.0  ;;  %v2451_v16 = vadd.f32 %v7314_v57, %v2450_v39  ;;  %5594 = vmatprep.mubr.bf16.mxu0 %v2716_v1  ;;  %v7531_v48 = vadd.f32 %v2606_v31, %v7127_v52 }
 0x38a   : > { %v5524_v3 = vpop.f32.mrf.mxu1  ;;  %5595 = vmatmul.mubr.bf16.gmra.mxu0 %v2717_v40 }
 0x38b   : > { %v2607_v5 = vmax.f32 %v2451_v16, 0.0  ;;  %v7528_v63 = vadd.f32 %v2609_v17, %v7120_v51  ;;  %v2472_v44 = vadd.f32 %v5524_v3, %v7314_v57 }
 0x38c   : > { %v2463_v34 = vpop.f32.mrf.mxu1 }
 0x38d   : > { %v7534_v20 = vadd.f32 %v2607_v5, %v7123_v6  ;;  %v2464_v9 = vadd.f32 %v7314_v57, %v2463_v34  ;;  %v2719_v52 = vpack.c.bf16 %v7528_v63, %v7538_v19  ;;  %v2612_v40 = vmax.f32 %v2472_v44, 0.0 }
 0x38e   : > { %v5525_v18 = vpop.f32.mrf.mxu1 }
 0x38f   : > { %v2475_v13 = vadd.f32 %v5525_v18, %v7314_v57  ;;  %v2718_v51 = vpack.c.bf16 %v7534_v20, %v7531_v48  ;;  %v2610_v4 = vmax.f32 %v2464_v9, 0.0  ;;  %v7558_v5 = vadd.f32 %v2612_v40, %v7154_v25 }
 0x390   : > { %v2466_v10 = vpop.f32.mrf.mxu1 }
 0x391   : > { %v2613_v6 = vmax.f32 %v2475_v13, 0.0  ;;  %v2467_v1 = vadd.f32 %v7314_v57, %v2466_v10  ;;  %5598 = vmatprep.mubr.bf16.mxu0 %v2718_v51  ;;  %v7551_v16 = vadd.f32 %v2610_v4, %v7151_v41  ;;  %8835 = vst [vmem:[#allocation23_spill] sm:$0xff] %v7558_v5  ;;  %v5807_v41 = vld [vmem:[%s8453_s11] sm:$0xff]  }
 0x392   : > { %v5528_v55 = vpop.f32.mrf.mxu1  ;;  %5599 = vmatmul.mubr.bf16.gmra.mxu0 %v2719_v52  ;;  %5644 = vmatprep.subr.bf16.mxu0 %v5807_v41 }
 0x393   : > { %v2611_v39 = vmax.f32 %v2467_v1, 0.0  ;;  %v7548_v31 = vadd.f32 %v2613_v6, %v7144_v47  ;;  %v2488_v34 = vadd.f32 %v5528_v55, %v7314_v57  ;;  %5717 = vmatprep.subr.bf16.mxu1 %v5807_v41  ;;  %5645 = vmatpush3.bf16.msra.mxu0 %v5807_v41  ;;  %v8836_v6 = vld [vmem:[#allocation64_spill] sm:$0xff]  ;;  %v8838_v55 = vld [vmem:[#allocation3_spill] sm:$0xff] }
 0x394   : > { %v2479_v17 = vpop.f32.mrf.mxu1  ;;  %5725 = vmatpush3.bf16.msra.mxu1 %v5807_v41 }
 0x395   : > { %v7554_v30 = vadd.f32 %v2611_v39, %v7147_v42  ;;  %v2480_v3 = vadd.f32 %v7314_v57, %v2479_v17  ;;  %v2721_v42 = vpack.c.bf16 %v7548_v31, %v7558_v5  ;;  %v2616_v52 = vmax.f32 %v2488_v34, 0.0  ;;  %v8840_v17 = vld [vmem:[#allocation2_spill] sm:$0xff] }
 0x396   : > { %v5529_v9 = vpop.f32.mrf.mxu1 }
 0x397   : > { %v2491_v44 = vadd.f32 %v5529_v9, %v7314_v57  ;;  %v2720_v47 = vpack.c.bf16 %v7554_v30, %v7551_v16  ;;  %v2614_v13 = vmax.f32 %v2480_v3, 0.0 }
 0x398   : > { %v2482_v18 = vpop.f32.mrf.mxu1 }
 0x399   : > { %v2617_v51 = vmax.f32 %v2491_v44, 0.0  ;;  %v2483_v25 = vadd.f32 %v7314_v57, %v2482_v18  ;;  %5602 = vmatprep.mubr.bf16.mxu0 %v2720_v47  ;;  %v7574_v39 = vadd.f32 %v2614_v13, %v8838_v55  ;;  %v8842_v44 = vld [vmem:[#allocation4_spill] sm:$0xff] }
 0x39a   : > { %v5532_v10 = vpop.f32.mrf.mxu1  ;;  %5603 = vmatmul.mubr.bf16.gmra.mxu0 %v2721_v42  ;;  %v7581_v34 = vadd.f32 %v2616_v52, %v8842_v44 }
 0x39b   : > { %v2615_v4 = vmax.f32 %v2483_v25, 0.0  ;;  %v7571_v1 = vadd.f32 %v2617_v51, %v8836_v6  ;;  %8839 = vst [vmem:[#allocation24_spill] sm:$0xff] %v7574_v39  ;;  %v2504_v47 = vadd.f32 %v5532_v10, %v7314_v57  ;;  %v8844_v10 = vld [vmem:[#allocation5_spill] sm:$0xff] }
 0x39c   : > { %v2495_v40 = vpop.f32.mrf.mxu1  ;;  %8843 = vst [vmem:[#allocation27_spill] sm:$0xff] %v7581_v34 }
 0x39d   : > { %8837 = vst [vmem:[#allocation22_spill] sm:$0xff] %v7571_v1  ;;  %v7577_v3 = vadd.f32 %v2615_v4, %v8840_v17  ;;  %v2496_v9 = vadd.f32 %v7314_v57, %v2495_v40  ;;  %v2723_v13 = vpack.c.bf16 %v7571_v1, %v7581_v34  ;;  %v2620_v40 = vmax.f32 %v2504_v47, 0.0 }
 0x39e   : > { %v5533_v42 = vpop.f32.mrf.mxu1 }
 0x39f   : > { %8841 = vst [vmem:[#allocation25_spill] sm:$0xff] %v7577_v3  ;;  %v2507_v41 = vadd.f32 %v5533_v42, %v7314_v57  ;;  %v2722_v18 = vpack.c.bf16 %v7577_v3, %v7574_v39  ;;  %v2618_v25 = vmax.f32 %v2496_v9, 0.0  ;;  %v8845_v42 = vld [vmem:[#allocation8_spill] sm:$0xff]  ;;  %v8847_v3 = vld [vmem:[#allocation6_spill] sm:$0xff] }
 0x3a0   : > { %v2498_v51 = vpop.f32.mrf.mxu1 }
 0x3a1   : > { %v2621_v4 = vmax.f32 %v2507_v41, 0.0  ;;  %v2499_v6 = vadd.f32 %v7314_v57, %v2498_v51  ;;  %5606 = vmatprep.mubr.bf16.mxu0 %v2722_v18  ;;  %v7594_v5 = vadd.f32 %v2618_v25, %v8845_v42  ;;  %v8849_v41 = vld [vmem:[#allocation7_spill] sm:$0xff] }
 0x3a2   : > { %v5536_v52 = vpop.f32.mrf.mxu1  ;;  %5607 = vmatmul.mubr.bf16.gmra.mxu0 %v2723_v13  ;;  %v7601_v34 = vadd.f32 %v2620_v40, %v8849_v41 }
 0x3a3   : > { %v2619_v55 = vmax.f32 %v2499_v6, 0.0  ;;  %v7591_v17 = vadd.f32 %v2621_v4, %v8844_v10  ;;  %8846 = vst [vmem:[#allocation26_spill] sm:$0xff] %v7594_v5  ;;  %v2520_v47 = vadd.f32 %v5536_v52, %v7314_v57  ;;  %v8851_v52 = vld [vmem:[#allocation11_spill] sm:$0xff] }
 0x3a4   : > { %v2511_v44 = vpop.f32.mrf.mxu1  ;;  %8850 = vst [vmem:[#allocation29_spill] sm:$0xff] %v7601_v34 }
 0x3a5   : > { %v7597_v39 = vadd.f32 %v2619_v55, %v8847_v3  ;;  %v2512_v9 = vadd.f32 %v7314_v57, %v2511_v44  ;;  %v2725_v25 = vpack.c.bf16 %v7591_v17, %v7601_v34  ;;  %v2624_v10 = vmax.f32 %v2520_v47, 0.0 }
 0x3a6   : > { %v5537_v18 = vpop.f32.mrf.mxu1 }
 0x3a7   : > { %8848 = vst [vmem:[#allocation28_spill] sm:$0xff] %v7597_v39  ;;  %v2523_v13 = vadd.f32 %v5537_v18, %v7314_v57  ;;  %v2724_v51 = vpack.c.bf16 %v7597_v39, %v7594_v5  ;;  %v2622_v6 = vmax.f32 %v2512_v9, 0.0  ;;  %v8852_v18 = vld [vmem:[#allocation9_spill] sm:$0xff]  ;;  %v8854_v39 = vld [vmem:[#allocation10_spill] sm:$0xff] }
 0x3a8   : > { %v2514_v4 = vpop.f32.mrf.mxu1 }
 0x3a9   : > { %v2625_v3 = vmax.f32 %v2523_v13, 0.0  ;;  %v2515_v55 = vadd.f32 %v7314_v57, %v2514_v4  ;;  %5610 = vmatprep.mubr.bf16.mxu0 %v2724_v51  ;;  %v7614_v1 = vadd.f32 %v2622_v6, %v8852_v18  ;;  %v8856_v13 = vld [vmem:[#allocation12_spill] sm:$0xff] }
 0x3aa   : > { %v5540_v40 = vpop.f32.mrf.mxu1  ;;  %5611 = vmatmul.mubr.bf16.gmra.mxu0 %v2725_v25  ;;  %v7621_v34 = vadd.f32 %v2624_v10, %v8856_v13  ;;  %v8858_v13 = vld [vmem:[#allocation15_spill] sm:$0xff] }
 0x3ab   : > { %v2623_v44 = vmax.f32 %v2515_v55, 0.0  ;;  %v7611_v42 = vadd.f32 %v2625_v3, %v8851_v52  ;;  %8853 = vst [vmem:[#allocation31_spill] sm:$0xff] %v7614_v1  ;;  %v2536_v47 = vadd.f32 %v5540_v40, %v7314_v57 }
 0x3ac   : > { %v2527_v41 = vpop.f32.mrf.mxu1  ;;  %8857 = vst [vmem:[#allocation32_spill] sm:$0xff] %v7621_v34 }
 0x3ad   : > { %v7617_v5 = vadd.f32 %v2623_v44, %v8854_v39  ;;  %v2528_v9 = vadd.f32 %v7314_v57, %v2527_v41  ;;  %v2727_v6 = vpack.c.bf16 %v7611_v42, %v7621_v34  ;;  %v2628_v52 = vmax.f32 %v2536_v47, 0.0 }
 0x3ae   : > { %v5541_v51 = vpop.f32.mrf.mxu1 }
 0x3af   : > { %8855 = vst [vmem:[#allocation30_spill] sm:$0xff] %v7617_v5  ;;  %v2539_v25 = vadd.f32 %v5541_v51, %v7314_v57  ;;  %v2726_v4 = vpack.c.bf16 %v7617_v5, %v7614_v1  ;;  %v2626_v55 = vmax.f32 %v2528_v9, 0.0  ;;  %v8859_v5 = vld [vmem:[#allocation13_spill] sm:$0xff] }
 0x3b0   : > { %v2530_v3 = vpop.f32.mrf.mxu1 }
 0x3b1   : > { %v2629_v39 = vmax.f32 %v2539_v25, 0.0  ;;  %v2531_v44 = vadd.f32 %v7314_v57, %v2530_v3  ;;  %5614 = vmatprep.mubr.bf16.mxu0 %v2726_v4  ;;  %v7634_v51 = vadd.f32 %v2626_v55, %v8858_v13  ;;  %v8861_v25 = vld [vmem:[#allocation14_spill] sm:$0xff] }
 0x3b2   : > { %v5544_v10 = vpop.f32.mrf.mxu1  ;;  %5615 = vmatmul.mubr.bf16.gmra.mxu0 %v2727_v6  ;;  %v7641_v34 = vadd.f32 %v2628_v52, %v8861_v25 }
 0x3b3   : > { %v2627_v41 = vmax.f32 %v2531_v44, 0.0  ;;  %v7631_v40 = vadd.f32 %v2629_v39, %v7240_v43  ;;  %v2552_v47 = vadd.f32 %v5544_v10, %v7314_v57 }
 0x3b4   : > { %v2543_v18 = vpop.f32.mrf.mxu1  ;;  %8862 = vst [vmem:[#allocation35_spill] sm:$0xff] %v7641_v34 }
 0x3b5   : > { %v7637_v1 = vadd.f32 %v2627_v41, %v8859_v5  ;;  %v2544_v9 = vadd.f32 %v7314_v57, %v2543_v18  ;;  %v2729_v3 = vpack.c.bf16 %v7631_v40, %v7641_v34  ;;  %v2632_v41 = vmax.f32 %v2552_v47, 0.0 }
 0x3b6   : > { %v5545_v4 = vpop.f32.mrf.mxu1 }
 0x3b7   : > { %8860 = vst [vmem:[#allocation33_spill] sm:$0xff] %v7637_v1  ;;  %v2555_v6 = vadd.f32 %v5545_v4, %v7314_v57  ;;  %v2728_v43 = vpack.c.bf16 %v7637_v1, %v7634_v51  ;;  %v2630_v39 = vmax.f32 %v2544_v9, 0.0  ;;  %v8864_v4 = vld [vmem:[#allocation16_spill] sm:$0xff] }
 0x3b8   : > { %v2546_v55 = vpop.f32.mrf.mxu1 }
 0x3b9   : > { %v2633_v5 = vmax.f32 %v2555_v6, 0.0  ;;  %v2547_v44 = vadd.f32 %v7314_v57, %v2546_v55  ;;  %5618 = vmatprep.mubr.bf16.mxu0 %v2728_v43  ;;  %v7654_v25 = vadd.f32 %v2630_v39, %v7264_v23  ;;  %v8866_v6 = vld [vmem:[#allocation17_spill] sm:$0xff] }
 0x3ba   : > { %v5548_v52 = vpop.f32.mrf.mxu1  ;;  %5619 = vmatmul.mubr.bf16.gmra.mxu0 %v2729_v3  ;;  %v7661_v34 = vadd.f32 %v2632_v41, %v8866_v6  ;;  %v8871_v6 = vld [vmem:[#allocation19_spill] sm:$0xff] }
 0x3bb   : > { %v2631_v18 = vmax.f32 %v2547_v44, 0.0  ;;  %v7651_v10 = vadd.f32 %v2633_v5, %v7267_v46  ;;  %8863 = vst [vmem:[#allocation34_spill] sm:$0xff] %v7654_v25  ;;  %v2568_v47 = vadd.f32 %v5548_v52, %v7314_v57 }
 0x3bc   : > { %v2559_v13 = vpop.f32.mrf.mxu1  ;;  %8867 = vst [vmem:[#allocation38_spill] sm:$0xff] %v7661_v34 }
 0x3bd   : > { %v7657_v1 = vadd.f32 %v2631_v18, %v8864_v4  ;;  %v2560_v9 = vadd.f32 %v7314_v57, %v2559_v13  ;;  %v2731_v23 = vpack.c.bf16 %v7651_v10, %v7661_v34  ;;  %v2636_v18 = vmax.f32 %v2568_v47, 0.0 }
 0x3be   : > { %v5549_v43 = vpop.f32.mrf.mxu1 }
 0x3bf   : > { %8865 = vst [vmem:[#allocation36_spill] sm:$0xff] %v7657_v1  ;;  %v2571_v3 = vadd.f32 %v5549_v43, %v7314_v57  ;;  %v2730_v46 = vpack.c.bf16 %v7657_v1, %v7654_v25  ;;  %v2634_v39 = vmax.f32 %v2560_v9, 0.0  ;;  %v7680_v43 = vadd.f32 %v2636_v18, %v8871_v6 }
 0x3c0   : > { %v2562_v55 = vpop.f32.mrf.mxu1 }
 0x3c1   : > { %v2637_v5 = vmax.f32 %v2571_v3, 0.0  ;;  %v2563_v44 = vadd.f32 %v7314_v57, %v2562_v55  ;;  %5622 = vmatprep.mubr.bf16.mxu0 %v2730_v46  ;;  %v7674_v13 = vadd.f32 %v2634_v39, %v7286_v24  ;;  %8872 = vst [vmem:[#allocation66_spill] sm:$0xff] %v7680_v43  ;;  %v7689_v24 = vld [vmem:[%s8452_s10] ss:$0 sm:$0xff] }
 0x3c2   : > { %5623 = vmatmul.mubr.bf16.gmra.mxu0 %v2731_v23 }
 0x3c3   : > { %v2635_v41 = vmax.f32 %v2563_v44, 0.0  ;;  %v7671_v52 = vadd.f32 %v2637_v5, %v7289_v14  ;;  %8869 = vst [vmem:[#allocation39_spill] sm:$0xff] %v7674_v13 }
 0x3c5   : > { %8868 = vst [vmem:[#allocation37_spill] sm:$0xff] %v7671_v52  ;;  %v7677_v4 = vadd.f32 %v2635_v41, %v7292_v12  ;;  %v2733_v57 = vpack.c.bf16 %v7671_v52, %v7680_v43  ;;  %v8873_v43 = vld [vmem:[#allocation18_spill] sm:$0xff]  ;;  %v8875_v52 = vld [vmem:[#allocation21_spill] sm:$0xff] }
 0x3c7   : > { %8870 = vst [vmem:[#allocation67_spill] sm:$0xff] %v7677_v4  ;;  %v2732_v9 = vpack.c.bf16 %v7677_v4, %v7674_v13  ;;  %v8874_v13 = vld [vmem:[#allocation20_spill] sm:$0xff] }
 0x3c9   : > { %5626 = vmatprep.mubr.bf16.mxu0 %v2732_v9 }
 0x3ca   : > { %5627 = vmatmul.mubr.bf16.gmra.mxu0 %v2733_v57 }
 0x412   : > { %v5568_v47 = vpop.f32.mrf.mxu0 }
 0x413   : > { %v2848_v3 = vadd.f32 %v5568_v47, %v7689_v24 }
 0x414   : > { %v2839_v14 = vpop.f32.mrf.mxu0 }
 0x415   : > { %v2840_v12 = vadd.f32 %v7689_v24, %v2839_v14  ;;  %v3096_v18 = vmax.f32 %v2848_v3, 0.0 }
 0x416   : > { %v5569_v46 = vpop.f32.mrf.mxu0 }
 0x417   : > { %v2851_v23 = vadd.f32 %v5569_v46, %v7689_v24  ;;  %v3094_v39 = vmax.f32 %v2840_v12, 0.0  ;;  %v3160_v34 = vadd.f32 %v3096_v18, %v8875_v52 }
 0x418   : > { %v2842_v55 = vpop.f32.mrf.mxu0 }
 0x419   : > { %v3097_v5 = vmax.f32 %v2851_v23, 0.0  ;;  %v2843_v44 = vadd.f32 %v7689_v24, %v2842_v55  ;;  %v3158_v4 = vadd.f32 %v3094_v39, %v8873_v43 }
 0x41a   : > { %v5572_v41 = vpop.f32.mrf.mxu0 }
 0x41b   : > { %v3095_v6 = vmax.f32 %v2843_v44, 0.0  ;;  %v3161_v9 = vadd.f32 %v3097_v5, %v7333_v22  ;;  %v2864_v46 = vadd.f32 %v5572_v41, %v7689_v24 }
 0x41c   : > { %v2855_v57 = vpop.f32.mrf.mxu0 }
 0x41d   : > { %v3159_v14 = vadd.f32 %v3095_v6, %v8874_v13  ;;  %v2856_v47 = vadd.f32 %v7689_v24, %v2855_v57  ;;  %v3223_v3 = vpack.c.bf16 %v3161_v9, %v3160_v34  ;;  %v3100_v43 = vmax.f32 %v2864_v46, 0.0 }
 0x41e   : > { %v5573_v12 = vpop.f32.mrf.mxu0 }
 0x41f   : > { %v2867_v23 = vadd.f32 %v5573_v12, %v7689_v24  ;;  %v3222_v55 = vpack.c.bf16 %v3159_v14, %v3158_v4  ;;  %v3098_v44 = vmax.f32 %v2856_v47, 0.0  ;;  %v3164_v34 = vadd.f32 %v3100_v43, %v7385_v21 }
 0x420   : > { %v2858_v1 = vpop.f32.mrf.mxu0 }
 0x421   : > { %v3101_v25 = vmax.f32 %v2867_v23, 0.0  ;;  %v2859_v22 = vadd.f32 %v7689_v24, %v2858_v1  ;;  %5646 = vmatprep.mubr.bf16.mxu0 %v3222_v55  ;;  %v3162_v18 = vadd.f32 %v3098_v44, %v7377_v7 }
 0x422   : > { %v5576_v39 = vpop.f32.mrf.mxu0  ;;  %5647 = vmatmul.mubr.bf16.vlgmr.msra.gmra.mxu0 %v3223_v3 }
 0x423   : > { %v3099_v13 = vmax.f32 %v2859_v22, 0.0  ;;  %v3165_v5 = vadd.f32 %v3101_v25, %v7368_v56  ;;  %v2880_v6 = vadd.f32 %v5576_v39, %v7689_v24 }
 0x424   : > { %v2871_v52 = vpop.f32.mrf.mxu0 }
 0x425   : > { %v3163_v41 = vadd.f32 %v3099_v13, %v7380_v58  ;;  %v2872_v4 = vadd.f32 %v7689_v24, %v2871_v52  ;;  %v3225_v14 = vpack.c.bf16 %v3165_v5, %v3164_v34  ;;  %v3104_v7 = vmax.f32 %v2880_v6, 0.0 }
 0x426   : > { %v5577_v9 = vpop.f32.mrf.mxu0 }
 0x427   : > { %v2883_v1 = vadd.f32 %v5577_v9, %v7689_v24  ;;  %v3224_v57 = vpack.c.bf16 %v3163_v41, %v3162_v18  ;;  %v3102_v46 = vmax.f32 %v2872_v4, 0.0  ;;  %v3168_v22 = vadd.f32 %v3104_v7, %v7411_v45 }
 0x428   : > { %v2874_v47 = vpop.f32.mrf.mxu0 }
 0x429   : > { %v3105_v12 = vmax.f32 %v2883_v1, 0.0  ;;  %v2875_v56 = vadd.f32 %v7689_v24, %v2874_v47  ;;  %5650 = vmatprep.mubr.bf16.mxu1 %v3224_v57  ;;  %v3166_v55 = vadd.f32 %v3102_v46, %v7404_v35 }
 0x42a   : > { %v5580_v25 = vpop.f32.mrf.mxu0  ;;  %5651 = vmatmul.mubr.bf16.vlgmr.msra.gmra.mxu1 %v3225_v14 }
 0x42b   : > { %v3103_v58 = vmax.f32 %v2875_v56, 0.0  ;;  %v3169_v23 = vadd.f32 %v3105_v12, %v7400_v8  ;;  %v2896_v43 = vadd.f32 %v5580_v25, %v7689_v24 }
 0x42c   : > { %v2887_v21 = vpop.f32.mrf.mxu0 }
 0x42d   : > { %v3167_v3 = vadd.f32 %v3103_v58, %v7407_v15  ;;  %v2888_v44 = vadd.f32 %v7689_v24, %v2887_v21  ;;  %v3227_v52 = vpack.c.bf16 %v3169_v23, %v3168_v22  ;;  %v3108_v35 = vmax.f32 %v2896_v43, 0.0 }
 0x42e   : > { %v5581_v39 = vpop.f32.mrf.mxu0 }
 0x42f   : > { %v2899_v13 = vadd.f32 %v5581_v39, %v7689_v24  ;;  %v3226_v5 = vpack.c.bf16 %v3167_v3, %v3166_v55  ;;  %v3106_v41 = vmax.f32 %v2888_v44, 0.0  ;;  %v3172_v14 = vadd.f32 %v3108_v35, %v7435_v62 }
 0x430   : > { %v2890_v18 = vpop.f32.mrf.mxu0 }
 0x431   : > { %v3109_v4 = vmax.f32 %v2899_v13, 0.0  ;;  %v2891_v8 = vadd.f32 %v7689_v24, %v2890_v18  ;;  %5654 = vmatprep.mubr.bf16.mxu1 %v3226_v5  ;;  %v3170_v9 = vadd.f32 %v3106_v41, %v7428_v36 }
 0x432   : > { %v5584_v34 = vpop.f32.mrf.mxu0  ;;  %5655 = vmatmul.mubr.bf16.gmra.mxu1 %v3227_v52 }
 0x433   : > { %v3107_v15 = vmax.f32 %v2891_v8, 0.0  ;;  %v3173_v6 = vadd.f32 %v3109_v4, %v7424_v2  ;;  %v2912_v47 = vadd.f32 %v5584_v34, %v7689_v24 }
 0x434   : > { %v2903_v45 = vpop.f32.mrf.mxu0 }
 0x435   : > { %v3171_v1 = vadd.f32 %v3107_v15, %v7431_v32  ;;  %v2904_v57 = vadd.f32 %v7689_v24, %v2903_v45  ;;  %v3229_v7 = vpack.c.bf16 %v3173_v6, %v3172_v14  ;;  %v3112_v36 = vmax.f32 %v2912_v47, 0.0 }
 0x436   : > { %v5585_v46 = vpop.f32.mrf.mxu0 }
 0x437   : > { %v2915_v12 = vadd.f32 %v5585_v46, %v7689_v24  ;;  %v3228_v56 = vpack.c.bf16 %v3171_v1, %v3170_v9  ;;  %v3110_v58 = vmax.f32 %v2904_v57, 0.0  ;;  %v3176_v43 = vadd.f32 %v3112_v36, %v7458_v54 }
 0x438   : > { %v2906_v25 = vpop.f32.mrf.mxu0 }
 0x439   : > { %v3113_v23 = vmax.f32 %v2915_v12, 0.0  ;;  %v2907_v2 = vadd.f32 %v7689_v24, %v2906_v25  ;;  %5658 = vmatprep.mubr.bf16.mxu1 %v3228_v56  ;;  %v3174_v3 = vadd.f32 %v3110_v58, %v7451_v26 }
 0x43a   : > { %v5588_v21 = vpop.f32.mrf.mxu0  ;;  %5659 = vmatmul.mubr.bf16.gmra.mxu1 %v3229_v7 }
 0x43b   : > { %v3111_v32 = vmax.f32 %v2907_v2, 0.0  ;;  %v3177_v55 = vadd.f32 %v3113_v23, %v7448_v53  ;;  %v2928_v39 = vadd.f32 %v5588_v21, %v7689_v24 }
 0x43c   : > { %v2919_v62 = vpop.f32.mrf.mxu0 }
 0x43d   : > { %v3175_v44 = vadd.f32 %v3111_v32, %v7454_v37  ;;  %v2920_v22 = vadd.f32 %v7689_v24, %v2919_v62  ;;  %v3231_v18 = vpack.c.bf16 %v3177_v55, %v3176_v43  ;;  %v3116_v26 = vmax.f32 %v2928_v39, 0.0 }
 0x43e   : > { %v5589_v13 = vpop.f32.mrf.mxu0 }
 0x43f   : > { %v2931_v5 = vadd.f32 %v5589_v13, %v7689_v24  ;;  %v3230_v52 = vpack.c.bf16 %v3175_v44, %v3174_v3  ;;  %v3114_v4 = vmax.f32 %v2920_v22, 0.0  ;;  %v3180_v9 = vadd.f32 %v3116_v26, %v7478_v0 }
 0x440   : > { %v2922_v41 = vpop.f32.mrf.mxu0 }
 0x441   : > { %v3117_v8 = vmax.f32 %v2931_v5, 0.0  ;;  %v2923_v53 = vadd.f32 %v7689_v24, %v2922_v41  ;;  %5662 = vmatprep.mubr.bf16.mxu1 %v3230_v52  ;;  %v3178_v15 = vadd.f32 %v3114_v4, %v7471_v27 }
 0x442   : > { %v5592_v35 = vpop.f32.mrf.mxu0  ;;  %5663 = vmatmul.mubr.bf16.gmra.mxu1 %v3231_v18 }
 0x443   : > { %v3115_v37 = vmax.f32 %v2923_v53, 0.0  ;;  %v3181_v34 = vadd.f32 %v3117_v8, %v7468_v29  ;;  %v2944_v1 = vadd.f32 %v5592_v35, %v7689_v24 }
 0x444   : > { %v2935_v54 = vpop.f32.mrf.mxu0 }
 0x445   : > { %v3179_v6 = vadd.f32 %v3115_v37, %v7474_v49  ;;  %v2936_v45 = vadd.f32 %v7689_v24, %v2935_v54  ;;  %v3233_v46 = vpack.c.bf16 %v3181_v34, %v3180_v9  ;;  %v3120_v27 = vmax.f32 %v2944_v1, 0.0 }
 0x446   : > { %v5593_v57 = vpop.f32.mrf.mxu0 }
 0x447   : > { %v2947_v14 = vadd.f32 %v5593_v57, %v7689_v24  ;;  %v3232_v47 = vpack.c.bf16 %v3179_v6, %v3178_v15  ;;  %v3118_v56 = vmax.f32 %v2936_v45, 0.0  ;;  %v3184_v21 = vadd.f32 %v3120_v27, %v7498_v59 }
 0x448   : > { %v2938_v12 = vpop.f32.mrf.mxu0 }
 0x449   : > { %v3121_v7 = vmax.f32 %v2947_v14, 0.0  ;;  %v2939_v29 = vadd.f32 %v7689_v24, %v2938_v12  ;;  %5666 = vmatprep.mubr.bf16.mxu1 %v3232_v47  ;;  %v3182_v23 = vadd.f32 %v3118_v56, %v7491_v28 }
 0x44a   : > { %v5596_v25 = vpop.f32.mrf.mxu0  ;;  %5667 = vmatmul.mubr.bf16.gmra.mxu1 %v3233_v46 }
 0x44b   : > { %v3119_v49 = vmax.f32 %v2939_v29, 0.0  ;;  %v3185_v58 = vadd.f32 %v3121_v7, %v7488_v38  ;;  %v2960_v32 = vadd.f32 %v5596_v25, %v7689_v24 }
 0x44c   : > { %v2951_v0 = vpop.f32.mrf.mxu0 }
 0x44d   : > { %v3183_v2 = vadd.f32 %v3119_v49, %v7494_v60  ;;  %v2952_v36 = vadd.f32 %v7689_v24, %v2951_v0  ;;  %v3235_v44 = vpack.c.bf16 %v3185_v58, %v3184_v21  ;;  %v3124_v28 = vmax.f32 %v2960_v32, 0.0 }
 0x44e   : > { %v5597_v55 = vpop.f32.mrf.mxu0 }
 0x44f   : > { %v2963_v62 = vadd.f32 %v5597_v55, %v7689_v24  ;;  %v3234_v3 = vpack.c.bf16 %v3183_v2, %v3182_v23  ;;  %v3122_v43 = vmax.f32 %v2952_v36, 0.0  ;;  %v3188_v4 = vadd.f32 %v3124_v28, %v7518_v50  ;;  %v8876_v36 = vld [vmem:[#allocation23_spill] sm:$0xff]  ;;  %v8877_v28 = vld [vmem:[#allocation22_spill] sm:$0xff] }
 0x450   : > { %v2954_v22 = vpop.f32.mrf.mxu0 }
 0x451   : > { %v3125_v39 = vmax.f32 %v2963_v62, 0.0  ;;  %v2955_v38 = vadd.f32 %v7689_v24, %v2954_v22  ;;  %5670 = vmatprep.mubr.bf16.mxu1 %v3234_v3  ;;  %v3186_v52 = vadd.f32 %v3122_v43, %v7511_v61 }
 0x452   : > { %v5600_v13 = vpop.f32.mrf.mxu0  ;;  %5671 = vmatmul.mubr.bf16.gmra.mxu1 %v3235_v44 }
 0x453   : > { %v3123_v60 = vmax.f32 %v2955_v38, 0.0  ;;  %v3189_v5 = vadd.f32 %v3125_v39, %v7508_v33  ;;  %v2976_v8 = vadd.f32 %v5600_v13, %v7689_v24 }
 0x454   : > { %v2967_v59 = vpop.f32.mrf.mxu0 }
 0x455   : > { %v3187_v18 = vadd.f32 %v3123_v60, %v7514_v11  ;;  %v2968_v41 = vadd.f32 %v7689_v24, %v2967_v59  ;;  %v3237_v37 = vpack.c.bf16 %v3189_v5, %v3188_v4  ;;  %v3128_v61 = vmax.f32 %v2976_v8, 0.0  ;;  %v8878_v5 = vld [vmem:[#allocation24_spill] sm:$0xff]  ;;  %v8880_v4 = vld [vmem:[#allocation27_spill] sm:$0xff] }
 0x456   : > { %v5601_v53 = vpop.f32.mrf.mxu0 }
 0x457   : > { %v2979_v26 = vadd.f32 %v5601_v53, %v7689_v24  ;;  %v3236_v35 = vpack.c.bf16 %v3187_v18, %v3186_v52  ;;  %v3126_v54 = vmax.f32 %v2968_v41, 0.0  ;;  %v3192_v14 = vadd.f32 %v3128_v61, %v7538_v19  ;;  %v8879_v52 = vld [vmem:[#allocation25_spill] sm:$0xff] }
 0x458   : > { %v2970_v34 = vpop.f32.mrf.mxu0 }
 0x459   : > { %v3129_v15 = vmax.f32 %v2979_v26, 0.0  ;;  %v2971_v33 = vadd.f32 %v7689_v24, %v2970_v34  ;;  %5674 = vmatprep.mubr.bf16.mxu1 %v3236_v35  ;;  %v3190_v9 = vadd.f32 %v3126_v54, %v7531_v48 }
 0x45a   : > { %v5604_v6 = vpop.f32.mrf.mxu0  ;;  %5675 = vmatmul.mubr.bf16.gmra.mxu1 %v3237_v37 }
 0x45b   : > { %v3127_v11 = vmax.f32 %v2971_v33, 0.0  ;;  %v3193_v45 = vadd.f32 %v3129_v15, %v7528_v63  ;;  %v2992_v47 = vadd.f32 %v5604_v6, %v7689_v24 }
 0x45c   : > { %v2983_v50 = vpop.f32.mrf.mxu0 }
 0x45d   : > { %v3191_v1 = vadd.f32 %v3127_v11, %v7534_v20  ;;  %v2984_v57 = vadd.f32 %v7689_v24, %v2983_v50  ;;  %v3239_v7 = vpack.c.bf16 %v3193_v45, %v3192_v14  ;;  %v3132_v48 = vmax.f32 %v2992_v47, 0.0  ;;  %v8882_v14 = vld [vmem:[#allocation28_spill] sm:$0xff] }
 0x45e   : > { %v5605_v46 = vpop.f32.mrf.mxu0 }
 0x45f   : > { %v2995_v12 = vadd.f32 %v5605_v46, %v7689_v24  ;;  %v3238_v56 = vpack.c.bf16 %v3191_v1, %v3190_v9  ;;  %v3130_v27 = vmax.f32 %v2984_v57, 0.0  ;;  %v3196_v21 = vadd.f32 %v3132_v48, %v8876_v36  ;;  %v8881_v1 = vld [vmem:[#allocation26_spill] sm:$0xff]  ;;  %v8884_v36 = vld [vmem:[#allocation31_spill] sm:$0xff] }
 0x460   : > { %v2986_v29 = vpop.f32.mrf.mxu0 }
 0x461   : > { %v3133_v25 = vmax.f32 %v2995_v12, 0.0  ;;  %v2987_v63 = vadd.f32 %v7689_v24, %v2986_v29  ;;  %5678 = vmatprep.mubr.bf16.mxu1 %v3238_v56  ;;  %v3194_v0 = vadd.f32 %v3130_v27, %v7551_v16  ;;  %v8883_v12 = vld [vmem:[#allocation29_spill] sm:$0xff] }
 0x462   : > { %v5608_v49 = vpop.f32.mrf.mxu0  ;;  %5679 = vmatmul.mubr.bf16.gmra.mxu1 %v3239_v7 }
 0x463   : > { %v3131_v20 = vmax.f32 %v2987_v63, 0.0  ;;  %v3197_v58 = vadd.f32 %v3133_v25, %v7548_v31  ;;  %v3008_v32 = vadd.f32 %v5608_v49, %v7689_v24 }
 0x464   : > { %v2999_v19 = vpop.f32.mrf.mxu0 }
 0x465   : > { %v3195_v23 = vadd.f32 %v3131_v20, %v7554_v30  ;;  %v3000_v2 = vadd.f32 %v7689_v24, %v2999_v19  ;;  %v3241_v44 = vpack.c.bf16 %v3197_v58, %v3196_v21  ;;  %v3136_v16 = vmax.f32 %v3008_v32, 0.0  ;;  %v8885_v32 = vld [vmem:[#allocation30_spill] sm:$0xff] }
 0x466   : > { %v5609_v55 = vpop.f32.mrf.mxu0 }
 0x467   : > { %v3011_v62 = vadd.f32 %v5609_v55, %v7689_v24  ;;  %v3240_v3 = vpack.c.bf16 %v3195_v23, %v3194_v0  ;;  %v3134_v43 = vmax.f32 %v3000_v2, 0.0  ;;  %v3200_v8 = vadd.f32 %v3136_v16, %v8880_v4 }
 0x468   : > { %v3002_v22 = vpop.f32.mrf.mxu0 }
 0x469   : > { %v3137_v39 = vmax.f32 %v3011_v62, 0.0  ;;  %v3003_v31 = vadd.f32 %v7689_v24, %v3002_v22  ;;  %5682 = vmatprep.mubr.bf16.mxu1 %v3240_v3  ;;  %v3198_v59 = vadd.f32 %v3134_v43, %v8878_v5  ;;  %v8886_v3 = vld [vmem:[#allocation32_spill] sm:$0xff] }
 0x46a   : > { %v5612_v38 = vpop.f32.mrf.mxu0  ;;  %5683 = vmatmul.mubr.bf16.gmra.mxu1 %v3241_v44 }
 0x46b   : > { %v3135_v30 = vmax.f32 %v3003_v31, 0.0  ;;  %v3201_v13 = vadd.f32 %v3137_v39, %v8877_v28  ;;  %v3024_v53 = vadd.f32 %v5612_v38, %v7689_v24 }
 0x46c   : > { %v3015_v60 = vpop.f32.mrf.mxu0 }
 0x46d   : > { %v3199_v18 = vadd.f32 %v3135_v30, %v8879_v52  ;;  %v3016_v41 = vadd.f32 %v7689_v24, %v3015_v60  ;;  %v3243_v34 = vpack.c.bf16 %v3201_v13, %v3200_v8  ;;  %v3140_v6 = vmax.f32 %v3024_v53, 0.0  ;;  %v8888_v53 = vld [vmem:[#allocation35_spill] sm:$0xff] }
 0x46e   : > { %v5613_v26 = vpop.f32.mrf.mxu0 }
 0x46f   : > { %v3027_v35 = vadd.f32 %v5613_v26, %v7689_v24  ;;  %v3242_v37 = vpack.c.bf16 %v3199_v18, %v3198_v59  ;;  %v3138_v15 = vmax.f32 %v3016_v41, 0.0  ;;  %v3204_v56 = vadd.f32 %v3140_v6, %v8883_v12  ;;  %v8887_v41 = vld [vmem:[#allocation33_spill] sm:$0xff]  ;;  %v8891_v12 = vld [vmem:[#allocation38_spill] sm:$0xff] }
 0x470   : > { %v3018_v54 = vpop.f32.mrf.mxu0 }
 0x471   : > { %v3141_v33 = vmax.f32 %v3027_v35, 0.0  ;;  %v3019_v61 = vadd.f32 %v7689_v24, %v3018_v54  ;;  %5686 = vmatprep.mubr.bf16.mxu1 %v3242_v37  ;;  %v3202_v57 = vadd.f32 %v3138_v15, %v8881_v1  ;;  %v8889_v1 = vld [vmem:[#allocation34_spill] sm:$0xff] }
 0x472   : > { %v5616_v11 = vpop.f32.mrf.mxu0  ;;  %5687 = vmatmul.mubr.bf16.gmra.mxu1 %v3243_v34 }
 0x473   : > { %v3139_v45 = vmax.f32 %v3019_v61, 0.0  ;;  %v3205_v50 = vadd.f32 %v3141_v33, %v7591_v17  ;;  %v3040_v7 = vadd.f32 %v5616_v11, %v7689_v24 }
 0x474   : > { %v3031_v9 = vpop.f32.mrf.mxu0 }
 0x475   : > { %v3203_v47 = vadd.f32 %v3139_v45, %v8882_v14  ;;  %v3032_v46 = vadd.f32 %v7689_v24, %v3031_v9  ;;  %v3245_v63 = vpack.c.bf16 %v3205_v50, %v3204_v56  ;;  %v3144_v58 = vmax.f32 %v3040_v7, 0.0  ;;  %v8890_v14 = vld [vmem:[#allocation36_spill] sm:$0xff] }
 0x476   : > { %v5617_v29 = vpop.f32.mrf.mxu0 }
 0x477   : > { %v3043_v27 = vadd.f32 %v5617_v29, %v7689_v24  ;;  %v3244_v25 = vpack.c.bf16 %v3203_v47, %v3202_v57  ;;  %v3142_v49 = vmax.f32 %v3032_v46, 0.0  ;;  %v3208_v44 = vadd.f32 %v3144_v58, %v8886_v3 }
 0x478   : > { %v3034_v48 = vpop.f32.mrf.mxu0 }
 0x479   : > { %v3145_v20 = vmax.f32 %v3043_v27, 0.0  ;;  %v3035_v17 = vadd.f32 %v7689_v24, %v3034_v48  ;;  %5690 = vmatprep.mubr.bf16.mxu1 %v3244_v25  ;;  %v3206_v21 = vadd.f32 %v3142_v49, %v8884_v36  ;;  %v8894_v36 = vld [vmem:[#allocation67_spill] sm:$0xff] }
 0x47a   : > { %v5620_v19 = vpop.f32.mrf.mxu0  ;;  %5691 = vmatmul.mubr.bf16.gmra.mxu1 %v3245_v63 }
 0x47b   : > { %v3143_v0 = vmax.f32 %v3035_v17, 0.0  ;;  %v3209_v23 = vadd.f32 %v3145_v20, %v7611_v42  ;;  %v3056_v22 = vadd.f32 %v5620_v19, %v7689_v24  ;;  %v8892_v19 = vld [vmem:[#allocation37_spill] sm:$0xff] }
 0x47c   : > { %v3047_v2 = vpop.f32.mrf.mxu0 }
 0x47d   : > { %v3207_v55 = vadd.f32 %v3143_v0, %v8885_v32  ;;  %v3048_v62 = vadd.f32 %v7689_v24, %v3047_v2  ;;  %v3247_v16 = vpack.c.bf16 %v3209_v23, %v3208_v44  ;;  %v3148_v13 = vmax.f32 %v3056_v22, 0.0  ;;  %v8893_v23 = vld [vmem:[#allocation39_spill] sm:$0xff]  ;;  %v8895_v32 = vld [vmem:[#allocation66_spill] sm:$0xff] }
 0x47e   : > { %v5621_v43 = vpop.f32.mrf.mxu0 }
 0x47f   : > { %v3059_v39 = vadd.f32 %v5621_v43, %v7689_v24  ;;  %v3246_v31 = vpack.c.bf16 %v3207_v55, %v3206_v21  ;;  %v3146_v30 = vmax.f32 %v3048_v62, 0.0  ;;  %v3212_v26 = vadd.f32 %v3148_v13, %v8888_v53 }
 0x480   : > { %v3050_v38 = vpop.f32.mrf.mxu0 }
 0x481   : > { %v3149_v28 = vmax.f32 %v3059_v39, 0.0  ;;  %v3051_v42 = vadd.f32 %v7689_v24, %v3050_v38  ;;  %5694 = vmatprep.mubr.bf16.mxu1 %v3246_v31  ;;  %v3210_v18 = vadd.f32 %v3146_v30, %v7634_v51 }
 0x482   : > { %v5624_v60 = vpop.f32.mrf.mxu0  ;;  %5695 = vmatmul.mubr.bf16.gmra.mxu1 %v3247_v16 }
 0x483   : > { %v3147_v5 = vmax.f32 %v3051_v42, 0.0  ;;  %v3213_v59 = vadd.f32 %v3149_v28, %v7631_v40  ;;  %v3072_v35 = vadd.f32 %v5624_v60, %v7689_v24 }
 0x484   : > { %v3063_v52 = vpop.f32.mrf.mxu0 }
 0x485   : > { %v3211_v4 = vadd.f32 %v3147_v5, %v8887_v41  ;;  %v3064_v8 = vadd.f32 %v7689_v24, %v3063_v52  ;;  %v3249_v15 = vpack.c.bf16 %v3213_v59, %v3212_v26  ;;  %v3152_v51 = vmax.f32 %v3072_v35, 0.0 }
 0x486   : > { %v5625_v37 = vpop.f32.mrf.mxu0 }
 0x487   : > { %v3075_v34 = vadd.f32 %v5625_v37, %v7689_v24  ;;  %v3248_v54 = vpack.c.bf16 %v3211_v4, %v3210_v18  ;;  %v3150_v61 = vmax.f32 %v3064_v8, 0.0  ;;  %v3216_v56 = vadd.f32 %v3152_v51, %v8891_v12 }
 0x488   : > { %v3066_v33 = vpop.f32.mrf.mxu0 }
 0x489   : > { %v3153_v6 = vmax.f32 %v3075_v34, 0.0  ;;  %v3067_v40 = vadd.f32 %v7689_v24, %v3066_v33  ;;  %5698 = vmatprep.mubr.bf16.mxu1 %v3248_v54  ;;  %v3214_v57 = vadd.f32 %v3150_v61, %v8889_v1 }
 0x48a   : > { %v5628_v11 = vpop.f32.mrf.mxu0  ;;  %5699 = vmatmul.mubr.bf16.gmra.mxu1 %v3249_v15 }
 0x48b   : > { %v3151_v45 = vmax.f32 %v3067_v40, 0.0  ;;  %v3217_v50 = vadd.f32 %v3153_v6, %v7651_v10  ;;  %v3088_v7 = vadd.f32 %v5628_v11, %v7689_v24 }
 0x48c   : > { %v3079_v9 = vpop.f32.mrf.mxu0 }
 0x48d   : > { %v3215_v47 = vadd.f32 %v3151_v45, %v8890_v14  ;;  %v3080_v46 = vadd.f32 %v7689_v24, %v3079_v9  ;;  %v3251_v63 = vpack.c.bf16 %v3217_v50, %v3216_v56  ;;  %v3156_v17 = vmax.f32 %v3088_v7, 0.0 }
 0x48e   : > { %v5629_v29 = vpop.f32.mrf.mxu0 }
 0x48f   : > { %v3091_v27 = vadd.f32 %v5629_v29, %v7689_v24  ;;  %v3250_v25 = vpack.c.bf16 %v3215_v47, %v3214_v57  ;;  %v3154_v49 = vmax.f32 %v3080_v46, 0.0  ;;  %v3220_v55 = vadd.f32 %v3156_v17, %v8895_v32 }
 0x490   : > { %v3082_v48 = vpop.f32.mrf.mxu0 }
 0x491   : > { %v3157_v20 = vmax.f32 %v3091_v27, 0.0  ;;  %v3083_v10 = vadd.f32 %v7689_v24, %v3082_v48  ;;  %5702 = vmatprep.mubr.bf16.mxu1 %v3250_v25  ;;  %v3218_v2 = vadd.f32 %v3154_v49, %v8893_v23  ;;  %v7822_v24 = vld [vmem:[%s8454_s12] ss:$0 sm:$0xff] }
 0x492   : > { %5703 = vmatmul.mubr.bf16.gmra.mxu1 %v3251_v63 }
 0x493   : > { %v3155_v58 = vmax.f32 %v3083_v10, 0.0  ;;  %v3221_v0 = vadd.f32 %v3157_v20, %v8892_v19 }
 0x495   : > { %v3219_v21 = vadd.f32 %v3155_v58, %v8894_v36  ;;  %v3253_v3 = vpack.c.bf16 %v3221_v0, %v3220_v55 }
 0x497   : > { %v3252_v62 = vpack.c.bf16 %v3219_v21, %v3218_v2 }
 0x499   : > { %5706 = vmatprep.mubr.bf16.mxu1 %v3252_v62 }
 0x49a   : > { %5707 = vmatmul.mubr.bf16.gmra.mxu1 %v3253_v3 }
 0x4e2   : > { %v5648_v44 = vpop.f32.mrf.mxu0 }
 0x4e3   : > { %v7825_v22 = vadd.f32 %v5648_v44, %v7822_v24 }
 0x4e4   : > { %v3359_v43 = vpop.f32.mrf.mxu0 }
 0x4e5   : > { %v7828_v39 = vadd.f32 %v7822_v24, %v3359_v43  ;;  %3618 = vmax.xlane.f32.xlu1 %v7825_v22 }
 0x4e6   : > { %v5649_v31 = vpop.f32.mrf.mxu0 }
 0x4e7   : > { %v7832_v16 = vadd.f32 %v5649_v31, %v7822_v24  ;;  %3614 = vmax.xlane.f32.xlu0 %v7828_v39 }
 0x4e8   : > { %v3362_v38 = vpop.f32.mrf.mxu0 }
 0x4e9   : > { %v7836_v30 = vadd.f32 %v7822_v24, %v3362_v38  ;;  %3620 = vmax.xlane.f32.xlu1 %v7832_v16 }
 0x4ea   : > { %v5652_v28 = vpop.f32.mrf.mxu1 }
 0x4eb   : > { %3616 = vmax.xlane.f32.xlu0 %v7836_v30  ;;  %v7841_v13 = vadd.f32 %v5652_v28, %v7822_v24 }
 0x4ec   : > { %v3375_v42 = vpop.f32.mrf.mxu1 }
 0x4ed   : > { %v7848_v52 = vadd.f32 %v7822_v24, %v3375_v42 }
 0x4ee   : > { %v5653_v60 = vpop.f32.mrf.mxu1 }
 0x4ef   : > { %v7844_v5 = vadd.f32 %v5653_v60, %v7822_v24  ;;  %3626 = vmax.xlane.f32.xlu0 %v7841_v13 }
 0x4f0   : > { %v3378_v59 = vpop.f32.mrf.mxu1 }
 0x4f1   : > { %3628 = vmax.xlane.f32.xlu1 %v7844_v5  ;;  %v7852_v41 = vadd.f32 %v7822_v24, %v3378_v59 }
 0x4f2   : > { %v5656_v18 = vpop.f32.mrf.mxu1 }
 0x4f3   : > { %3622 = vmax.xlane.f32.xlu0 %v7848_v52  ;;  %v7856_v8 = vadd.f32 %v5656_v18, %v7822_v24 }
 0x4f4   : > { %v3391_v4 = vpop.f32.mrf.mxu1 }
 0x4f5   : > { %3624 = vmax.xlane.f32.xlu1 %v7852_v41  ;;  %v7864_v37 = vadd.f32 %v7822_v24, %v3391_v4 }
 0x4f6   : > { %v5657_v53 = vpop.f32.mrf.mxu1 }
 0x4f7   : > { %v7860_v26 = vadd.f32 %v5657_v53, %v7822_v24  ;;  %3634 = vmax.xlane.f32.xlu0 %v7856_v8 }
 0x4f8   : > { %v3394_v35 = vpop.f32.mrf.mxu1 }
 0x4f9   : > { %3636 = vmax.xlane.f32.xlu1 %v7860_v26  ;;  %v7868_v54 = vadd.f32 %v7822_v24, %v3394_v35 }
 0x4fa   : > { %v5660_v34 = vpop.f32.mrf.mxu1 }
 0x4fb   : > { %3630 = vmax.xlane.f32.xlu0 %v7864_v37  ;;  %v7872_v33 = vadd.f32 %v5660_v34, %v7822_v24 }
 0x4fc   : > { %v3407_v15 = vpop.f32.mrf.mxu1 }
 0x4fd   : > { %3632 = vmax.xlane.f32.xlu1 %v7868_v54  ;;  %v7880_v51 = vadd.f32 %v7822_v24, %v3407_v15 }
 0x4fe   : > { %v5661_v61 = vpop.f32.mrf.mxu1 }
 0x4ff   : > { %v7876_v6 = vadd.f32 %v5661_v61, %v7822_v24  ;;  %3642 = vmax.xlane.f32.xlu0 %v7872_v33 }
 0x500   : > { %v3410_v40 = vpop.f32.mrf.mxu1 }
 0x501   : > { %3644 = vmax.xlane.f32.xlu1 %v7876_v6  ;;  %v7884_v45 = vadd.f32 %v7822_v24, %v3410_v40 }
 0x502   : > { %v5664_v11 = vpop.f32.mrf.mxu1 }
 0x503   : > { %3638 = vmax.xlane.f32.xlu0 %v7880_v51  ;;  %v7888_v9 = vadd.f32 %v5664_v11, %v7822_v24 }
 0x504   : > { %v3423_v50 = vpop.f32.mrf.mxu1 }
 0x505   : > { %3640 = vmax.xlane.f32.xlu1 %v7884_v45  ;;  %v7896_v47 = vadd.f32 %v7822_v24, %v3423_v50 }
 0x506   : > { %v5665_v1 = vpop.f32.mrf.mxu1 }
 0x507   : > { %v7892_v57 = vadd.f32 %v5665_v1, %v7822_v24  ;;  %3650 = vmax.xlane.f32.xlu0 %v7888_v9 }
 0x508   : > { %v3426_v14 = vpop.f32.mrf.mxu1 }
 0x509   : > { %3652 = vmax.xlane.f32.xlu1 %v7892_v57  ;;  %v7900_v12 = vadd.f32 %v7822_v24, %v3426_v14 }
 0x50a   : > { %v5668_v46 = vpop.f32.mrf.mxu1 }
 0x50b   : > { %3646 = vmax.xlane.f32.xlu0 %v7896_v47  ;;  %v7904_v7 = vadd.f32 %v5668_v46, %v7822_v24 }
 0x50c   : > { %v3439_v56 = vpop.f32.mrf.mxu1 }
 0x50d   : > { %3648 = vmax.xlane.f32.xlu1 %v7900_v12  ;;  %v7912_v63 = vadd.f32 %v7822_v24, %v3439_v56 }
 0x50e   : > { %v5669_v29 = vpop.f32.mrf.mxu1 }
 0x50f   : > { %v7908_v27 = vadd.f32 %v5669_v29, %v7822_v24  ;;  %3658 = vmax.xlane.f32.xlu0 %v7904_v7 }
 0x510   : > { %v3442_v25 = vpop.f32.mrf.mxu1 }
 0x511   : > { %3660 = vmax.xlane.f32.xlu1 %v7908_v27  ;;  %v7916_v49 = vadd.f32 %v7822_v24, %v3442_v25 }
 0x512   : > { %v5672_v48 = vpop.f32.mrf.mxu1 }
 0x513   : > { %3654 = vmax.xlane.f32.xlu0 %v7912_v63  ;;  %v7920_v10 = vadd.f32 %v5672_v48, %v7822_v24 }
 0x514   : > { %v3455_v20 = vpop.f32.mrf.mxu1 }
 0x515   : > { %3656 = vmax.xlane.f32.xlu1 %v7916_v49  ;;  %v7928_v0 = vadd.f32 %v7822_v24, %v3455_v20 }
 0x516   : > { %v5673_v17 = vpop.f32.mrf.mxu1 }
 0x517   : > { %v7924_v58 = vadd.f32 %v5673_v17, %v7822_v24  ;;  %3666 = vmax.xlane.f32.xlu0 %v7920_v10 }
 0x518   : > { %v3458_v19 = vpop.f32.mrf.mxu1 }
 0x519   : > { %3668 = vmax.xlane.f32.xlu1 %v7924_v58  ;;  %v7932_v2 = vadd.f32 %v7822_v24, %v3458_v19 }
 0x51a   : > { %v5676_v23 = vpop.f32.mrf.mxu1 }
 0x51b   : > { %3662 = vmax.xlane.f32.xlu0 %v7928_v0  ;;  %v7936_v21 = vadd.f32 %v5676_v23, %v7822_v24 }
 0x51c   : > { %v3471_v36 = vpop.f32.mrf.mxu1 }
 0x51d   : > { %3664 = vmax.xlane.f32.xlu1 %v7932_v2  ;;  %v7944_v3 = vadd.f32 %v7822_v24, %v3471_v36 }
 0x51e   : > { %v5677_v32 = vpop.f32.mrf.mxu1 }
 0x51f   : > { %v7940_v55 = vadd.f32 %v5677_v32, %v7822_v24  ;;  %3674 = vmax.xlane.f32.xlu0 %v7936_v21 }
 0x520   : > { %v3474_v62 = vpop.f32.mrf.mxu1 }
 0x521   : > { %3676 = vmax.xlane.f32.xlu1 %v7940_v55  ;;  %v7948_v43 = vadd.f32 %v7822_v24, %v3474_v62 }
 0x522   : > { %v5680_v44 = vpop.f32.mrf.mxu1 }
 0x523   : > { %3670 = vmax.xlane.f32.xlu0 %v7944_v3  ;;  %v7952_v38 = vadd.f32 %v5680_v44, %v7822_v24 }
 0x524   : > { %v3487_v31 = vpop.f32.mrf.mxu1 }
 0x525   : > { %3672 = vmax.xlane.f32.xlu1 %v7948_v43  ;;  %v7960_v59 = vadd.f32 %v7822_v24, %v3487_v31 }
 0x526   : > { %v5681_v28 = vpop.f32.mrf.mxu1 }
 0x527   : > { %v7956_v42 = vadd.f32 %v5681_v28, %v7822_v24  ;;  %3682 = vmax.xlane.f32.xlu0 %v7952_v38 }
 0x528   : > { %v3490_v60 = vpop.f32.mrf.mxu1 }
 0x529   : > { %3684 = vmax.xlane.f32.xlu1 %v7956_v42  ;;  %v7964_v4 = vadd.f32 %v7822_v24, %v3490_v60 }
 0x52a   : > { %v5684_v18 = vpop.f32.mrf.mxu1 }
 0x52b   : > { %3678 = vmax.xlane.f32.xlu0 %v7960_v59  ;;  %v7968_v35 = vadd.f32 %v5684_v18, %v7822_v24 }
 0x52c   : > { %v3503_v53 = vpop.f32.mrf.mxu1 }
 0x52d   : > { %3680 = vmax.xlane.f32.xlu1 %v7964_v4  ;;  %v7976_v40 = vadd.f32 %v7822_v24, %v3503_v53 }
 0x52e   : > { %v5685_v34 = vpop.f32.mrf.mxu1 }
 0x52f   : > { %v7972_v15 = vadd.f32 %v5685_v34, %v7822_v24  ;;  %3690 = vmax.xlane.f32.xlu0 %v7968_v35 }
 0x530   : > { %v3506_v61 = vpop.f32.mrf.mxu1 }
 0x531   : > { %3692 = vmax.xlane.f32.xlu1 %v7972_v15  ;;  %v7980_v50 = vadd.f32 %v7822_v24, %v3506_v61 }
 0x532   : > { %v5688_v11 = vpop.f32.mrf.mxu1 }
 0x533   : > { %3686 = vmax.xlane.f32.xlu0 %v7976_v40  ;;  %v7984_v14 = vadd.f32 %v5688_v11, %v7822_v24 }
 0x534   : > { %v3519_v1 = vpop.f32.mrf.mxu1 }
 0x535   : > { %3688 = vmax.xlane.f32.xlu1 %v7980_v50  ;;  %v7992_v25 = vadd.f32 %v7822_v24, %v3519_v1 }
 0x536   : > { %v5689_v46 = vpop.f32.mrf.mxu1 }
 0x537   : > { %v7988_v56 = vadd.f32 %v5689_v46, %v7822_v24  ;;  %3698 = vmax.xlane.f32.xlu0 %v7984_v14 }
 0x538   : > { %v3522_v29 = vpop.f32.mrf.mxu1 }
 0x539   : > { %3700 = vmax.xlane.f32.xlu1 %v7988_v56  ;;  %v7996_v20 = vadd.f32 %v7822_v24, %v3522_v29 }
 0x53a   : > { %v5692_v48 = vpop.f32.mrf.mxu1 }
 0x53b   : > { %3694 = vmax.xlane.f32.xlu0 %v7992_v25  ;;  %v8000_v19 = vadd.f32 %v5692_v48, %v7822_v24 }
 0x53c   : > { %v3535_v17 = vpop.f32.mrf.mxu1 }
 0x53d   : > { %3696 = vmax.xlane.f32.xlu1 %v7996_v20  ;;  %v8008_v62 = vadd.f32 %v7822_v24, %v3535_v17 }
 0x53e   : > { %v5693_v23 = vpop.f32.mrf.mxu1 }
 0x53f   : > { %v8004_v36 = vadd.f32 %v5693_v23, %v7822_v24  ;;  %3706 = vmax.xlane.f32.xlu0 %v8000_v19 }
 0x540   : > { %v3538_v32 = vpop.f32.mrf.mxu1 }
 0x541   : > { %3708 = vmax.xlane.f32.xlu1 %v8004_v36  ;;  %v8012_v31 = vadd.f32 %v7822_v24, %v3538_v32 }
 0x542   : > { %v5696_v44 = vpop.f32.mrf.mxu1 }
 0x543   : > { %3702 = vmax.xlane.f32.xlu0 %v8008_v62  ;;  %v8016_v60 = vadd.f32 %v5696_v44, %v7822_v24 }
 0x544   : > { %v3551_v28 = vpop.f32.mrf.mxu1 }
 0x545   : > { %3704 = vmax.xlane.f32.xlu1 %v8012_v31  ;;  %v8024_v61 = vadd.f32 %v7822_v24, %v3551_v28 }
 0x546   : > { %v5697_v18 = vpop.f32.mrf.mxu1 }
 0x547   : > { %v8020_v53 = vadd.f32 %v5697_v18, %v7822_v24  ;;  %3714 = vmax.xlane.f32.xlu0 %v8016_v60  ;;  %8896 = vst [vmem:[#allocation40_spill] sm:$0xff] %v8024_v61 }
 0x548   : > { %v3554_v34 = vpop.f32.mrf.mxu1 }
 0x549   : > { %3716 = vmax.xlane.f32.xlu1 %v8020_v53  ;;  %v8028_v1 = vadd.f32 %v7822_v24, %v3554_v34 }
 0x54a   : > { %v5700_v11 = vpop.f32.mrf.mxu1 }
 0x54b   : > { %8897 = vst [vmem:[#allocation42_spill] sm:$0xff] %v8028_v1  ;;  %3710 = vmax.xlane.f32.xlu0 %v8024_v61  ;;  %v8032_v29 = vadd.f32 %v5700_v11, %v7822_v24 }
 0x54c   : > { %v3567_v46 = vpop.f32.mrf.mxu1 }
 0x54d   : > { %8898 = vst [vmem:[#allocation41_spill] sm:$0xff] %v8032_v29  ;;  %3712 = vmax.xlane.f32.xlu1 %v8028_v1  ;;  %v8040_v32 = vadd.f32 %v7822_v24, %v3567_v46 }
 0x54e   : > { %v5701_v48 = vpop.f32.mrf.mxu1 }
 0x54f   : > { %v8036_v17 = vadd.f32 %v5701_v48, %v7822_v24  ;;  %3722 = vmax.xlane.f32.xlu0 %v8032_v29  ;;  %8900 = vst [vmem:[#allocation68_spill] sm:$0xff] %v8040_v32 }
 0x550   : > { %v3570_v23 = vpop.f32.mrf.mxu1 }
 0x551   : > { %8899 = vst [vmem:[#allocation43_spill] sm:$0xff] %v8036_v17  ;;  %3724 = vmax.xlane.f32.xlu1 %v8036_v17  ;;  %v8044_v28 = vadd.f32 %v7822_v24, %v3570_v23 }
 0x552   : > { %v5704_v44 = vpop.f32.mrf.mxu1 }
 0x553   : > { %8901 = vst [vmem:[#allocation69_spill] sm:$0xff] %v8044_v28  ;;  %3718 = vmax.xlane.f32.xlu0 %v8040_v32  ;;  %v8048_v34 = vadd.f32 %v5704_v44, %v7822_v24 }
 0x554   : > { %v3583_v18 = vpop.f32.mrf.mxu1 }
 0x555   : > { %8902 = vst [vmem:[#allocation71_spill] sm:$0xff] %v8048_v34  ;;  %3720 = vmax.xlane.f32.xlu1 %v8044_v28  ;;  %v8056_v17 = vadd.f32 %v7822_v24, %v3583_v18 }
 0x556   : > { %v5705_v11 = vpop.f32.mrf.mxu1 }
 0x557   : > { %v8052_v48 = vadd.f32 %v5705_v11, %v7822_v24  ;;  %3730 = vmax.xlane.f32.xlu0 %v8048_v34  ;;  %8904 = vst [vmem:[#allocation44_spill] sm:$0xff] %v8056_v17 }
 0x558   : > { %v3586_v46 = vpop.f32.mrf.mxu1 }
 0x559   : > { %8903 = vst [vmem:[#allocation70_spill] sm:$0xff] %v8052_v48  ;;  %3732 = vmax.xlane.f32.xlu1 %v8052_v48  ;;  %v8060_v32 = vadd.f32 %v7822_v24, %v3586_v46 }
 0x55a   : > { %v5708_v23 = vpop.f32.mrf.mxu1 }
 0x55b   : > { %8905 = vst [vmem:[#allocation46_spill] sm:$0xff] %v8060_v32  ;;  %3726 = vmax.xlane.f32.xlu0 %v8056_v17  ;;  %v8064_v28 = vadd.f32 %v5708_v23, %v7822_v24 }
 0x55c   : > { %v3599_v44 = vpop.f32.mrf.mxu1 }
 0x55d   : > { %8906 = vst [vmem:[#allocation45_spill] sm:$0xff] %v8064_v28  ;;  %3728 = vmax.xlane.f32.xlu1 %v8060_v32  ;;  %v8072_v48 = vadd.f32 %v7822_v24, %v3599_v44 }
 0x55e   : > { %v5709_v11 = vpop.f32.mrf.mxu1 }
 0x55f   : > { %v8068_v34 = vadd.f32 %v5709_v11, %v7822_v24  ;;  %3738 = vmax.xlane.f32.xlu0 %v8064_v28  ;;  %8908 = vst [vmem:[#allocation73_spill] sm:$0xff] %v8072_v48 }
 0x560   : > { %v3602_v18 = vpop.f32.mrf.mxu1 }
 0x561   : > { %8907 = vst [vmem:[#allocation47_spill] sm:$0xff] %v8068_v34  ;;  %3740 = vmax.xlane.f32.xlu1 %v8068_v34  ;;  %v8076_v46 = vadd.f32 %v7822_v24, %v3602_v18 }
 0x563   : > { %8909 = vst [vmem:[#allocation72_spill] sm:$0xff] %v8076_v46  ;;  %3734 = vmax.xlane.f32.xlu0 %v8072_v48 }
 0x565   : > { %3736 = vmax.xlane.f32.xlu1 %v8076_v46 }
 0x56e   : > { %v3619_v23 = vpop.xlane.xlu1 %3618 }
 0x56f   : > { %v3744_v32 = vsub.f32 %v7825_v22, %v3619_v23 }
 0x570   : > { %v3615_v11 = vpop.xlane.xlu0 %3614 }
 0x571   : > { %v3810_v17 = vmul.f32 1.442695, %v3744_v32  ;;  %v3742_v28 = vsub.f32 %v7828_v39, %v3615_v11 }
 0x572   : > { %v3621_v29 = vpop.xlane.xlu1 %3620 }
 0x573   : > { %5808 = vpow2.f32 %v3810_v17  ;;  %v3806_v44 = vmul.f32 1.442695, %v3742_v28  ;;  %v3745_v1 = vsub.f32 %v7832_v16, %v3621_v29 }
 0x574   : > { %v3617_v34 = vpop.xlane.xlu0 %3616 }
 0x575   : > { %v3812_v61 = vmul.f32 1.442695, %v3745_v1  ;;  %v3743_v24 = vsub.f32 %v7836_v30, %v3617_v34  ;;  %5810 = vpow2.f32 %v3806_v44 }
 0x577   : > { %5812 = vpow2.f32 %v3812_v61  ;;  %v3808_v18 = vmul.f32 1.442695, %v3743_v24 }
 0x578   : > { %v3627_v46 = vpop.xlane.xlu0 %3626 }
 0x579   : > { %v3748_v48 = vsub.f32 %v7841_v13, %v3627_v46  ;;  %5814 = vpow2.f32 %v3808_v18 }
 0x57a   : > { %v3629_v22 = vpop.xlane.xlu1 %3628 }
 0x57b   : > { %v3818_v32 = vmul.f32 1.442695, %v3748_v48  ;;  %v3749_v39 = vsub.f32 %v7844_v5, %v3629_v22 }
 0x57c   : > { %v3623_v23 = vpop.xlane.xlu0 %3622 }
 0x57d   : > { %5816 = vpow2.f32 %v3818_v32  ;;  %v3820_v17 = vmul.f32 1.442695, %v3749_v39  ;;  %v3746_v16 = vsub.f32 %v7848_v52, %v3623_v23 }
 0x57e   : > { %v3625_v29 = vpop.xlane.xlu1 %3624 }
 0x57f   : > { %5818 = vpow2.f32 %v3820_v17  ;;  %v3814_v1 = vmul.f32 1.442695, %v3746_v16  ;;  %v3747_v30 = vsub.f32 %v7852_v41, %v3625_v29 }
 0x580   : > { %v8088_v61 = vpop.eup %5808  ;;  %v3635_v28 = vpop.xlane.xlu0 %3634 }
 0x581   : > { %5820 = vpow2.f32 %v3814_v1  ;;  %v3816_v13 = vmul.f32 1.442695, %v3747_v30  ;;  %v3752_v34 = vsub.f32 %v7856_v8, %v3635_v28  ;;  %3938 = vadd.xlane.f32.xlu0 %v8088_v61 }
 0x582   : > { %v3637_v5 = vpop.xlane.xlu1 %3636  ;;  %v8092_v48 = vpop.eup %5810 }
 0x583   : > { %5822 = vpow2.f32 %v3816_v13  ;;  %v3826_v46 = vmul.f32 1.442695, %v3752_v34  ;;  %v3753_v52 = vsub.f32 %v7860_v26, %v3637_v5 }
 0x584   : > { %v8095_v11 = vpop.eup %5812  ;;  %v3631_v44 = vpop.xlane.xlu0 %3630 }
 0x585   : > { %5824 = vpow2.f32 %v3826_v46  ;;  %v3828_v41 = vmul.f32 1.442695, %v3753_v52  ;;  %v3750_v24 = vsub.f32 %v7864_v37, %v3631_v44  ;;  %3940 = vadd.xlane.f32.xlu1 %v8095_v11  ;;  %3934 = vadd.xlane.f32.xlu0 %v8092_v48 }
 0x586   : > { %v3633_v8 = vpop.xlane.xlu1 %3632  ;;  %v8101_v32 = vpop.eup %5814 }
 0x587   : > { %5826 = vpow2.f32 %v3828_v41  ;;  %v3822_v18 = vmul.f32 1.442695, %v3750_v24  ;;  %v3751_v22 = vsub.f32 %v7868_v54, %v3633_v8 }
 0x588   : > { %v3643_v39 = vpop.xlane.xlu0 %3642 }
 0x589   : > { %5828 = vpow2.f32 %v3822_v18  ;;  %v3824_v26 = vmul.f32 1.442695, %v3751_v22  ;;  %v3756_v23 = vsub.f32 %v7872_v33, %v3643_v39  ;;  %3936 = vadd.xlane.f32.xlu1 %v8101_v32 }
 0x58a   : > { %v8105_v17 = vpop.eup %5816  ;;  %v3645_v37 = vpop.xlane.xlu1 %3644 }
 0x58b   : > { %5830 = vpow2.f32 %v3824_v26  ;;  %v3834_v16 = vmul.f32 1.442695, %v3756_v23  ;;  %v3757_v29 = vsub.f32 %v7876_v6, %v3645_v37  ;;  %3946 = vadd.xlane.f32.xlu0 %v8105_v17 }
 0x58c   : > { %v8109_v1 = vpop.eup %5818  ;;  %v3639_v54 = vpop.xlane.xlu0 %3638 }
 0x58d   : > { %5832 = vpow2.f32 %v3834_v16  ;;  %v3836_v30 = vmul.f32 1.442695, %v3757_v29  ;;  %v3754_v28 = vsub.f32 %v7880_v51, %v3639_v54  ;;  %3948 = vadd.xlane.f32.xlu1 %v8109_v1 }
 0x58e   : > { %v8113_v33 = vpop.eup %5820  ;;  %v3641_v13 = vpop.xlane.xlu1 %3640 }
 0x58f   : > { %5834 = vpow2.f32 %v3836_v30  ;;  %v3830_v34 = vmul.f32 1.442695, %v3754_v28  ;;  %v3755_v5 = vsub.f32 %v7884_v45, %v3641_v13  ;;  %3942 = vadd.xlane.f32.xlu0 %v8113_v33 }
 0x590   : > { %v8117_v6 = vpop.eup %5822  ;;  %v3651_v46 = vpop.xlane.xlu0 %3650 }
 0x591   : > { %5836 = vpow2.f32 %v3830_v34  ;;  %v3832_v52 = vmul.f32 1.442695, %v3755_v5  ;;  %v3760_v44 = vsub.f32 %v7888_v9, %v3651_v46  ;;  %3944 = vadd.xlane.f32.xlu1 %v8117_v6 }
 0x592   : > { %v8121_v51 = vpop.eup %5824  ;;  %v3653_v41 = vpop.xlane.xlu1 %3652 }
 0x593   : > { %5838 = vpow2.f32 %v3832_v52  ;;  %v3842_v24 = vmul.f32 1.442695, %v3760_v44  ;;  %v3761_v8 = vsub.f32 %v7892_v57, %v3653_v41  ;;  %3954 = vadd.xlane.f32.xlu0 %v8121_v51 }
 0x594   : > { %v8125_v45 = vpop.eup %5826  ;;  %v3647_v18 = vpop.xlane.xlu0 %3646 }
 0x595   : > { %5840 = vpow2.f32 %v3842_v24  ;;  %v3844_v22 = vmul.f32 1.442695, %v3761_v8  ;;  %v3758_v39 = vsub.f32 %v7896_v47, %v3647_v18  ;;  %3956 = vadd.xlane.f32.xlu1 %v8125_v45 }
 0x596   : > { %v8129_v9 = vpop.eup %5828  ;;  %v3649_v26 = vpop.xlane.xlu1 %3648 }
 0x597   : > { %5842 = vpow2.f32 %v3844_v22  ;;  %v3838_v23 = vmul.f32 1.442695, %v3758_v39  ;;  %v3759_v37 = vsub.f32 %v7900_v12, %v3649_v26  ;;  %3950 = vadd.xlane.f32.xlu0 %v8129_v9 }
 0x598   : > { %v8133_v57 = vpop.eup %5830  ;;  %v3659_v16 = vpop.xlane.xlu0 %3658 }
 0x599   : > { %5844 = vpow2.f32 %v3838_v23  ;;  %v3840_v29 = vmul.f32 1.442695, %v3759_v37  ;;  %v3764_v54 = vsub.f32 %v7904_v7, %v3659_v16  ;;  %3952 = vadd.xlane.f32.xlu1 %v8133_v57 }
 0x59a   : > { %v8137_v47 = vpop.eup %5832  ;;  %v3661_v30 = vpop.xlane.xlu1 %3660 }
 0x59b   : > { %5846 = vpow2.f32 %v3840_v29  ;;  %v3850_v28 = vmul.f32 1.442695, %v3764_v54  ;;  %v3765_v13 = vsub.f32 %v7908_v27, %v3661_v30  ;;  %3962 = vadd.xlane.f32.xlu0 %v8137_v47 }
 0x59c   : > { %v8141_v12 = vpop.eup %5834  ;;  %v3655_v34 = vpop.xlane.xlu0 %3654 }
 0x59d   : > { %5848 = vpow2.f32 %v3850_v28  ;;  %v3852_v5 = vmul.f32 1.442695, %v3765_v13  ;;  %v3762_v46 = vsub.f32 %v7912_v63, %v3655_v34  ;;  %3964 = vadd.xlane.f32.xlu1 %v8141_v12 }
 0x59e   : > { %v8145_v7 = vpop.eup %5836  ;;  %v3657_v52 = vpop.xlane.xlu1 %3656 }
 0x59f   : > { %5850 = vpow2.f32 %v3852_v5  ;;  %v3846_v44 = vmul.f32 1.442695, %v3762_v46  ;;  %v3763_v41 = vsub.f32 %v7916_v49, %v3657_v52  ;;  %3958 = vadd.xlane.f32.xlu0 %v8145_v7 }
 0x5a0   : > { %v8149_v27 = vpop.eup %5838  ;;  %v3667_v24 = vpop.xlane.xlu0 %3666 }
 0x5a1   : > { %5852 = vpow2.f32 %v3846_v44  ;;  %v3848_v8 = vmul.f32 1.442695, %v3763_v41  ;;  %v3768_v18 = vsub.f32 %v7920_v10, %v3667_v24  ;;  %3960 = vadd.xlane.f32.xlu1 %v8149_v27 }
 0x5a2   : > { %v8153_v63 = vpop.eup %5840  ;;  %v3669_v22 = vpop.xlane.xlu1 %3668 }
 0x5a3   : > { %5854 = vpow2.f32 %v3848_v8  ;;  %v3858_v39 = vmul.f32 1.442695, %v3768_v18  ;;  %v3769_v26 = vsub.f32 %v7924_v58, %v3669_v22  ;;  %3970 = vadd.xlane.f32.xlu0 %v8153_v63 }
 0x5a4   : > { %v8157_v49 = vpop.eup %5842  ;;  %v3663_v23 = vpop.xlane.xlu0 %3662 }
 0x5a5   : > { %5856 = vpow2.f32 %v3858_v39  ;;  %v3860_v37 = vmul.f32 1.442695, %v3769_v26  ;;  %v3766_v16 = vsub.f32 %v7928_v0, %v3663_v23  ;;  %3972 = vadd.xlane.f32.xlu1 %v8157_v49 }
 0x5a6   : > { %v8161_v10 = vpop.eup %5844  ;;  %v3665_v29 = vpop.xlane.xlu1 %3664 }
 0x5a7   : > { %5858 = vpow2.f32 %v3860_v37  ;;  %v3854_v54 = vmul.f32 1.442695, %v3766_v16  ;;  %v3767_v30 = vsub.f32 %v7932_v2, %v3665_v29  ;;  %3966 = vadd.xlane.f32.xlu0 %v8161_v10 }
 0x5a8   : > { %v8165_v58 = vpop.eup %5846  ;;  %v3675_v28 = vpop.xlane.xlu0 %3674 }
 0x5a9   : > { %5860 = vpow2.f32 %v3854_v54  ;;  %v3856_v13 = vmul.f32 1.442695, %v3767_v30  ;;  %v3772_v34 = vsub.f32 %v7936_v21, %v3675_v28  ;;  %3968 = vadd.xlane.f32.xlu1 %v8165_v58 }
 0x5aa   : > { %v8169_v0 = vpop.eup %5848  ;;  %v3677_v5 = vpop.xlane.xlu1 %3676 }
 0x5ab   : > { %5862 = vpow2.f32 %v3856_v13  ;;  %v3866_v46 = vmul.f32 1.442695, %v3772_v34  ;;  %v3773_v52 = vsub.f32 %v7940_v55, %v3677_v5  ;;  %3978 = vadd.xlane.f32.xlu0 %v8169_v0 }
 0x5ac   : > { %v8173_v2 = vpop.eup %5850  ;;  %v3671_v44 = vpop.xlane.xlu0 %3670 }
 0x5ad   : > { %5864 = vpow2.f32 %v3866_v46  ;;  %v3868_v41 = vmul.f32 1.442695, %v3773_v52  ;;  %v3770_v24 = vsub.f32 %v7944_v3, %v3671_v44  ;;  %3980 = vadd.xlane.f32.xlu1 %v8173_v2 }
 0x5ae   : > { %v8177_v21 = vpop.eup %5852  ;;  %v3673_v8 = vpop.xlane.xlu1 %3672 }
 0x5af   : > { %5866 = vpow2.f32 %v3868_v41  ;;  %v3862_v18 = vmul.f32 1.442695, %v3770_v24  ;;  %v3771_v22 = vsub.f32 %v7948_v43, %v3673_v8  ;;  %3974 = vadd.xlane.f32.xlu0 %v8177_v21 }
 0x5b0   : > { %v8181_v55 = vpop.eup %5854  ;;  %v3683_v39 = vpop.xlane.xlu0 %3682 }
 0x5b1   : > { %5868 = vpow2.f32 %v3862_v18  ;;  %v3864_v26 = vmul.f32 1.442695, %v3771_v22  ;;  %v3776_v23 = vsub.f32 %v7952_v38, %v3683_v39  ;;  %3976 = vadd.xlane.f32.xlu1 %v8181_v55 }
 0x5b2   : > { %v8185_v3 = vpop.eup %5856  ;;  %v3685_v37 = vpop.xlane.xlu1 %3684 }
 0x5b3   : > { %5870 = vpow2.f32 %v3864_v26  ;;  %v3874_v16 = vmul.f32 1.442695, %v3776_v23  ;;  %v3777_v29 = vsub.f32 %v7956_v42, %v3685_v37  ;;  %3986 = vadd.xlane.f32.xlu0 %v8185_v3 }
 0x5b4   : > { %v8189_v43 = vpop.eup %5858  ;;  %v3679_v54 = vpop.xlane.xlu0 %3678 }
 0x5b5   : > { %5872 = vpow2.f32 %v3874_v16  ;;  %v3876_v30 = vmul.f32 1.442695, %v3777_v29  ;;  %v3774_v28 = vsub.f32 %v7960_v59, %v3679_v54  ;;  %3988 = vadd.xlane.f32.xlu1 %v8189_v43 }
 0x5b6   : > { %v8193_v38 = vpop.eup %5860  ;;  %v3681_v13 = vpop.xlane.xlu1 %3680 }
 0x5b7   : > { %5874 = vpow2.f32 %v3876_v30  ;;  %v3870_v34 = vmul.f32 1.442695, %v3774_v28  ;;  %v3775_v5 = vsub.f32 %v7964_v4, %v3681_v13  ;;  %3982 = vadd.xlane.f32.xlu0 %v8193_v38 }
 0x5b8   : > { %v8197_v42 = vpop.eup %5862  ;;  %v3691_v46 = vpop.xlane.xlu0 %3690 }
 0x5b9   : > { %5876 = vpow2.f32 %v3870_v34  ;;  %v3872_v52 = vmul.f32 1.442695, %v3775_v5  ;;  %v3780_v44 = vsub.f32 %v7968_v35, %v3691_v46  ;;  %3984 = vadd.xlane.f32.xlu1 %v8197_v42 }
 0x5ba   : > { %v8201_v59 = vpop.eup %5864  ;;  %v3693_v41 = vpop.xlane.xlu1 %3692 }
 0x5bb   : > { %5878 = vpow2.f32 %v3872_v52  ;;  %v3882_v24 = vmul.f32 1.442695, %v3780_v44  ;;  %v3781_v8 = vsub.f32 %v7972_v15, %v3693_v41  ;;  %3994 = vadd.xlane.f32.xlu0 %v8201_v59 }
 0x5bc   : > { %v8205_v4 = vpop.eup %5866  ;;  %v3687_v18 = vpop.xlane.xlu0 %3686 }
 0x5bd   : > { %5880 = vpow2.f32 %v3882_v24  ;;  %v3884_v22 = vmul.f32 1.442695, %v3781_v8  ;;  %v3778_v39 = vsub.f32 %v7976_v40, %v3687_v18  ;;  %3996 = vadd.xlane.f32.xlu1 %v8205_v4 }
 0x5be   : > { %v8209_v35 = vpop.eup %5868  ;;  %v3689_v26 = vpop.xlane.xlu1 %3688 }
 0x5bf   : > { %5882 = vpow2.f32 %v3884_v22  ;;  %v3878_v23 = vmul.f32 1.442695, %v3778_v39  ;;  %v3779_v37 = vsub.f32 %v7980_v50, %v3689_v26  ;;  %3990 = vadd.xlane.f32.xlu0 %v8209_v35 }
 0x5c0   : > { %v8213_v15 = vpop.eup %5870  ;;  %v3699_v16 = vpop.xlane.xlu0 %3698 }
 0x5c1   : > { %5884 = vpow2.f32 %v3878_v23  ;;  %v3880_v29 = vmul.f32 1.442695, %v3779_v37  ;;  %v3784_v54 = vsub.f32 %v7984_v14, %v3699_v16  ;;  %3992 = vadd.xlane.f32.xlu1 %v8213_v15 }
 0x5c2   : > { %v8217_v40 = vpop.eup %5872  ;;  %v3701_v30 = vpop.xlane.xlu1 %3700 }
 0x5c3   : > { %5886 = vpow2.f32 %v3880_v29  ;;  %v3890_v28 = vmul.f32 1.442695, %v3784_v54  ;;  %v3785_v13 = vsub.f32 %v7988_v56, %v3701_v30  ;;  %4002 = vadd.xlane.f32.xlu0 %v8217_v40 }
 0x5c4   : > { %v8221_v50 = vpop.eup %5874  ;;  %v3695_v34 = vpop.xlane.xlu0 %3694 }
 0x5c5   : > { %5888 = vpow2.f32 %v3890_v28  ;;  %v3892_v5 = vmul.f32 1.442695, %v3785_v13  ;;  %v3782_v46 = vsub.f32 %v7992_v25, %v3695_v34  ;;  %4004 = vadd.xlane.f32.xlu1 %v8221_v50 }
 0x5c6   : > { %v8225_v14 = vpop.eup %5876  ;;  %v3697_v52 = vpop.xlane.xlu1 %3696 }
 0x5c7   : > { %5890 = vpow2.f32 %v3892_v5  ;;  %v3886_v44 = vmul.f32 1.442695, %v3782_v46  ;;  %v3783_v41 = vsub.f32 %v7996_v20, %v3697_v52  ;;  %3998 = vadd.xlane.f32.xlu0 %v8225_v14 }
 0x5c8   : > { %v8229_v56 = vpop.eup %5878  ;;  %v3707_v24 = vpop.xlane.xlu0 %3706 }
 0x5c9   : > { %5892 = vpow2.f32 %v3886_v44  ;;  %v3888_v8 = vmul.f32 1.442695, %v3783_v41  ;;  %v3788_v18 = vsub.f32 %v8000_v19, %v3707_v24  ;;  %4000 = vadd.xlane.f32.xlu1 %v8229_v56  ;;  %v8910_v24 = vld [vmem:[#allocation40_spill] sm:$0xff] }
 0x5ca   : > { %v8233_v25 = vpop.eup %5880  ;;  %v3709_v22 = vpop.xlane.xlu1 %3708 }
 0x5cb   : > { %5894 = vpow2.f32 %v3888_v8  ;;  %v3898_v39 = vmul.f32 1.442695, %v3788_v18  ;;  %v3789_v26 = vsub.f32 %v8004_v36, %v3709_v22  ;;  %4010 = vadd.xlane.f32.xlu0 %v8233_v25 }
 0x5cc   : > { %v8237_v20 = vpop.eup %5882  ;;  %v3703_v23 = vpop.xlane.xlu0 %3702 }
 0x5cd   : > { %5896 = vpow2.f32 %v3898_v39  ;;  %v3900_v37 = vmul.f32 1.442695, %v3789_v26  ;;  %v3786_v16 = vsub.f32 %v8008_v62, %v3703_v23  ;;  %4012 = vadd.xlane.f32.xlu1 %v8237_v20  ;;  %v8911_v39 = vld [vmem:[#allocation42_spill] sm:$0xff] }
 0x5ce   : > { %v8241_v19 = vpop.eup %5884  ;;  %v3705_v29 = vpop.xlane.xlu1 %3704 }
 0x5cf   : > { %5898 = vpow2.f32 %v3900_v37  ;;  %v3894_v54 = vmul.f32 1.442695, %v3786_v16  ;;  %v3787_v30 = vsub.f32 %v8012_v31, %v3705_v29  ;;  %4006 = vadd.xlane.f32.xlu0 %v8241_v19  ;;  %v8912_v16 = vld [vmem:[#allocation41_spill] sm:$0xff] }
 0x5d0   : > { %v8245_v36 = vpop.eup %5886  ;;  %v3715_v28 = vpop.xlane.xlu0 %3714 }
 0x5d1   : > { %5900 = vpow2.f32 %v3894_v54  ;;  %v3896_v13 = vmul.f32 1.442695, %v3787_v30  ;;  %v3792_v34 = vsub.f32 %v8016_v60, %v3715_v28  ;;  %4008 = vadd.xlane.f32.xlu1 %v8245_v36 }
 0x5d2   : > { %v8249_v62 = vpop.eup %5888  ;;  %v3717_v5 = vpop.xlane.xlu1 %3716 }
 0x5d3   : > { %5902 = vpow2.f32 %v3896_v13  ;;  %v3906_v46 = vmul.f32 1.442695, %v3792_v34  ;;  %v3793_v52 = vsub.f32 %v8020_v53, %v3717_v5  ;;  %4018 = vadd.xlane.f32.xlu0 %v8249_v62  ;;  %v8913_v13 = vld [vmem:[#allocation43_spill] sm:$0xff] }
 0x5d4   : > { %v8253_v31 = vpop.eup %5890  ;;  %v3711_v44 = vpop.xlane.xlu0 %3710 }
 0x5d5   : > { %5904 = vpow2.f32 %v3906_v46  ;;  %v3908_v41 = vmul.f32 1.442695, %v3793_v52  ;;  %v3790_v8 = vsub.f32 %v8910_v24, %v3711_v44  ;;  %4020 = vadd.xlane.f32.xlu1 %v8253_v31  ;;  %v8914_v44 = vld [vmem:[#allocation68_spill] sm:$0xff] }
 0x5d6   : > { %v8257_v60 = vpop.eup %5892  ;;  %v3713_v18 = vpop.xlane.xlu1 %3712 }
 0x5d7   : > { %5906 = vpow2.f32 %v3908_v41  ;;  %v3902_v22 = vmul.f32 1.442695, %v3790_v8  ;;  %v3791_v26 = vsub.f32 %v8911_v39, %v3713_v18  ;;  %4014 = vadd.xlane.f32.xlu0 %v8257_v60 }
 0x5d8   : > { %v8261_v53 = vpop.eup %5894  ;;  %v3723_v23 = vpop.xlane.xlu0 %3722 }
 0x5d9   : > { %5908 = vpow2.f32 %v3902_v22  ;;  %v3904_v37 = vmul.f32 1.442695, %v3791_v26  ;;  %v3796_v29 = vsub.f32 %v8912_v16, %v3723_v23  ;;  %4016 = vadd.xlane.f32.xlu1 %v8261_v53  ;;  %v8916_v22 = vld [vmem:[#allocation69_spill] sm:$0xff]  ;;  %v8918_v16 = vld [vmem:[#allocation71_spill] sm:$0xff] }
 0x5da   : > { %v8265_v54 = vpop.eup %5896  ;;  %v3725_v30 = vpop.xlane.xlu1 %3724 }
 0x5db   : > { %5910 = vpow2.f32 %v3904_v37  ;;  %v3914_v28 = vmul.f32 1.442695, %v3796_v29  ;;  %v3797_v34 = vsub.f32 %v8913_v13, %v3725_v30  ;;  %4026 = vadd.xlane.f32.xlu0 %v8265_v54 }
 0x5dc   : > { %v8269_v5 = vpop.eup %5898  ;;  %v3719_v46 = vpop.xlane.xlu0 %3718 }
 0x5dd   : > { %5912 = vpow2.f32 %v3914_v28  ;;  %v3916_v52 = vmul.f32 1.442695, %v3797_v34  ;;  %v3794_v41 = vsub.f32 %v8914_v44, %v3719_v46  ;;  %4028 = vadd.xlane.f32.xlu1 %v8269_v5  ;;  %v8920_v34 = vld [vmem:[#allocation70_spill] sm:$0xff] }
 0x5de   : > { %v8273_v24 = vpop.eup %5900  ;;  %v3721_v8 = vpop.xlane.xlu1 %3720 }
 0x5df   : > { %8915 = vst [vmem:[#allocation75_spill] sm:$0xff] %v8273_v24  ;;  %5914 = vpow2.f32 %v3916_v52  ;;  %v3910_v18 = vmul.f32 1.442695, %v3794_v41  ;;  %v3795_v39 = vsub.f32 %v8916_v22, %v3721_v8  ;;  %4022 = vadd.xlane.f32.xlu0 %v8273_v24  ;;  %v8922_v8 = vld [vmem:[#allocation44_spill] sm:$0xff] }
 0x5e0   : > { %v8277_v26 = vpop.eup %5902  ;;  %v3731_v23 = vpop.xlane.xlu0 %3730 }
 0x5e1   : > { %8917 = vst [vmem:[#allocation74_spill] sm:$0xff] %v8277_v26  ;;  %5916 = vpow2.f32 %v3910_v18  ;;  %v3912_v37 = vmul.f32 1.442695, %v3795_v39  ;;  %v3800_v29 = vsub.f32 %v8918_v16, %v3731_v23  ;;  %4024 = vadd.xlane.f32.xlu1 %v8277_v26 }
 0x5e2   : > { %v8281_v30 = vpop.eup %5904  ;;  %v3733_v28 = vpop.xlane.xlu1 %3732 }
 0x5e3   : > { %8919 = vst [vmem:[#allocation49_spill] sm:$0xff] %v8281_v30  ;;  %5918 = vpow2.f32 %v3912_v37  ;;  %v3922_v13 = vmul.f32 1.442695, %v3800_v29  ;;  %v3801_v46 = vsub.f32 %v8920_v34, %v3733_v28  ;;  %4034 = vadd.xlane.f32.xlu0 %v8281_v30  ;;  %v8924_v37 = vld [vmem:[#allocation46_spill] sm:$0xff]  ;;  %v8930_v30 = vld [vmem:[#allocation72_spill] sm:$0xff] }
 0x5e4   : > { %v8285_v52 = vpop.eup %5906  ;;  %v3727_v44 = vpop.xlane.xlu0 %3726 }
 0x5e5   : > { %8921 = vst [vmem:[#allocation48_spill] sm:$0xff] %v8285_v52  ;;  %5920 = vpow2.f32 %v3922_v13  ;;  %v3924_v41 = vmul.f32 1.442695, %v3801_v46  ;;  %v3798_v18 = vsub.f32 %v8922_v8, %v3727_v44  ;;  %4036 = vadd.xlane.f32.xlu1 %v8285_v52  ;;  %v8927_v8 = vld [vmem:[#allocation45_spill] sm:$0xff] }
 0x5e6   : > { %v8289_v22 = vpop.eup %5908  ;;  %v3729_v39 = vpop.xlane.xlu1 %3728 }
 0x5e7   : > { %8923 = vst [vmem:[#allocation50_spill] sm:$0xff] %v8289_v22  ;;  %5922 = vpow2.f32 %v3924_v41  ;;  %v3918_v23 = vmul.f32 1.442695, %v3798_v18  ;;  %v3799_v16 = vsub.f32 %v8924_v37, %v3729_v39  ;;  %4030 = vadd.xlane.f32.xlu0 %v8289_v22  ;;  %v8928_v39 = vld [vmem:[#allocation73_spill] sm:$0xff] }
 0x5e8   : > { %v8293_v29 = vpop.eup %5910  ;;  %v3739_v28 = vpop.xlane.xlu0 %3738 }
 0x5e9   : > { %8925 = vst [vmem:[#allocation51_spill] sm:$0xff] %v8293_v29  ;;  %5924 = vpow2.f32 %v3918_v23  ;;  %v3920_v34 = vmul.f32 1.442695, %v3799_v16  ;;  %4032 = vadd.xlane.f32.xlu1 %v8293_v29  ;;  %v3804_v18 = vsub.f32 %v8927_v8, %v3739_v28  ;;  %v8929_v16 = vld [vmem:[#allocation47_spill] sm:$0xff] }
 0x5ea   : > { %v8296_v13 = vpop.eup %5912  ;;  %v3741_v46 = vpop.xlane.xlu1 %3740 }
 0x5eb   : > { %8926 = vst [vmem:[#allocation76_spill] sm:$0xff] %v8296_v13  ;;  %5926 = vpow2.f32 %v3920_v34  ;;  %4042 = vadd.xlane.f32.xlu0 %v8296_v13  ;;  %v3805_v29 = vsub.f32 %v8929_v16, %v3741_v46  ;;  %v3930_v13 = vmul.f32 1.442695, %v3804_v18 }
 0x5ec   : > { %v8299_v44 = vpop.eup %5914  ;;  %v3735_v41 = vpop.xlane.xlu0 %3734 }
 0x5ed   : > { %v3802_v37 = vsub.f32 %v8928_v39, %v3735_v41  ;;  %4044 = vadd.xlane.f32.xlu1 %v8299_v44  ;;  %v3932_v41 = vmul.f32 1.442695, %v3805_v29 }
 0x5ee   : > { %v8304_v22 = vpop.eup %5916  ;;  %v3737_v23 = vpop.xlane.xlu1 %3736 }
 0x5ef   : > { %v3926_v52 = vmul.f32 1.442695, %v3802_v37  ;;  %v3803_v26 = vsub.f32 %v8930_v30, %v3737_v23  ;;  %4038 = vadd.xlane.f32.xlu0 %v8304_v22 }
 0x5f0   : > { %v8309_v34 = vpop.eup %5918 }
 0x5f1   : > { %5928 = vpow2.f32 %v3926_v52  ;;  %v3928_v24 = vmul.f32 1.442695, %v3803_v26  ;;  %4040 = vadd.xlane.f32.xlu1 %v8309_v34 }
 0x5f2   : > { %v8312_v28 = vpop.eup %5920 }
 0x5f3   : > { %5930 = vpow2.f32 %v3928_v24  ;;  %4050 = vadd.xlane.f32.xlu0 %v8312_v28 }
 0x5f4   : > { %v8315_v8 = vpop.eup %5922  ;;  %5932 = vpow2.f32 %v3930_v13 }
 0x5f5   : > { %4052 = vadd.xlane.f32.xlu1 %v8315_v8  ;;  %5934 = vpow2.f32 %v3932_v41 }
 0x5f6   : > { %v8318_v30 = vpop.eup %5924 }
 0x5f7   : > { %8931 = vst [vmem:[#allocation78_spill] sm:$0xff] %v8318_v30  ;;  %4046 = vadd.xlane.f32.xlu0 %v8318_v30 }
 0x5f8   : > { %v8321_v52 = vpop.eup %5926 }
 0x5f9   : > { %8932 = vst [vmem:[#allocation77_spill] sm:$0xff] %v8321_v52  ;;  %4048 = vadd.xlane.f32.xlu1 %v8321_v52 }
 0x5fe   : > { %v8324_v26 = vpop.eup %5928 }
 0x5ff   : > { %8933 = vst [vmem:[#allocation52_spill] sm:$0xff] %v8324_v26  ;;  %4054 = vadd.xlane.f32.xlu0 %v8324_v26 }
 0x600   : > { %v8327_v24 = vpop.eup %5930 }
 0x601   : > { %8934 = vst [vmem:[#allocation54_spill] sm:$0xff] %v8327_v24  ;;  %4056 = vadd.xlane.f32.xlu1 %v8327_v24  ;;  %v8330_v29 = vpop.eup %5932 }
 0x602   : > { %8935 = vst [vmem:[#allocation53_spill] sm:$0xff] %v8330_v29  ;;  %v8333_v13 = vpop.eup %5934 }
 0x603   : > { %4058 = vadd.xlane.f32.xlu0 %v8330_v29  ;;  %8936 = vst [vmem:[#allocation55_spill] sm:$0xff] %v8333_v13 }
 0x605   : > { %4060 = vadd.xlane.f32.xlu1 %v8333_v13 }
 0x60a   : > { %v3939_v46 = vpop.xlane.xlu0 %3938 }
 0x60b   : > { %5936 = vrcp.f32 %v3939_v46 }
 0x60e   : > { %v3941_v18 = vpop.xlane.xlu1 %3940  ;;  %v3935_v39 = vpop.xlane.xlu0 %3934 }
 0x60f   : > { %5938 = vrcp.f32 %v3941_v18 }
 0x610   : > { %5940 = vrcp.f32 %v3935_v39 }
 0x612   : > { %v3937_v37 = vpop.xlane.xlu1 %3936 }
 0x613   : > { %5942 = vrcp.f32 %v3937_v37 }
 0x614   : > { %v3947_v23 = vpop.xlane.xlu0 %3946 }
 0x615   : > { %5944 = vrcp.f32 %v3947_v23 }
 0x616   : > { %v3949_v16 = vpop.xlane.xlu1 %3948 }
 0x617   : > { %5946 = vrcp.f32 %v3949_v16 }
 0x618   : > { %v3943_v41 = vpop.xlane.xlu0 %3942  ;;  %v5937_v29 = vpop.eup %5936 }
 0x619   : > { %5948 = vrcp.f32 %v3943_v41  ;;  %v4128_v46 = vmul.f32 %v5937_v29, %v8088_v61 }
 0x61a   : > { %v3945_v24 = vpop.xlane.xlu1 %3944 }
 0x61b   : > { %5950 = vrcp.f32 %v3945_v24 }
 0x61c   : > { %v5939_v26 = vpop.eup %5938  ;;  %v3955_v13 = vpop.xlane.xlu0 %3954 }
 0x61d   : > { %v4129_v52 = vmul.f32 %v5939_v26, %v8095_v11  ;;  %5952 = vrcp.f32 %v3955_v13  ;;  %v5941_v18 = vpop.eup %5940 }
 0x61e   : > { %v3957_v39 = vpop.xlane.xlu1 %3956  ;;  %v4126_v61 = vmul.f32 %v5941_v18, %v8092_v48 }
 0x61f   : > { %v4825_v37 = vpack.c.bf16 %v4129_v52, %v4128_v46  ;;  %5954 = vrcp.f32 %v3957_v39 }
 0x620   : > { %v5943_v24 = vpop.eup %5942  ;;  %v3951_v23 = vpop.xlane.xlu0 %3950 }
 0x621   : > { %4977 = vst [vmem:[%s8343_s14 + $0x8] sm:$0xff] %v4825_v37   ;;  %v4127_v11 = vmul.f32 %v5943_v24, %v8101_v32  ;;  %5956 = vrcp.f32 %v3951_v23 }
 0x622   : > { %v5945_v26 = vpop.eup %5944  ;;  %v3953_v29 = vpop.xlane.xlu1 %3952 }
 0x623   : > { %v4820_v13 = vpack.c.bf16 %v4127_v11, %v4126_v61  ;;  %5958 = vrcp.f32 %v3953_v29  ;;  %v4132_v30 = vmul.f32 %v5945_v26, %v8105_v17 }
 0x624   : > { %v5947_v16 = vpop.eup %5946  ;;  %v3963_v41 = vpop.xlane.xlu0 %3962 }
 0x625   : > { %4821 = vst [vmem:[%s8343_s14] sm:$0xff] %v4820_v13   ;;  %v4133_v52 = vmul.f32 %v5947_v16, %v8109_v1  ;;  %5960 = vrcp.f32 %v3963_v41 }
 0x626   : > { %v5949_v46 = vpop.eup %5948  ;;  %v3965_v39 = vpop.xlane.xlu1 %3964 }
 0x627   : > { %v4835_v48 = vpack.c.bf16 %v4133_v52, %v4132_v30  ;;  %5962 = vrcp.f32 %v3965_v39  ;;  %v4130_v37 = vmul.f32 %v5949_v46, %v8113_v33 }
 0x628   : > { %v5951_v32 = vpop.eup %5950  ;;  %v3959_v18 = vpop.xlane.xlu0 %3958 }
 0x629   : > { %4979 = vst [vmem:[%s8343_s14 + $0x18] sm:$0xff] %v4835_v48   ;;  %v4131_v24 = vmul.f32 %v5951_v32, %v8117_v6  ;;  %5964 = vrcp.f32 %v3959_v18 }
 0x62a   : > { %v5953_v23 = vpop.eup %5952  ;;  %v3961_v61 = vpop.xlane.xlu1 %3960 }
 0x62b   : > { %v4830_v17 = vpack.c.bf16 %v4131_v24, %v4130_v37  ;;  %5966 = vrcp.f32 %v3961_v61  ;;  %v4136_v26 = vmul.f32 %v5953_v23, %v8121_v51 }
 0x62c   : > { %v5955_v1 = vpop.eup %5954  ;;  %v3971_v11 = vpop.xlane.xlu0 %3970 }
 0x62d   : > { %4978 = vst [vmem:[%s8343_s14 + $0x10] sm:$0xff] %v4830_v17   ;;  %v4137_v30 = vmul.f32 %v5955_v1, %v8125_v45  ;;  %5968 = vrcp.f32 %v3971_v11 }
 0x62e   : > { %v5957_v29 = vpop.eup %5956  ;;  %v3973_v13 = vpop.xlane.xlu1 %3972 }
 0x62f   : > { %v4845_v33 = vpack.c.bf16 %v4137_v30, %v4136_v26  ;;  %5970 = vrcp.f32 %v3973_v13  ;;  %v4134_v41 = vmul.f32 %v5957_v29, %v8129_v9 }
 0x630   : > { %v5959_v6 = vpop.eup %5958  ;;  %v3967_v16 = vpop.xlane.xlu0 %3966 }
 0x631   : > { %4981 = vst [vmem:[%s8343_s14 + $0x28] sm:$0xff] %v4845_v33   ;;  %v4135_v52 = vmul.f32 %v5959_v6, %v8133_v57  ;;  %5972 = vrcp.f32 %v3967_v16 }
 0x632   : > { %v5961_v46 = vpop.eup %5960  ;;  %v3969_v39 = vpop.xlane.xlu1 %3968 }
 0x633   : > { %v4840_v51 = vpack.c.bf16 %v4135_v52, %v4134_v41  ;;  %5974 = vrcp.f32 %v3969_v39  ;;  %v4140_v32 = vmul.f32 %v5961_v46, %v8137_v47 }
 0x634   : > { %v5963_v45 = vpop.eup %5962  ;;  %v3979_v48 = vpop.xlane.xlu0 %3978 }
 0x635   : > { %4980 = vst [vmem:[%s8343_s14 + $0x20] sm:$0xff] %v4840_v51   ;;  %v4141_v18 = vmul.f32 %v5963_v45, %v8141_v12  ;;  %5976 = vrcp.f32 %v3979_v48 }
 0x636   : > { %v5965_v37 = vpop.eup %5964  ;;  %v3981_v24 = vpop.xlane.xlu1 %3980 }
 0x637   : > { %v4855_v9 = vpack.c.bf16 %v4141_v18, %v4140_v32  ;;  %5978 = vrcp.f32 %v3981_v24  ;;  %v4138_v61 = vmul.f32 %v5965_v37, %v8145_v7 }
 0x638   : > { %v5967_v57 = vpop.eup %5966  ;;  %v3975_v23 = vpop.xlane.xlu0 %3974 }
 0x639   : > { %4983 = vst [vmem:[%s8343_s14 + $0x38] sm:$0xff] %v4855_v9   ;;  %v4139_v17 = vmul.f32 %v5967_v57, %v8149_v27  ;;  %5980 = vrcp.f32 %v3975_v23 }
 0x63a   : > { %v5969_v1 = vpop.eup %5968  ;;  %v3977_v11 = vpop.xlane.xlu1 %3976 }
 0x63b   : > { %v4850_v47 = vpack.c.bf16 %v4139_v17, %v4138_v61  ;;  %5982 = vrcp.f32 %v3977_v11  ;;  %v4144_v30 = vmul.f32 %v5969_v1, %v8153_v63 }
 0x63c   : > { %v5971_v12 = vpop.eup %5970  ;;  %v3987_v26 = vpop.xlane.xlu0 %3986 }
 0x63d   : > { %4982 = vst [vmem:[%s8343_s14 + $0x30] sm:$0xff] %v4850_v47   ;;  %v4145_v29 = vmul.f32 %v5971_v12, %v8157_v49  ;;  %5984 = vrcp.f32 %v3987_v26 }
 0x63e   : > { %v5973_v13 = vpop.eup %5972  ;;  %v3989_v33 = vpop.xlane.xlu1 %3988 }
 0x63f   : > { %v4865_v7 = vpack.c.bf16 %v4145_v29, %v4144_v30  ;;  %5986 = vrcp.f32 %v3989_v33  ;;  %v4142_v16 = vmul.f32 %v5973_v13, %v8161_v10 }
 0x640   : > { %v5975_v27 = vpop.eup %5974  ;;  %v3983_v6 = vpop.xlane.xlu0 %3982 }
 0x641   : > { %4985 = vst [vmem:[%s8343_s14 + $0x48] sm:$0xff] %v4865_v7   ;;  %v4143_v41 = vmul.f32 %v5975_v27, %v8165_v58  ;;  %5988 = vrcp.f32 %v3983_v6 }
 0x642   : > { %v5977_v52 = vpop.eup %5976  ;;  %v3985_v46 = vpop.xlane.xlu1 %3984 }
 0x643   : > { %v4860_v63 = vpack.c.bf16 %v4143_v41, %v4142_v16  ;;  %5990 = vrcp.f32 %v3985_v46  ;;  %v4148_v51 = vmul.f32 %v5977_v52, %v8169_v0 }
 0x644   : > { %v5979_v49 = vpop.eup %5978  ;;  %v3995_v39 = vpop.xlane.xlu0 %3994 }
 0x645   : > { %4984 = vst [vmem:[%s8343_s14 + $0x40] sm:$0xff] %v4860_v63   ;;  %v4149_v45 = vmul.f32 %v5979_v49, %v8173_v2  ;;  %5992 = vrcp.f32 %v3995_v39 }
 0x646   : > { %v5981_v48 = vpop.eup %5980  ;;  %v3997_v32 = vpop.xlane.xlu1 %3996 }
 0x647   : > { %v4875_v10 = vpack.c.bf16 %v4149_v45, %v4148_v51  ;;  %5994 = vrcp.f32 %v3997_v32  ;;  %v4146_v37 = vmul.f32 %v5981_v48, %v8177_v21 }
 0x648   : > { %v5983_v58 = vpop.eup %5982  ;;  %v3991_v18 = vpop.xlane.xlu0 %3990 }
 0x649   : > { %4987 = vst [vmem:[%s8343_s14 + $0x58] sm:$0xff] %v4875_v10   ;;  %v4147_v24 = vmul.f32 %v5983_v58, %v8181_v55  ;;  %5996 = vrcp.f32 %v3991_v18 }
 0x64a   : > { %v5985_v9 = vpop.eup %5984  ;;  %v3993_v57 = vpop.xlane.xlu1 %3992 }
 0x64b   : > { %v4870_v0 = vpack.c.bf16 %v4147_v24, %v4146_v37  ;;  %5998 = vrcp.f32 %v3993_v57  ;;  %v4152_v61 = vmul.f32 %v5985_v9, %v8185_v3 }
 0x64c   : > { %v5987_v2 = vpop.eup %5986  ;;  %v4003_v23 = vpop.xlane.xlu0 %4002 }
 0x64d   : > { %4986 = vst [vmem:[%s8343_s14 + $0x50] sm:$0xff] %v4870_v0   ;;  %v4153_v17 = vmul.f32 %v5987_v2, %v8189_v43  ;;  %6000 = vrcp.f32 %v4003_v23 }
 0x64e   : > { %v5989_v1 = vpop.eup %5988  ;;  %v4005_v11 = vpop.xlane.xlu1 %4004 }
 0x64f   : > { %v4885_v21 = vpack.c.bf16 %v4153_v17, %v4152_v61  ;;  %6002 = vrcp.f32 %v4005_v11  ;;  %v4150_v12 = vmul.f32 %v5989_v1, %v8193_v38 }
 0x650   : > { %v5991_v55 = vpop.eup %5990  ;;  %v3999_v47 = vpop.xlane.xlu0 %3998 }
 0x651   : > { %4989 = vst [vmem:[%s8343_s14 + $0x68] sm:$0xff] %v4885_v21   ;;  %v4151_v26 = vmul.f32 %v5991_v55, %v8197_v42  ;;  %6004 = vrcp.f32 %v3999_v47 }
 0x652   : > { %v5993_v30 = vpop.eup %5992  ;;  %v4001_v29 = vpop.xlane.xlu1 %4000 }
 0x653   : > { %v4880_v3 = vpack.c.bf16 %v4151_v26, %v4150_v12  ;;  %6006 = vrcp.f32 %v4001_v29  ;;  %v4156_v33 = vmul.f32 %v5993_v30, %v8201_v59 }
 0x654   : > { %v5995_v43 = vpop.eup %5994  ;;  %v4011_v13 = vpop.xlane.xlu0 %4010 }
 0x655   : > { %4988 = vst [vmem:[%s8343_s14 + $0x60] sm:$0xff] %v4880_v3   ;;  %v4157_v7 = vmul.f32 %v5995_v43, %v8205_v4  ;;  %6008 = vrcp.f32 %v4011_v13 }
 0x656   : > { %v5997_v27 = vpop.eup %5996  ;;  %v4013_v6 = vpop.xlane.xlu1 %4012 }
 0x657   : > { %v4895_v38 = vpack.c.bf16 %v4157_v7, %v4156_v33  ;;  %6010 = vrcp.f32 %v4013_v6  ;;  %v4154_v41 = vmul.f32 %v5997_v27, %v8209_v35 }
 0x658   : > { %v5999_v42 = vpop.eup %5998  ;;  %v4007_v16 = vpop.xlane.xlu0 %4006 }
 0x659   : > { %4991 = vst [vmem:[%s8343_s14 + $0x78] sm:$0xff] %v4895_v38   ;;  %v4155_v52 = vmul.f32 %v5999_v42, %v8213_v15  ;;  %6012 = vrcp.f32 %v4007_v16  ;;  %v8937_v16 = vld [vmem:[#allocation75_spill] sm:$0xff] }
 0x65a   : > { %v6001_v46 = vpop.eup %6000  ;;  %v4009_v63 = vpop.xlane.xlu1 %4008 }
 0x65b   : > { %v4890_v59 = vpack.c.bf16 %v4155_v52, %v4154_v41  ;;  %6014 = vrcp.f32 %v4009_v63  ;;  %v4160_v39 = vmul.f32 %v6001_v46, %v8217_v40  ;;  %v8938_v52 = vld [vmem:[#allocation74_spill] sm:$0xff] }
 0x65c   : > { %v6003_v4 = vpop.eup %6002  ;;  %v4019_v49 = vpop.xlane.xlu0 %4018 }
 0x65d   : > { %4990 = vst [vmem:[%s8343_s14 + $0x70] sm:$0xff] %v4890_v59   ;;  %v4161_v51 = vmul.f32 %v6003_v4, %v8221_v50  ;;  %6016 = vrcp.f32 %v4019_v49  ;;  %v8939_v49 = vld [vmem:[#allocation49_spill] sm:$0xff] }
 0x65e   : > { %v6005_v45 = vpop.eup %6004  ;;  %v4021_v48 = vpop.xlane.xlu1 %4020 }
 0x65f   : > { %v4905_v35 = vpack.c.bf16 %v4161_v51, %v4160_v39  ;;  %6018 = vrcp.f32 %v4021_v48  ;;  %v4158_v10 = vmul.f32 %v6005_v45, %v8225_v14  ;;  %v8940_v51 = vld [vmem:[#allocation48_spill] sm:$0xff] }
 0x660   : > { %v6007_v15 = vpop.eup %6006  ;;  %v4015_v32 = vpop.xlane.xlu0 %4014 }
 0x661   : > { %4993 = vst [vmem:[%s8343_s14 + $0x88] sm:$0xff] %v4905_v35   ;;  %v4159_v58 = vmul.f32 %v6007_v15, %v8229_v56  ;;  %6020 = vrcp.f32 %v4015_v32 }
 0x662   : > { %v6009_v18 = vpop.eup %6008  ;;  %v4017_v37 = vpop.xlane.xlu1 %4016 }
 0x663   : > { %v4900_v40 = vpack.c.bf16 %v4159_v58, %v4158_v10  ;;  %6022 = vrcp.f32 %v4017_v37  ;;  %v4164_v9 = vmul.f32 %v6009_v18, %v8233_v25  ;;  %v8941_v58 = vld [vmem:[#allocation50_spill] sm:$0xff]  ;;  %v8942_v37 = vld [vmem:[#allocation51_spill] sm:$0xff] }
 0x664   : > { %v6011_v50 = vpop.eup %6010  ;;  %v4027_v24 = vpop.xlane.xlu0 %4026 }
 0x665   : > { %4992 = vst [vmem:[%s8343_s14 + $0x80] sm:$0xff] %v4900_v40   ;;  %v4165_v57 = vmul.f32 %v6011_v50, %v8237_v20  ;;  %6024 = vrcp.f32 %v4027_v24 }
 0x666   : > { %v6013_v0 = vpop.eup %6012  ;;  %v4029_v2 = vpop.xlane.xlu1 %4028 }
 0x667   : > { %v4915_v14 = vpack.c.bf16 %v4165_v57, %v4164_v9  ;;  %6026 = vrcp.f32 %v4029_v2  ;;  %v4162_v61 = vmul.f32 %v6013_v0, %v8241_v19  ;;  %v8943_v0 = vld [vmem:[#allocation76_spill] sm:$0xff] }
 0x668   : > { %v6015_v56 = vpop.eup %6014  ;;  %v4023_v23 = vpop.xlane.xlu0 %4022 }
 0x669   : > { %4995 = vst [vmem:[%s8343_s14 + $0x98] sm:$0xff] %v4915_v14   ;;  %v4163_v17 = vmul.f32 %v6015_v56, %v8245_v36  ;;  %6028 = vrcp.f32 %v4023_v23 }
 0x66a   : > { %v6017_v1 = vpop.eup %6016  ;;  %v4025_v11 = vpop.xlane.xlu1 %4024 }
 0x66b   : > { %v4910_v25 = vpack.c.bf16 %v4163_v17, %v4162_v61  ;;  %6030 = vrcp.f32 %v4025_v11  ;;  %v4168_v55 = vmul.f32 %v6017_v1, %v8249_v62 }
 0x66c   : > { %v6019_v20 = vpop.eup %6018  ;;  %v4035_v21 = vpop.xlane.xlu0 %4034 }
 0x66d   : > { %4994 = vst [vmem:[%s8343_s14 + $0x90] sm:$0xff] %v4910_v25   ;;  %v4169_v47 = vmul.f32 %v6019_v20, %v8253_v31  ;;  %6032 = vrcp.f32 %v4035_v21 }
 0x66e   : > { %v6021_v12 = vpop.eup %6020  ;;  %v4037_v26 = vpop.xlane.xlu1 %4036 }
 0x66f   : > { %v4925_v19 = vpack.c.bf16 %v4169_v47, %v4168_v55  ;;  %6034 = vrcp.f32 %v4037_v26  ;;  %v4166_v29 = vmul.f32 %v6021_v12, %v8257_v60 }
 0x670   : > { %v6023_v36 = vpop.eup %6022  ;;  %v4031_v30 = vpop.xlane.xlu0 %4030 }
 0x671   : > { %4997 = vst [vmem:[%s8343_s14 + $0xa8] sm:$0xff] %v4925_v19   ;;  %v4167_v3 = vmul.f32 %v6023_v36, %v8261_v53  ;;  %6036 = vrcp.f32 %v4031_v30  ;;  %v8944_v36 = vld [vmem:[#allocation78_spill] sm:$0xff] }
 0x672   : > { %v6025_v43 = vpop.eup %6024  ;;  %v4033_v13 = vpop.xlane.xlu1 %4032 }
 0x673   : > { %v4920_v62 = vpack.c.bf16 %v4167_v3, %v4166_v29  ;;  %6038 = vrcp.f32 %v4033_v13  ;;  %v4172_v7 = vmul.f32 %v6025_v43, %v8265_v54  ;;  %v8945_v29 = vld [vmem:[#allocation77_spill] sm:$0xff] }
 0x674   : > { %v6027_v31 = vpop.eup %6026  ;;  %v4043_v33 = vpop.xlane.xlu0 %4042 }
 0x675   : > { %4996 = vst [vmem:[%s8343_s14 + $0xa0] sm:$0xff] %v4920_v62   ;;  %v4173_v27 = vmul.f32 %v6027_v31, %v8269_v5  ;;  %6040 = vrcp.f32 %v4043_v33 }
 0x676   : > { %v6029_v6 = vpop.eup %6028  ;;  %v4045_v38 = vpop.xlane.xlu1 %4044 }
 0x677   : > { %v4935_v60 = vpack.c.bf16 %v4173_v27, %v4172_v7  ;;  %6042 = vrcp.f32 %v4045_v38  ;;  %v4170_v41 = vmul.f32 %v6029_v6, %v8937_v16  ;;  %v8948_v38 = vld [vmem:[#allocation53_spill] sm:$0xff] }
 0x678   : > { %v6031_v53 = vpop.eup %6030  ;;  %v4039_v42 = vpop.xlane.xlu0 %4038 }
 0x679   : > { %4999 = vst [vmem:[%s8343_s14 + $0xb8] sm:$0xff] %v4935_v60   ;;  %v4171_v46 = vmul.f32 %v6031_v53, %v8938_v52  ;;  %6044 = vrcp.f32 %v4039_v42  ;;  %v8949_v53 = vld [vmem:[#allocation55_spill] sm:$0xff] }
 0x67a   : > { %v6033_v63 = vpop.eup %6032  ;;  %v4041_v59 = vpop.xlane.xlu1 %4040 }
 0x67b   : > { %v4930_v54 = vpack.c.bf16 %v4171_v46, %v4170_v41  ;;  %6046 = vrcp.f32 %v4041_v59  ;;  %v4176_v39 = vmul.f32 %v6033_v63, %v8939_v49 }
 0x67c   : > { %v6035_v5 = vpop.eup %6034  ;;  %v4051_v4 = vpop.xlane.xlu0 %4050 }
 0x67d   : > { %4998 = vst [vmem:[%s8343_s14 + $0xb0] sm:$0xff] %v4930_v54   ;;  %v4177_v45 = vmul.f32 %v6035_v5, %v8940_v51  ;;  %6048 = vrcp.f32 %v4051_v4 }
 0x67e   : > { %v6037_v48 = vpop.eup %6036  ;;  %v4053_v35 = vpop.xlane.xlu1 %4052 }
 0x67f   : > { %v4945_v15 = vpack.c.bf16 %v4177_v45, %v4176_v39  ;;  %6050 = vrcp.f32 %v4053_v35  ;;  %v4174_v18 = vmul.f32 %v6037_v48, %v8941_v58 }
 0x680   : > { %v6039_v32 = vpop.eup %6038  ;;  %v4047_v10 = vpop.xlane.xlu0 %4046 }
 0x681   : > { %5001 = vst [vmem:[%s8343_s14 + $0xc8] sm:$0xff] %v4945_v15   ;;  %v4175_v40 = vmul.f32 %v6039_v32, %v8942_v37  ;;  %6052 = vrcp.f32 %v4047_v10 }
 0x682   : > { %v6041_v50 = vpop.eup %6040  ;;  %v4049_v24 = vpop.xlane.xlu1 %4048 }
 0x683   : > { %v4940_v9 = vpack.c.bf16 %v4175_v40, %v4174_v18  ;;  %6054 = vrcp.f32 %v4049_v24  ;;  %v4180_v2 = vmul.f32 %v6041_v50, %v8943_v0 }
 0x684   : > { %v6043_v57 = vpop.eup %6042 }
 0x685   : > { %5000 = vst [vmem:[%s8343_s14 + $0xc0] sm:$0xff] %v4940_v9   ;;  %v4181_v14 = vmul.f32 %v6043_v57, %v8299_v44 }
 0x686   : > { %v6045_v56 = vpop.eup %6044 }
 0x687   : > { %v4955_v23 = vpack.c.bf16 %v4181_v14, %v4180_v2  ;;  %v4178_v1 = vmul.f32 %v6045_v56, %v8304_v22 }
 0x688   : > { %v6047_v61 = vpop.eup %6046  ;;  %v4055_v17 = vpop.xlane.xlu0 %4054 }
 0x689   : > { %5003 = vst [vmem:[%s8343_s14 + $0xd8] sm:$0xff] %v4955_v23   ;;  %v4179_v11 = vmul.f32 %v6047_v61, %v8309_v34  ;;  %6056 = vrcp.f32 %v4055_v17 }
 0x68a   : > { %v6049_v25 = vpop.eup %6048  ;;  %v4057_v20 = vpop.xlane.xlu1 %4056 }
 0x68b   : > { %v4950_v21 = vpack.c.bf16 %v4179_v11, %v4178_v1  ;;  %6058 = vrcp.f32 %v4057_v20  ;;  %v4184_v44 = vmul.f32 %v6049_v25, %v8312_v28  ;;  %v8946_v28 = vld [vmem:[#allocation52_spill] sm:$0xff] }
 0x68c   : > { %v6051_v55 = vpop.eup %6050  ;;  %v4059_v47 = vpop.xlane.xlu0 %4058 }
 0x68d   : > { %5002 = vst [vmem:[%s8343_s14 + $0xd0] sm:$0xff] %v4950_v21   ;;  %v4185_v12 = vmul.f32 %v6051_v55, %v8315_v8  ;;  %6060 = vrcp.f32 %v4059_v47  ;;  %v8947_v8 = vld [vmem:[#allocation54_spill] sm:$0xff] }
 0x68e   : > { %v6053_v26 = vpop.eup %6052  ;;  %v4061_v19 = vpop.xlane.xlu1 %4060 }
 0x68f   : > { %v4965_v22 = vpack.c.bf16 %v4185_v12, %v4184_v44  ;;  %6062 = vrcp.f32 %v4061_v19  ;;  %v4182_v30 = vmul.f32 %v6053_v26, %v8944_v36 }
 0x690   : > { %v6055_v34 = vpop.eup %6054 }
 0x691   : > { %5005 = vst [vmem:[%s8343_s14 + $0xe8] sm:$0xff] %v4965_v22   ;;  %v4183_v3 = vmul.f32 %v6055_v34, %v8945_v29 }
 0x693   : > { %v4960_v43 = vpack.c.bf16 %v4183_v3, %v4182_v30 }
 0x695   : > { %5004 = vst [vmem:[%s8343_s14 + $0xe0] sm:$0xff] %v4960_v43  }
 0x696   : > { %v6057_v13 = vpop.eup %6056 }
 0x697   : > { %v4186_v31 = vmul.f32 %v6057_v13, %v8946_v28 }
 0x698   : > { %v6059_v62 = vpop.eup %6058 }
 0x699   : > { %v4187_v33 = vmul.f32 %v6059_v62, %v8947_v8 }
 0x69a   : > { %v6061_v7 = vpop.eup %6060 }
 0x69b   : > { %v4970_v27 = vpack.c.bf16 %v4187_v33, %v4186_v31  ;;  %v4188_v60 = vmul.f32 %v6061_v7, %v8948_v38 }
 0x69c   : > { %v6063_v6 = vpop.eup %6062 }
 0x69d   : > { %5006 = vst [vmem:[%s8343_s14 + $0xf0] sm:$0xff] %v4970_v27   ;;  %v4189_v42 = vmul.f32 %v6063_v6, %v8949_v53 }
 0x69f   : > { %v4975_v16 = vpack.c.bf16 %v4189_v42, %v4188_v60 }
 0x6a1   : > { %5007 = vst [vmem:[%s8343_s14 + $0xf8] sm:$0xff] %v4975_v16  }
 0x6a2 PF: > { %s23_s25 = sadd.s32 1, %s6070_s25  }
 0x6a3   : > { %p20_p4 = scmp.ge.s32.totalorder %s23_s25, 4  }
 0x6a5   :  { %22 = sbr.rel (!%p20_p4) target bundleno = 1 (0x1), region = 102 }

</bundles_post_ra>
